<compile_context>
chip_gen: v5e
topology: v5e:2x2
jax: 0.10.0
libtpu: 0.0.40
codegen_flags: <defaults>
</compile_context>

<pallas_src>
import functools

import numpy as np

import jax
import jax.numpy as jnp
from jax.experimental import pallas as pl
from jax.experimental.pallas import tpu as pltpu

DILATIONS = (1, 3, 9, 27)

_CPARAMS = pltpu.CompilerParams(
    dimension_semantics=("parallel",),
    vmem_limit_bytes=32 * 1024 * 1024,
)


# ---------------------------------------------------------------------------
# BlockSpec helpers (grid over batch; weights resident)
# ---------------------------------------------------------------------------
def _act_spec(h, l):
    return pl.BlockSpec((1, h, l), lambda n: (n, 0, 0))


def _const_spec(shape):
    nd = len(shape)
    return pl.BlockSpec(shape, lambda n: (0,) * nd)


def _aspa_dys(h):
    """Distinct vertical tap offsets of the dilated pyramid that touch data."""
    dys = set()
    for d in DILATIONS:
        for ky in range(3):
            dy = (ky - 1) * d
            if abs(dy) < h:
                dys.add(dy)
    return tuple(sorted(dys))


# ---------------------------------------------------------------------------
# Pallas kernels (all activations are lane-dense (H, W*C) rows)
# ---------------------------------------------------------------------------
def _stem_s1_kernel(x_ref, m_ref, b_ref, o_ref, xs_ref):
    """conv3x3 stride-1 'same' + ReLU as 3 accumulated row matmuls."""
    h = xs_ref.shape[0] - 2
    l_in = xs_ref.shape[1]
    xs_ref[0:1, :] = jnp.zeros((1, l_in), jnp.float32)
    xs_ref[1:1 + h, :] = x_ref[0]
    xs_ref[1 + h:2 + h, :] = jnp.zeros((1, l_in), jnp.float32)
    acc = b_ref[...]
    for ky in range(3):
        acc = acc + jnp.dot(xs_ref[ky:ky + h, :], m_ref[ky],
                            preferred_element_type=jnp.float32)
    o_ref[0] = jnp.maximum(acc, 0.0)


def _stem_s2_kernel(fe_ref, fo_ref, m_ref, b_ref, o_ref):
    """conv3x3 stride-2 pad-1 + ReLU; horizontal stride folded into m_ref."""
    hh = fe_ref.shape[1]
    acc = (b_ref[...]
           + jnp.dot(fo_ref[0, 0:hh, :], m_ref[0],
                     preferred_element_type=jnp.float32)
           + jnp.dot(fe_ref[0], m_ref[1],
                     preferred_element_type=jnp.float32)
           + jnp.dot(fo_ref[0, 1:1 + hh, :], m_ref[2],
                     preferred_element_type=jnp.float32))
    o_ref[0] = jnp.maximum(acc, 0.0)


def _aspa_kernel(*refs, dys, has_extra, has_up):
    """Fused hybird_aspa (+ optional skip add) (+ optional fused 2x-up branch)."""
    idx = 0
    x_ref = refs[idx]; idx += 1
    ex_ref = None
    if has_extra:
        ex_ref = refs[idx]; idx += 1
    m_ref = refs[idx]; b_ref = refs[idx + 1]; wa_ref = refs[idx + 2]
    ba_ref = refs[idx + 3]; g_ref = refs[idx + 4]; idx += 5
    a_ref = bu_ref = None
    if has_up:
        a_ref = refs[idx]; bu_ref = refs[idx + 1]; idx += 2
    o_ref = refs[idx]; idx += 1
    up_ref = None
    if has_up:
        up_ref = refs[idx]; idx += 1
    xs_ref = refs[idx]

    h = x_ref.shape[1]
    l = x_ref.shape[2]
    pad = (xs_ref.shape[0] - h) // 2

    x = x_ref[0]                                               # (H, L)
    xs_ref[0:pad, :] = jnp.zeros((pad, l), jnp.float32)
    xs_ref[pad:pad + h, :] = x
    xs_ref[pad + h:pad + h + pad, :] = jnp.zeros((pad, l), jnp.float32)

    # 4 dilated 3x3 branches == n_dy accumulated row matmuls
    acc = b_ref[...]
    for k, dy in enumerate(dys):
        acc = acc + jnp.dot(xs_ref[pad + dy:pad + dy + h, :], m_ref[k],
                            preferred_element_type=jnp.float32)
    s = jnp.maximum(acc, 0.0)                                  # (H, L)

    # channel attention (GAP + dense + sigmoid) via pre-packed matrices
    ssum = jnp.sum(s, axis=0, keepdims=True)                   # (1, L)
    logits = jnp.dot(ssum, wa_ref[...],
                     preferred_element_type=jnp.float32) + ba_ref[...]
    gate = jax.nn.sigmoid(logits)                              # (1, C)
    gate_wide = jnp.dot(gate, g_ref[...],
                        preferred_element_type=jnp.float32)    # (1, L)

    res = x + s * gate_wide
    if has_extra:
        res = res + ex_ref[0]
    o_ref[0] = res

    if has_up:
        # fused nearest-2x upsample + conv3x3(pad=1) + ReLU of `res`.
        # Reuse the scratch for the +-1 row shifts (its pad rows are still 0).
        xs_ref[pad:pad + h, :] = res
        hprev = xs_ref[pad - 1:pad - 1 + h, :]                 # res shifted down
        hnext = xs_ref[pad + 1:pad + 1 + h, :]                 # res shifted up
        bu = bu_ref[...]
        even = jnp.maximum(
            bu + jnp.dot(hprev, a_ref[0], preferred_element_type=jnp.float32)
               + jnp.dot(res, a_ref[1], preferred_element_type=jnp.float32),
            0.0)
        odd = jnp.maximum(
            bu + jnp.dot(res, a_ref[2], preferred_element_type=jnp.float32)
               + jnp.dot(hnext, a_ref[3], preferred_element_type=jnp.float32),
            0.0)
        up_ref[0, 0, :, :] = even
        up_ref[0, 1, :, :] = odd


def _heads_kernel(f1_ref, f2_ref, f3_ref, w1_ref, w2_ref, w3_ref, b_ref, o_ref):
    """branch_o1/o2/o3 + concat + conv_out as three accumulated row matmuls."""
    acc = (b_ref[...]
           + jnp.dot(f1_ref[0], w1_ref[...], preferred_element_type=jnp.float32)
           + jnp.dot(f2_ref[0], w2_ref[...], preferred_element_type=jnp.float32)
           + jnp.dot(f3_ref[0], w3_ref[...], preferred_element_type=jnp.float32))
    o_ref[0] = acc


# ---------------------------------------------------------------------------
# Pallas-call wrappers
# ---------------------------------------------------------------------------
def stem_s1(x, p):
    n, h, l_in = x.shape
    l_out = p["M"].shape[-1]
    return pl.pallas_call(
        _stem_s1_kernel,
        grid=(n,),
        in_specs=[_act_spec(h, l_in), _const_spec(p["M"].shape),
                  _const_spec(p["b"].shape)],
        out_specs=_act_spec(h, l_out),
        out_shape=jax.ShapeDtypeStruct((n, h, l_out), jnp.float32),
        scratch_shapes=[pltpu.VMEM((h + 2, l_in), jnp.float32)],
        compiler_params=_CPARAMS,
    )(x, p["M"], p["b"])


def stem_s2(f0e, f0o_p, p):
    n, hh, l = f0e.shape
    l_out = p["M"].shape[-1]
    return pl.pallas_call(
        _stem_s2_kernel,
        grid=(n,),
        in_specs=[_act_spec(hh, l), _act_spec(hh + 1, l),
                  _const_spec(p["M"].shape), _const_spec(p["b"].shape)],
        out_specs=_act_spec(hh, l_out),
        out_shape=jax.ShapeDtypeStruct((n, hh, l_out), jnp.float32),
        compiler_params=_CPARAMS,
    )(f0e, f0o_p, p["M"], p["b"])


def aspa(x, p, *, extra=None, up=None):
    n, h, l = x.shape
    dys = _aspa_dys(h)
    pad = max(abs(d) for d in dys)
    assert p["M"].shape[0] == len(dys) and p["M"].shape[1] == l
    has_extra = extra is not None
    has_up = up is not None
    if has_up:
        assert pad >= 1

    kern = functools.partial(_aspa_kernel, dys=dys,
                             has_extra=has_extra, has_up=has_up)
    in_specs = [_act_spec(h, l)]
    args = [x]
    if has_extra:
        in_specs.append(_act_spec(h, l))
        args.append(extra)
    for arr in (p["M"], p["b"], p["wa"], p["ba"], p["gbc"]):
        in_specs.append(_const_spec(arr.shape))
        args.append(arr)
    if has_up:
        for arr in (up["A"], up["b"]):
            in_specs.append(_const_spec(arr.shape))
            args.append(arr)
        lup = up["A"].shape[-1]
        out_shape = (jax.ShapeDtypeStruct((n, h, l), jnp.float32),
                     jax.ShapeDtypeStruct((n, 2, h, lup), jnp.float32))
        out_specs = (_act_spec(h, l),
                     pl.BlockSpec((1, 2, h, lup), lambda i: (i, 0, 0, 0)))
    else:
        out_shape = jax.ShapeDtypeStruct((n, h, l), jnp.float32)
        out_specs = _act_spec(h, l)

    out = pl.pallas_call(
        kern,
        grid=(n,),
        in_specs=in_specs,
        out_specs=out_specs,
        out_shape=out_shape,
        scratch_shapes=[pltpu.VMEM((h + 2 * pad, l), jnp.float32)],
        compiler_params=_CPARAMS,
    )(*args)

    if has_up:
        h_out, up_blk = out
        # tiny (even, odd) row interleave done in XLA to keep lowering simple
        hf = jnp.transpose(up_blk, (0, 2, 1, 3)).reshape(n, 2 * h, up["A"].shape[-1])
        return h_out, hf
    return out


def fused_heads(f1, f2, f3, p):
    n, h, l = f1.shape
    l_out = p["b"].shape[-1]
    return pl.pallas_call(
        _heads_kernel,
        grid=(n,),
        in_specs=[_act_spec(h, l)] * 3
                 + [_const_spec(p["W1"].shape)] * 3
                 + [_const_spec(p["b"].shape)],
        out_specs=_act_spec(h, l_out),
        out_shape=jax.ShapeDtypeStruct((n, h, l_out), jnp.float32),
        compiler_params=_CPARAMS,
    )(f1, f2, f3, p["W1"], p["W2"], p["W3"], p["b"])


# ---------------------------------------------------------------------------
# Forward
# ---------------------------------------------------------------------------
def hacnetv2_forward(packed, x_nchw):
    n, _, h, w = x_nchw.shape
    x = jnp.transpose(x_nchw, (0, 2, 3, 1)).astype(jnp.float32).reshape(n, h, w * 3)

    f0 = stem_s1(x, packed["stemf"])                       # (N, H, W*C)
    # stride-2 stem: even/odd ROW split (2 cheap XLA H-slices); the horizontal
    # stride-2 selection is folded into the packed stemh weights.
    f0e = f0[:, 0::2, :]
    f0o = jnp.pad(f0[:, 1::2, :], ((0, 0), (1, 0), (0, 0)))
    h0 = stem_s2(f0e, f0o, packed["stemh"])                # (N, H/2, (W/2)*2C)

    h1, hf1 = aspa(h0, packed["aspa_h1"], up=packed["up_p1"])
    h2, hf2 = aspa(h1, packed["aspa_h2"], up=packed["up_p2"])
    _h3, hf3 = aspa(h2, packed["aspa_h3"], up=packed["up_p3"])

    f1 = aspa(f0, packed["aspa_f1"], extra=hf1)
    f2 = aspa(f1, packed["aspa_f2"], extra=hf2)
    f3 = aspa(f2, packed["aspa_f3"], extra=hf3)

    heads = fused_heads(f1, f2, f3, packed["heads"])       # (N, H, W*4)
    heads = heads.reshape(n, h, w, 4)
    return [jnp.transpose(heads[..., k:k + 1], (0, 3, 1, 2)) for k in range(4)]


# ---------------------------------------------------------------------------
# Weight packing (runs ONCE at load time, outside jit)
# ---------------------------------------------------------------------------
def _np(a):
    return np.asarray(a, dtype=np.float32)


def _hpack(w, ky, w_in, w_out, stride, pad, dil):
    """Fold one vertical tap row's horizontal taps into a row matrix."""
    cin, cout = w.shape[2], w.shape[3]
    m = np.zeros((w_in * cin, w_out * cout), np.float32)
    for wo in range(w_out):
        for kx in range(w.shape[1]):
            wi = stride * wo - pad + kx * dil
            if 0 <= wi < w_in:
                m[wi * cin:(wi + 1) * cin, wo * cout:(wo + 1) * cout] += w[ky, kx]
    return m


def _pack_stem(w, b, w_in, w_out, stride):
    w = _np(w)
    mats = np.stack([_hpack(w, ky, w_in, w_out, stride, 1, 1) for ky in range(3)])
    return {"M": jnp.asarray(mats),
            "b": jnp.asarray(np.tile(_np(b), w_out)[None, :])}


def _pack_aspa(p, h, w):
    c = p["w0"].shape[2]
    dys = _aspa_dys(h)
    mats = []
    for dy in dys:
        m = np.zeros((w * c, w * c), np.float32)
        for i, d in enumerate(DILATIONS):
            for ky in range(3):
                if (ky - 1) * d == dy:
                    m += _hpack(_np(p["w%d" % i]), ky, w, w, 1, d, d)
        mats.append(m)
    b_sum = sum(_np(p["b%d" % i]) for i in range(len(DILATIONS)))
    wa = _np(p["wa"])
    return {
        "M": jnp.asarray(np.stack(mats)),                                   # (n_dy, WC, WC)
        "b": jnp.asarray(np.tile(b_sum, w)[None, :]),                       # (1, WC)
        "wa": jnp.asarray(np.kron(np.ones((w, 1), np.float32), wa) / float(h * w)),
        "ba": jnp.asarray(_np(p["ba"])[None, :]),
        "gbc": jnp.asarray(np.kron(np.ones((1, w), np.float32),
                                   np.eye(c, dtype=np.float32))),           # (C, WC)
    }


# which original ky rows feed (even_prev, even_cur, odd_cur, odd_next)
_UP_KYSETS = ((0,), (1, 2), (0, 1), (2,))


def _pack_up(w, b, wh):
    w = _np(w)
    cm, co = w.shape[2], w.shape[3]
    wf = 2 * wh
    mats = []
    for kys in _UP_KYSETS:
        a = np.zeros((wh * cm, wf * co), np.float32)
        for xo in range(wf):
            for kx in range(3):
                xf = xo - 1 + kx
                if 0 <= xf < wf:
                    xi = xf // 2
                    for ky in kys:
                        a[xi * cm:(xi + 1) * cm, xo * co:(xo + 1) * co] += w[ky, kx]
        mats.append(a)
    return {"A": jnp.asarray(np.stack(mats)),
            "b": jnp.asarray(np.tile(_np(b), wf)[None, :])}


def _pack_heads(params, w):
    w1, b1 = params["branch_o1"]
    w2, b2 = params["branch_o2"]
    w3, b3 = params["branch_o3"]
    w4, b4 = params["conv_out"]
    c = w1.shape[2]
    w1, w2, w3 = (_np(x).reshape(c) for x in (w1, w2, w3))
    w4 = _np(w4).reshape(3)
    b1, b2, b3, b4 = (float(_np(x)[0]) for x in (b1, b2, b3, b4))

    def head_mat(wk, k):
        m = np.zeros((w * c, w * 4), np.float32)
        for xw in range(w):
            m[xw * c:(xw + 1) * c, xw * 4 + k] = wk
            m[xw * c:(xw + 1) * c, xw * 4 + 3] += w4[k] * wk
        return m

    b_all = np.zeros((w * 4,), np.float32)
    for xw in range(w):
        b_all[xw * 4 + 0] = b1
        b_all[xw * 4 + 1] = b2
        b_all[xw * 4 + 2] = b3
        b_all[xw * 4 + 3] = w4[0] * b1 + w4[1] * b2 + w4[2] * b3 + b4
    return {"W1": jnp.asarray(head_mat(w1, 0)),
            "W2": jnp.asarray(head_mat(w2, 1)),
            "W3": jnp.asarray(head_mat(w3, 2)),
            "b": jnp.asarray(b_all[None, :])}


def pack_params(params, *, H, W):
    hh, wh = H // 2, W // 2
    packed = {
        "stemf": _pack_stem(*params["stemf"], W, W, 1),
        "stemh": _pack_stem(*params["stemh"], W, wh, 2),
        "heads": _pack_heads(params, W),
    }
    for name in ("aspa_f1", "aspa_f2", "aspa_f3"):
        packed[name] = _pack_aspa(params[name], H, W)
    for name in ("aspa_h1", "aspa_h2", "aspa_h3"):
        packed[name] = _pack_aspa(params[name], hh, wh)
    for name in ("up_p1", "up_p2", "up_p3"):
        packed[name] = _pack_up(*params[name], wh)
    return packed


# ---------------------------------------------------------------------------
# Pure-JAX reference (lax.conv_general_dilated) for the numerical check
# ---------------------------------------------------------------------------
def _conv_ref(x, w, b, *, stride=1, padding=0, dilation=1):
    out = jax.lax.conv_general_dilated(
        x, w,
        window_strides=(stride, stride),
        padding=((padding, padding), (padding, padding)),
        rhs_dilation=(dilation, dilation),
        dimension_numbers=("NHWC", "HWIO", "NHWC"))
    return out + b.reshape(1, 1, 1, -1)


def _stem_ref(x, w, b, stride):
    return jax.nn.relu(_conv_ref(x, w, b, stride=stride, padding=1))


def _aspa_ref(x, p):
    s = None
    for i, d in enumerate(DILATIONS):
        t = _conv_ref(x, p["w%d" % i], p["b%d" % i], padding=d, dilation=d)
        s = t if s is None else s + t
    s = jax.nn.relu(s)
    gap = jnp.mean(s, axis=(1, 2))
    g = jax.nn.sigmoid(gap @ p["wa"] + p["ba"])
    return x + s * g[:, None, None, :]


def _up_ref(h, w, b):
    up = jnp.repeat(jnp.repeat(h, 2, axis=1), 2, axis=2)
    return jax.nn.relu(_conv_ref(up, w, b, padding=1))


def hacnetv2_reference(params, x_nchw):
    x = jnp.transpose(x_nchw, (0, 2, 3, 1)).astype(jnp.float32)
    f0 = _stem_ref(x, *params["stemf"], 1)
    h0 = _stem_ref(f0, *params["stemh"], 2)
    h1 = _aspa_ref(h0, params["aspa_h1"])
    hf1 = _up_ref(h1, *params["up_p1"])
    h2 = _aspa_ref(h1, params["aspa_h2"])
    hf2 = _up_ref(h2, *params["up_p2"])
    h3 = _aspa_ref(h2, params["aspa_h3"])
    hf3 = _up_ref(h3, *params["up_p3"])
    del h3
    f1 = _aspa_ref(f0, params["aspa_f1"]) + hf1
    f2 = _aspa_ref(f1, params["aspa_f2"]) + hf2
    f3 = _aspa_ref(f2, params["aspa_f3"]) + hf3
    o1 = _conv_ref(f1, *params["branch_o1"])
    o2 = _conv_ref(f2, *params["branch_o2"])
    o3 = _conv_ref(f3, *params["branch_o3"])
    o4 = _conv_ref(jnp.concatenate([o1, o2, o3], axis=-1), *params["conv_out"])
    return [jnp.transpose(o, (0, 3, 1, 2)) for o in (o1, o2, o3, o4)]


# ---------------------------------------------------------------------------
# Deterministic parameter construction
# ---------------------------------------------------------------------------
def _init_conv(key, k, cin, cout, scale=0.1):
    kw, kb = jax.random.split(key)
    w = scale * jax.random.normal(kw, (k, k, cin, cout), jnp.float32)
    b = 0.01 * jax.random.normal(kb, (cout,), jnp.float32)
    return w, b


def init_params(key, channels=8):
    mid = channels * 2
    keys = iter(jax.random.split(key, 64))

    def conv_p(k, cin, cout):
        return _init_conv(next(keys), k, cin, cout)

    def aspa_p(c):
        p = {}
        for i, _d in enumerate(DILATIONS):
            w, b = conv_p(3, c, c)
            p["w%d" % i] = w
            p["b%d" % i] = b
        ka = next(keys)
        p["wa"] = 0.1 * jax.random.normal(ka, (c, c), jnp.float32)
        p["ba"] = jnp.zeros((c,), jnp.float32)
        return p

    return {
        "stemf": conv_p(3, 3, channels),
        "stemh": conv_p(3, channels, mid),
        "aspa_f1": aspa_p(channels),
        "aspa_f2": aspa_p(channels),
        "aspa_f3": aspa_p(channels),
        "aspa_h1": aspa_p(mid),
        "aspa_h2": aspa_p(mid),
        "aspa_h3": aspa_p(mid),
        "up_p1": conv_p(3, mid, channels),
        "up_p2": conv_p(3, mid, channels),
        "up_p3": conv_p(3, mid, channels),
        "branch_o1": conv_p(1, channels, 1),
        "branch_o2": conv_p(1, channels, 1),
        "branch_o3": conv_p(1, channels, 1),
        "conv_out": conv_p(1, 3, 1),
    }


if __name__ == "__main__":
    key = jax.random.PRNGKey(0)
    kx, kp = jax.random.split(key)
    x = jax.random.normal(kx, (2, 3, 16, 16), jnp.float32)   # NCHW input
    params = init_params(kp, channels=8)
    packed = pack_params(params, H=16, W=16)                 # once, outside jit

    fwd = jax.jit(hacnetv2_forward)
    outs = jax.block_until_ready(fwd(packed, x))

    expected = [(2, 1, 16, 16)] * 4
    assert [tuple(o.shape) for o in outs] == expected, \
        [tuple(o.shape) for o in outs]
    assert all(bool(jnp.all(jnp.isfinite(o))) for o in outs)

    # numerical check against the pure-JAX reference
    refs = jax.block_until_ready(jax.jit(hacnetv2_reference)(params, x))
    for o, r in zip(outs, refs):
        err = float(jnp.max(jnp.abs(o - r)))
        assert bool(jnp.allclose(o, r, rtol=2e-2, atol=2e-2)), err

    print("KERNEL_OK")
</pallas_src>

<mosaic_0001>
module attributes {stable_mosaic.version = 11 : i64} {
  func.func @_stem_s1_kernel(%arg0: i32, %arg1: memref<1x16x48xf32, #tpu.memory_space<vmem>>, %arg2: memref<3x48x128xf32, #tpu.memory_space<vmem>>, %arg3: memref<1x128xf32, #tpu.memory_space<vmem>>, %arg4: memref<1x16x128xf32, #tpu.memory_space<vmem>>, %arg5: memref<18x48xf32, #tpu.memory_space<vmem>>) attributes {dimension_semantics = [#tpu.dimension_semantics<parallel>], iteration_bounds = array<i64: 2>, scalar_prefetch = 0 : i64, scratch_operands = 1 : i64, tpu.core_type = #tpu.core_type<tc>, window_params = [{transform_indices = @transform_0, window_bounds = array<i64: 1, 16, 48>}, {pipeline_mode = #tpu.pipeline_mode<synchronous>, transform_indices = @transform_1, window_bounds = array<i64: 3, 48, 128>}, {pipeline_mode = #tpu.pipeline_mode<synchronous>, transform_indices = @transform_2, window_bounds = array<i64: 1, 128>}, {transform_indices = @transform_3, window_bounds = array<i64: 1, 16, 128>}]} {
    %cst = arith.constant 0.000000e+00 : f32
    %0 = vector.broadcast %cst : f32 to vector<1x48xf32>
    %c0 = arith.constant 0 : index
    %c0_0 = arith.constant 0 : index
    %1 = vector.load %arg5[%c0, %c0_0] : memref<18x48xf32, #tpu.memory_space<vmem>>, vector<1x48xf32>
    tpu.vector_store %arg5[%c0, %c0_0], %0 {strides = array<i32>} : memref<18x48xf32, #tpu.memory_space<vmem>>, vector<1x48xf32>,
    %c0_1 = arith.constant 0 : index
    %c0_2 = arith.constant 0 : index
    %c0_3 = arith.constant 0 : index
    %2 = vector.load %arg1[%c0_1, %c0_2, %c0_3] : memref<1x16x48xf32, #tpu.memory_space<vmem>>, vector<1x16x48xf32>
    %3 = vector.shape_cast %2 : vector<1x16x48xf32> to vector<16x48xf32>
    %c1 = arith.constant 1 : index
    %c0_4 = arith.constant 0 : index
    %4 = vector.load %arg5[%c1, %c0_4] : memref<18x48xf32, #tpu.memory_space<vmem>>, vector<16x48xf32>
    tpu.vector_store %arg5[%c1, %c0_4], %3 {strides = array<i32>} : memref<18x48xf32, #tpu.memory_space<vmem>>, vector<16x48xf32>,
    %cst_5 = arith.constant 0.000000e+00 : f32
    %5 = vector.broadcast %cst_5 : f32 to vector<1x48xf32>
    %c17 = arith.constant 17 : index
    %c0_6 = arith.constant 0 : index
    %6 = vector.load %arg5[%c17, %c0_6] : memref<18x48xf32, #tpu.memory_space<vmem>>, vector<1x48xf32>
    tpu.vector_store %arg5[%c17, %c0_6], %5 {strides = array<i32>} : memref<18x48xf32, #tpu.memory_space<vmem>>, vector<1x48xf32>,
    %c0_7 = arith.constant 0 : index
    %c0_8 = arith.constant 0 : index
    %7 = vector.load %arg3[%c0_7, %c0_8] : memref<1x128xf32, #tpu.memory_space<vmem>>, vector<1x128xf32>
    %c0_9 = arith.constant 0 : index
    %c0_10 = arith.constant 0 : index
    %8 = vector.load %arg5[%c0_9, %c0_10] : memref<18x48xf32, #tpu.memory_space<vmem>>, vector<16x48xf32>
    %c0_11 = arith.constant 0 : index
    %c0_12 = arith.constant 0 : index
    %c0_13 = arith.constant 0 : index
    %9 = vector.load %arg2[%c0_11, %c0_12, %c0_13] : memref<3x48x128xf32, #tpu.memory_space<vmem>>, vector<1x48x128xf32>
    %10 = vector.shape_cast %9 : vector<1x48x128xf32> to vector<48x128xf32>
    %cst_14 = arith.constant dense<0.000000e+00> : vector<16x128xf32>
    %11 = tpu.matmul %8, %10, %cst_14 {dimension_numbers = #tpu.dot_dimension_numbers<[1], [0], [0], [1], [0, 0, 1, 1], [], []>} : vector<16x48xf32>, vector<48x128xf32>, vector<16x128xf32> -> vector<16x128xf32>
    %12 = vector.broadcast %7 : vector<1x128xf32> to vector<16x128xf32>
    %13 = arith.addf %12, %11 : vector<16x128xf32>
    %c1_15 = arith.constant 1 : index
    %c0_16 = arith.constant 0 : index
    %14 = vector.load %arg5[%c1_15, %c0_16] : memref<18x48xf32, #tpu.memory_space<vmem>>, vector<16x48xf32>
    %c1_17 = arith.constant 1 : index
    %c0_18 = arith.constant 0 : index
    %c0_19 = arith.constant 0 : index
    %15 = vector.load %arg2[%c1_17, %c0_18, %c0_19] : memref<3x48x128xf32, #tpu.memory_space<vmem>>, vector<1x48x128xf32>
    %16 = vector.shape_cast %15 : vector<1x48x128xf32> to vector<48x128xf32>
    %cst_20 = arith.constant dense<0.000000e+00> : vector<16x128xf32>
    %17 = tpu.matmul %14, %16, %cst_20 {dimension_numbers = #tpu.dot_dimension_numbers<[1], [0], [0], [1], [0, 0, 1, 1], [], []>} : vector<16x48xf32>, vector<48x128xf32>, vector<16x128xf32> -> vector<16x128xf32>
    %18 = arith.addf %13, %17 : vector<16x128xf32>
    %c2 = arith.constant 2 : index
    %c0_21 = arith.constant 0 : index
    %19 = vector.load %arg5[%c2, %c0_21] : memref<18x48xf32, #tpu.memory_space<vmem>>, vector<16x48xf32>
    %c2_22 = arith.constant 2 : index
    %c0_23 = arith.constant 0 : index
    %c0_24 = arith.constant 0 : index
    %20 = vector.load %arg2[%c2_22, %c0_23, %c0_24] : memref<3x48x128xf32, #tpu.memory_space<vmem>>, vector<1x48x128xf32>
    %21 = vector.shape_cast %20 : vector<1x48x128xf32> to vector<48x128xf32>
    %cst_25 = arith.constant dense<0.000000e+00> : vector<16x128xf32>
    %22 = tpu.matmul %19, %21, %cst_25 {dimension_numbers = #tpu.dot_dimension_numbers<[1], [0], [0], [1], [0, 0, 1, 1], [], []>} : vector<16x48xf32>, vector<48x128xf32>, vector<16x128xf32> -> vector<16x128xf32>
    %23 = arith.addf %18, %22 : vector<16x128xf32>
    %cst_26 = arith.constant 0.000000e+00 : f32
    %24 = vector.broadcast %cst_26 : f32 to vector<16x128xf32>
    %25 = arith.maximumf %23, %24 : vector<16x128xf32>
    %c0_27 = arith.constant 0 : index
    %c0_28 = arith.constant 0 : index
    %c0_29 = arith.constant 0 : index
    %26 = vector.load %arg4[%c0_27, %c0_28, %c0_29] : memref<1x16x128xf32, #tpu.memory_space<vmem>>, vector<1x16x128xf32>
    %27 = vector.shape_cast %26 : vector<1x16x128xf32> to vector<16x128xf32>
    %28 = vector.shape_cast %25 : vector<16x128xf32> to vector<1x16x128xf32>
    tpu.vector_store %arg4[%c0_27, %c0_28, %c0_29], %28 {strides = array<i32>} : memref<1x16x128xf32, #tpu.memory_space<vmem>>, vector<1x16x128xf32>,
    return
  }
  func.func @transform_0(%arg0: i32) -> (i32, i32, i32) {
    %c0_i32 = arith.constant 0 : i32
    %c0_i32_0 = arith.constant 0 : i32
    %c0_i32_1 = arith.constant 0 : i32
    return %arg0, %c0_i32, %c0_i32_0 : i32, i32, i32
  }
  func.func @transform_1(%arg0: i32) -> (i32, i32, i32) {
    %c0_i32 = arith.constant 0 : i32
    %c0_i32_0 = arith.constant 0 : i32
    %c0_i32_1 = arith.constant 0 : i32
    %c0_i32_2 = arith.constant 0 : i32
    return %c0_i32, %c0_i32_0, %c0_i32_1 : i32, i32, i32
  }
  func.func @transform_2(%arg0: i32) -> (i32, i32) {
    %c0_i32 = arith.constant 0 : i32
    %c0_i32_0 = arith.constant 0 : i32
    %c0_i32_1 = arith.constant 0 : i32
    return %c0_i32, %c0_i32_0 : i32, i32
  }
  func.func @transform_3(%arg0: i32) -> (i32, i32, i32) {
    %c0_i32 = arith.constant 0 : i32
    %c0_i32_0 = arith.constant 0 : i32
    %c0_i32_1 = arith.constant 0 : i32
    return %arg0, %c0_i32, %c0_i32_0 : i32, i32, i32
  }
}

module attributes {stable_mosaic.version = 11 : i64} {
  func.func @_stem_s2_kernel(%arg0: i32, %arg1: memref<1x8x128xf32, #tpu.memory_space<vmem>>, %arg2: memref<1x9x128xf32, #tpu.memory_space<vmem>>, %arg3: memref<3x128x128xf32, #tpu.memory_space<vmem>>, %arg4: memref<1x128xf32, #tpu.memory_space<vmem>>, %arg5: memref<1x8x128xf32, #tpu.memory_space<vmem>>) attributes {dimension_semantics = [#tpu.dimension_semantics<parallel>], iteration_bounds = array<i64: 2>, scalar_prefetch = 0 : i64, scratch_operands = 0 : i64, tpu.core_type = #tpu.core_type<tc>, window_params = [{transform_indices = @transform_0, window_bounds = array<i64: 1, 8, 128>}, {transform_indices = @transform_1, window_bounds = array<i64: 1, 9, 128>}, {pipeline_mode = #tpu.pipeline_mode<synchronous>, transform_indices = @transform_2, window_bounds = array<i64: 3, 128, 128>}, {pipeline_mode = #tpu.pipeline_mode<synchronous>, transform_indices = @transform_3, window_bounds = array<i64: 1, 128>}, {transform_indices = @transform_4, window_bounds = array<i64: 1, 8, 128>}]} {
    %c0 = arith.constant 0 : index
    %c0_0 = arith.constant 0 : index
    %0 = vector.load %arg4[%c0, %c0_0] : memref<1x128xf32, #tpu.memory_space<vmem>>, vector<1x128xf32>
    %c0_1 = arith.constant 0 : index
    %c0_2 = arith.constant 0 : index
    %c0_3 = arith.constant 0 : index
    %1 = vector.load %arg2[%c0_1, %c0_2, %c0_3] : memref<1x9x128xf32, #tpu.memory_space<vmem>>, vector<1x8x128xf32>
    %2 = vector.shape_cast %1 : vector<1x8x128xf32> to vector<8x128xf32>
    %c0_4 = arith.constant 0 : index
    %c0_5 = arith.constant 0 : index
    %c0_6 = arith.constant 0 : index
    %3 = vector.load %arg3[%c0_4, %c0_5, %c0_6] : memref<3x128x128xf32, #tpu.memory_space<vmem>>, vector<1x128x128xf32>
    %4 = vector.shape_cast %3 : vector<1x128x128xf32> to vector<128x128xf32>
    %cst = arith.constant dense<0.000000e+00> : vector<8x128xf32>
    %5 = tpu.matmul %2, %4, %cst {dimension_numbers = #tpu.dot_dimension_numbers<[1], [0], [0], [1], [0, 0, 1, 1], [], []>} : vector<8x128xf32>, vector<128x128xf32>, vector<8x128xf32> -> vector<8x128xf32>
    %6 = vector.broadcast %0 : vector<1x128xf32> to vector<8x128xf32>
    %7 = arith.addf %6, %5 : vector<8x128xf32>
    %c0_7 = arith.constant 0 : index
    %c0_8 = arith.constant 0 : index
    %c0_9 = arith.constant 0 : index
    %8 = vector.load %arg1[%c0_7, %c0_8, %c0_9] : memref<1x8x128xf32, #tpu.memory_space<vmem>>, vector<1x8x128xf32>
    %9 = vector.shape_cast %8 : vector<1x8x128xf32> to vector<8x128xf32>
    %c1 = arith.constant 1 : index
    %c0_10 = arith.constant 0 : index
    %c0_11 = arith.constant 0 : index
    %10 = vector.load %arg3[%c1, %c0_10, %c0_11] : memref<3x128x128xf32, #tpu.memory_space<vmem>>, vector<1x128x128xf32>
    %11 = vector.shape_cast %10 : vector<1x128x128xf32> to vector<128x128xf32>
    %cst_12 = arith.constant dense<0.000000e+00> : vector<8x128xf32>
    %12 = tpu.matmul %9, %11, %cst_12 {dimension_numbers = #tpu.dot_dimension_numbers<[1], [0], [0], [1], [0, 0, 1, 1], [], []>} : vector<8x128xf32>, vector<128x128xf32>, vector<8x128xf32> -> vector<8x128xf32>
    %13 = arith.addf %7, %12 : vector<8x128xf32>
    %c0_13 = arith.constant 0 : index
    %c1_14 = arith.constant 1 : index
    %c0_15 = arith.constant 0 : index
    %14 = vector.load %arg2[%c0_13, %c1_14, %c0_15] : memref<1x9x128xf32, #tpu.memory_space<vmem>>, vector<1x8x128xf32>
    %15 = vector.shape_cast %14 : vector<1x8x128xf32> to vector<8x128xf32>
    %c2 = arith.constant 2 : index
    %c0_16 = arith.constant 0 : index
    %c0_17 = arith.constant 0 : index
    %16 = vector.load %arg3[%c2, %c0_16, %c0_17] : memref<3x128x128xf32, #tpu.memory_space<vmem>>, vector<1x128x128xf32>
    %17 = vector.shape_cast %16 : vector<1x128x128xf32> to vector<128x128xf32>
    %cst_18 = arith.constant dense<0.000000e+00> : vector<8x128xf32>
    %18 = tpu.matmul %15, %17, %cst_18 {dimension_numbers = #tpu.dot_dimension_numbers<[1], [0], [0], [1], [0, 0, 1, 1], [], []>} : vector<8x128xf32>, vector<128x128xf32>, vector<8x128xf32> -> vector<8x128xf32>
    %19 = arith.addf %13, %18 : vector<8x128xf32>
    %cst_19 = arith.constant 0.000000e+00 : f32
    %20 = vector.broadcast %cst_19 : f32 to vector<8x128xf32>
    %21 = arith.maximumf %19, %20 : vector<8x128xf32>
    %c0_20 = arith.constant 0 : index
    %c0_21 = arith.constant 0 : index
    %c0_22 = arith.constant 0 : index
    %22 = vector.load %arg5[%c0_20, %c0_21, %c0_22] : memref<1x8x128xf32, #tpu.memory_space<vmem>>, vector<1x8x128xf32>
    %23 = vector.shape_cast %22 : vector<1x8x128xf32> to vector<8x128xf32>
    %24 = vector.shape_cast %21 : vector<8x128xf32> to vector<1x8x128xf32>
    tpu.vector_store %arg5[%c0_20, %c0_21, %c0_22], %24 {strides = array<i32>} : memref<1x8x128xf32, #tpu.memory_space<vmem>>, vector<1x8x128xf32>,
    return
  }
  func.func @transform_0(%arg0: i32) -> (i32, i32, i32) {
    %c0_i32 = arith.constant 0 : i32
    %c0_i32_0 = arith.constant 0 : i32
    %c0_i32_1 = arith.constant 0 : i32
    return %arg0, %c0_i32, %c0_i32_0 : i32, i32, i32
  }
  func.func @transform_1(%arg0: i32) -> (i32, i32, i32) {
    %c0_i32 = arith.constant 0 : i32
    %c0_i32_0 = arith.constant 0 : i32
    %c0_i32_1 = arith.constant 0 : i32
    return %arg0, %c0_i32, %c0_i32_0 : i32, i32, i32
  }
  func.func @transform_2(%arg0: i32) -> (i32, i32, i32) {
    %c0_i32 = arith.constant 0 : i32
    %c0_i32_0 = arith.constant 0 : i32
    %c0_i32_1 = arith.constant 0 : i32
    %c0_i32_2 = arith.constant 0 : i32
    return %c0_i32, %c0_i32_0, %c0_i32_1 : i32, i32, i32
  }
  func.func @transform_3(%arg0: i32) -> (i32, i32) {
    %c0_i32 = arith.constant 0 : i32
    %c0_i32_0 = arith.constant 0 : i32
    %c0_i32_1 = arith.constant 0 : i32
    return %c0_i32, %c0_i32_0 : i32, i32
  }
  func.func @transform_4(%arg0: i32) -> (i32, i32, i32) {
    %c0_i32 = arith.constant 0 : i32
    %c0_i32_0 = arith.constant 0 : i32
    %c0_i32_1 = arith.constant 0 : i32
    return %arg0, %c0_i32, %c0_i32_0 : i32, i32, i32
  }
}

module attributes {stable_mosaic.version = 11 : i64} {
  func.func @_aspa_kernel(%arg0: i32, %arg1: memref<1x8x128xf32, #tpu.memory_space<vmem>>, %arg2: memref<5x128x128xf32, #tpu.memory_space<vmem>>, %arg3: memref<1x128xf32, #tpu.memory_space<vmem>>, %arg4: memref<128x16xf32, #tpu.memory_space<vmem>>, %arg5: memref<1x16xf32, #tpu.memory_space<vmem>>, %arg6: memref<16x128xf32, #tpu.memory_space<vmem>>, %arg7: memref<4x128x128xf32, #tpu.memory_space<vmem>>, %arg8: memref<1x128xf32, #tpu.memory_space<vmem>>, %arg9: memref<1x8x128xf32, #tpu.memory_space<vmem>>, %arg10: memref<1x2x8x128xf32, #tpu.memory_space<vmem>>, %arg11: memref<14x128xf32, #tpu.memory_space<vmem>>) attributes {dimension_semantics = [#tpu.dimension_semantics<parallel>], iteration_bounds = array<i64: 2>, scalar_prefetch = 0 : i64, scratch_operands = 1 : i64, tpu.core_type = #tpu.core_type<tc>, window_params = [{transform_indices = @transform_0, window_bounds = array<i64: 1, 8, 128>}, {pipeline_mode = #tpu.pipeline_mode<synchronous>, transform_indices = @transform_1, window_bounds = array<i64: 5, 128, 128>}, {pipeline_mode = #tpu.pipeline_mode<synchronous>, transform_indices = @transform_2, window_bounds = array<i64: 1, 128>}, {pipeline_mode = #tpu.pipeline_mode<synchronous>, transform_indices = @transform_3, window_bounds = array<i64: 128, 16>}, {pipeline_mode = #tpu.pipeline_mode<synchronous>, transform_indices = @transform_4, window_bounds = array<i64: 1, 16>}, {pipeline_mode = #tpu.pipeline_mode<synchronous>, transform_indices = @transform_5, window_bounds = array<i64: 16, 128>}, {pipeline_mode = #tpu.pipeline_mode<synchronous>, transform_indices = @transform_6, window_bounds = array<i64: 4, 128, 128>}, {pipeline_mode = #tpu.pipeline_mode<synchronous>, transform_indices = @transform_7, window_bounds = array<i64: 1, 128>}, {transform_indices = @transform_8, window_bounds = array<i64: 1, 8, 128>}, {transform_indices = @transform_9, window_bounds = array<i64: 1, 2, 8, 128>}]} {
    %c0 = arith.constant 0 : index
    %c0_0 = arith.constant 0 : index
    %c0_1 = arith.constant 0 : index
    %0 = vector.load %arg1[%c0, %c0_0, %c0_1] : memref<1x8x128xf32, #tpu.memory_space<vmem>>, vector<1x8x128xf32>
    %1 = vector.shape_cast %0 : vector<1x8x128xf32> to vector<8x128xf32>
    %cst = arith.constant 0.000000e+00 : f32
    %2 = vector.broadcast %cst : f32 to vector<3x128xf32>
    %c0_2 = arith.constant 0 : index
    %c0_3 = arith.constant 0 : index
    %3 = vector.load %arg11[%c0_2, %c0_3] : memref<14x128xf32, #tpu.memory_space<vmem>>, vector<3x128xf32>
    tpu.vector_store %arg11[%c0_2, %c0_3], %2 {strides = array<i32>} : memref<14x128xf32, #tpu.memory_space<vmem>>, vector<3x128xf32>,
    %c3 = arith.constant 3 : index
    %c0_4 = arith.constant 0 : index
    %4 = vector.load %arg11[%c3, %c0_4] : memref<14x128xf32, #tpu.memory_space<vmem>>, vector<8x128xf32>
    tpu.vector_store %arg11[%c3, %c0_4], %1 {strides = array<i32>} : memref<14x128xf32, #tpu.memory_space<vmem>>, vector<8x128xf32>,
    %cst_5 = arith.constant 0.000000e+00 : f32
    %5 = vector.broadcast %cst_5 : f32 to vector<3x128xf32>
    %c11 = arith.constant 11 : index
    %c0_6 = arith.constant 0 : index
    %6 = vector.load %arg11[%c11, %c0_6] : memref<14x128xf32, #tpu.memory_space<vmem>>, vector<3x128xf32>
    tpu.vector_store %arg11[%c11, %c0_6], %5 {strides = array<i32>} : memref<14x128xf32, #tpu.memory_space<vmem>>, vector<3x128xf32>,
    %c0_7 = arith.constant 0 : index
    %c0_8 = arith.constant 0 : index
    %7 = vector.load %arg3[%c0_7, %c0_8] : memref<1x128xf32, #tpu.memory_space<vmem>>, vector<1x128xf32>
    %c0_9 = arith.constant 0 : index
    %c0_10 = arith.constant 0 : index
    %8 = vector.load %arg11[%c0_9, %c0_10] : memref<14x128xf32, #tpu.memory_space<vmem>>, vector<8x128xf32>
    %c0_11 = arith.constant 0 : index
    %c0_12 = arith.constant 0 : index
    %c0_13 = arith.constant 0 : index
    %9 = vector.load %arg2[%c0_11, %c0_12, %c0_13] : memref<5x128x128xf32, #tpu.memory_space<vmem>>, vector<1x128x128xf32>
    %10 = vector.shape_cast %9 : vector<1x128x128xf32> to vector<128x128xf32>
    %cst_14 = arith.constant dense<0.000000e+00> : vector<8x128xf32>
    %11 = tpu.matmul %8, %10, %cst_14 {dimension_numbers = #tpu.dot_dimension_numbers<[1], [0], [0], [1], [0, 0, 1, 1], [], []>} : vector<8x128xf32>, vector<128x128xf32>, vector<8x128xf32> -> vector<8x128xf32>
    %12 = vector.broadcast %7 : vector<1x128xf32> to vector<8x128xf32>
    %13 = arith.addf %12, %11 : vector<8x128xf32>
    %c2 = arith.constant 2 : index
    %c0_15 = arith.constant 0 : index
    %14 = vector.load %arg11[%c2, %c0_15] : memref<14x128xf32, #tpu.memory_space<vmem>>, vector<8x128xf32>
    %c1 = arith.constant 1 : index
    %c0_16 = arith.constant 0 : index
    %c0_17 = arith.constant 0 : index
    %15 = vector.load %arg2[%c1, %c0_16, %c0_17] : memref<5x128x128xf32, #tpu.memory_space<vmem>>, vector<1x128x128xf32>
    %16 = vector.shape_cast %15 : vector<1x128x128xf32> to vector<128x128xf32>
    %cst_18 = arith.constant dense<0.000000e+00> : vector<8x128xf32>
    %17 = tpu.matmul %14, %16, %cst_18 {dimension_numbers = #tpu.dot_dimension_numbers<[1], [0], [0], [1], [0, 0, 1, 1], [], []>} : vector<8x128xf32>, vector<128x128xf32>, vector<8x128xf32> -> vector<8x128xf32>
    %18 = arith.addf %13, %17 : vector<8x128xf32>
    %c3_19 = arith.constant 3 : index
    %c0_20 = arith.constant 0 : index
    %19 = vector.load %arg11[%c3_19, %c0_20] : memref<14x128xf32, #tpu.memory_space<vmem>>, vector<8x128xf32>
    %c2_21 = arith.constant 2 : index
    %c0_22 = arith.constant 0 : index
    %c0_23 = arith.constant 0 : index
    %20 = vector.load %arg2[%c2_21, %c0_22, %c0_23] : memref<5x128x128xf32, #tpu.memory_space<vmem>>, vector<1x128x128xf32>
    %21 = vector.shape_cast %20 : vector<1x128x128xf32> to vector<128x128xf32>
    %cst_24 = arith.constant dense<0.000000e+00> : vector<8x128xf32>
    %22 = tpu.matmul %19, %21, %cst_24 {dimension_numbers = #tpu.dot_dimension_numbers<[1], [0], [0], [1], [0, 0, 1, 1], [], []>} : vector<8x128xf32>, vector<128x128xf32>, vector<8x128xf32> -> vector<8x128xf32>
    %23 = arith.addf %18, %22 : vector<8x128xf32>
    %c4 = arith.constant 4 : index
    %c0_25 = arith.constant 0 : index
    %24 = vector.load %arg11[%c4, %c0_25] : memref<14x128xf32, #tpu.memory_space<vmem>>, vector<8x128xf32>
    %c3_26 = arith.constant 3 : index
    %c0_27 = arith.constant 0 : index
    %c0_28 = arith.constant 0 : index
    %25 = vector.load %arg2[%c3_26, %c0_27, %c0_28] : memref<5x128x128xf32, #tpu.memory_space<vmem>>, vector<1x128x128xf32>
    %26 = vector.shape_cast %25 : vector<1x128x128xf32> to vector<128x128xf32>
    %cst_29 = arith.constant dense<0.000000e+00> : vector<8x128xf32>
    %27 = tpu.matmul %24, %26, %cst_29 {dimension_numbers = #tpu.dot_dimension_numbers<[1], [0], [0], [1], [0, 0, 1, 1], [], []>} : vector<8x128xf32>, vector<128x128xf32>, vector<8x128xf32> -> vector<8x128xf32>
    %28 = arith.addf %23, %27 : vector<8x128xf32>
    %c6 = arith.constant 6 : index
    %c0_30 = arith.constant 0 : index
    %29 = vector.load %arg11[%c6, %c0_30] : memref<14x128xf32, #tpu.memory_space<vmem>>, vector<8x128xf32>
    %c4_31 = arith.constant 4 : index
    %c0_32 = arith.constant 0 : index
    %c0_33 = arith.constant 0 : index
    %30 = vector.load %arg2[%c4_31, %c0_32, %c0_33] : memref<5x128x128xf32, #tpu.memory_space<vmem>>, vector<1x128x128xf32>
    %31 = vector.shape_cast %30 : vector<1x128x128xf32> to vector<128x128xf32>
    %cst_34 = arith.constant dense<0.000000e+00> : vector<8x128xf32>
    %32 = tpu.matmul %29, %31, %cst_34 {dimension_numbers = #tpu.dot_dimension_numbers<[1], [0], [0], [1], [0, 0, 1, 1], [], []>} : vector<8x128xf32>, vector<128x128xf32>, vector<8x128xf32> -> vector<8x128xf32>
    %33 = arith.addf %28, %32 : vector<8x128xf32>
    %cst_35 = arith.constant 0.000000e+00 : f32
    %34 = vector.broadcast %cst_35 : f32 to vector<8x128xf32>
    %35 = arith.maximumf %33, %34 : vector<8x128xf32>
    %cst_36 = arith.constant dense<0.000000e+00> : vector<128xf32>
    %36 = vector.multi_reduction <add>, %35, %cst_36 [0] : vector<8x128xf32> to vector<128xf32>
    %37 = vector.shape_cast %36 : vector<128xf32> to vector<1x128xf32>
    %c0_37 = arith.constant 0 : index
    %c0_38 = arith.constant 0 : index
    %38 = vector.load %arg4[%c0_37, %c0_38] : memref<128x16xf32, #tpu.memory_space<vmem>>, vector<128x16xf32>
    %cst_39 = arith.constant dense<0.000000e+00> : vector<1x16xf32>
    %39 = tpu.matmul %37, %38, %cst_39 {dimension_numbers = #tpu.dot_dimension_numbers<[1], [0], [0], [1], [0, 0, 1, 1], [], []>} : vector<1x128xf32>, vector<128x16xf32>, vector<1x16xf32> -> vector<1x16xf32>
    %c0_40 = arith.constant 0 : index
    %c0_41 = arith.constant 0 : index
    %40 = vector.load %arg5[%c0_40, %c0_41] : memref<1x16xf32, #tpu.memory_space<vmem>>, vector<1x16xf32>
    %41 = arith.addf %39, %40 : vector<1x16xf32>
    %42 = arith.negf %41 : vector<1x16xf32>
    %43 = math.exp %42 : vector<1x16xf32>
    %cst_42 = arith.constant 1.000000e+00 : f32
    %44 = vector.broadcast %cst_42 : f32 to vector<1x16xf32>
    %45 = arith.addf %44, %43 : vector<1x16xf32>
    %46 = arith.divf %44, %45 : vector<1x16xf32>
    %c0_43 = arith.constant 0 : index
    %c0_44 = arith.constant 0 : index
    %47 = vector.load %arg6[%c0_43, %c0_44] : memref<16x128xf32, #tpu.memory_space<vmem>>, vector<16x128xf32>
    %cst_45 = arith.constant dense<0.000000e+00> : vector<1x128xf32>
    %48 = tpu.matmul %46, %47, %cst_45 {dimension_numbers = #tpu.dot_dimension_numbers<[1], [0], [0], [1], [0, 0, 1, 1], [], []>} : vector<1x16xf32>, vector<16x128xf32>, vector<1x128xf32> -> vector<1x128xf32>
    %49 = vector.broadcast %48 : vector<1x128xf32> to vector<8x128xf32>
    %50 = arith.mulf %35, %49 : vector<8x128xf32>
    %51 = arith.addf %1, %50 : vector<8x128xf32>
    %c0_46 = arith.constant 0 : index
    %c0_47 = arith.constant 0 : index
    %c0_48 = arith.constant 0 : index
    %52 = vector.load %arg9[%c0_46, %c0_47, %c0_48] : memref<1x8x128xf32, #tpu.memory_space<vmem>>, vector<1x8x128xf32>
    %53 = vector.shape_cast %52 : vector<1x8x128xf32> to vector<8x128xf32>
    %54 = vector.shape_cast %51 : vector<8x128xf32> to vector<1x8x128xf32>
    tpu.vector_store %arg9[%c0_46, %c0_47, %c0_48], %54 {strides = array<i32>} : memref<1x8x128xf32, #tpu.memory_space<vmem>>, vector<1x8x128xf32>,
    %c3_49 = arith.constant 3 : index
    %c0_50 = arith.constant 0 : index
    %55 = vector.load %arg11[%c3_49, %c0_50] : memref<14x128xf32, #tpu.memory_space<vmem>>, vector<8x128xf32>
    tpu.vector_store %arg11[%c3_49, %c0_50], %51 {strides = array<i32>} : memref<14x128xf32, #tpu.memory_space<vmem>>, vector<8x128xf32>,
    %c2_51 = arith.constant 2 : index
    %c0_52 = arith.constant 0 : index
    %56 = vector.load %arg11[%c2_51, %c0_52] : memref<14x128xf32, #tpu.memory_space<vmem>>, vector<8x128xf32>
    %c4_53 = arith.constant 4 : index
    %c0_54 = arith.constant 0 : index
    %57 = vector.load %arg11[%c4_53, %c0_54] : memref<14x128xf32, #tpu.memory_space<vmem>>, vector<8x128xf32>
    %c0_55 = arith.constant 0 : index
    %c0_56 = arith.constant 0 : index
    %58 = vector.load %arg8[%c0_55, %c0_56] : memref<1x128xf32, #tpu.memory_space<vmem>>, vector<1x128xf32>
    %c0_57 = arith.constant 0 : index
    %c0_58 = arith.constant 0 : index
    %c0_59 = arith.constant 0 : index
    %59 = vector.load %arg7[%c0_57, %c0_58, %c0_59] : memref<4x128x128xf32, #tpu.memory_space<vmem>>, vector<1x128x128xf32>
    %60 = vector.shape_cast %59 : vector<1x128x128xf32> to vector<128x128xf32>
    %cst_60 = arith.constant dense<0.000000e+00> : vector<8x128xf32>
    %61 = tpu.matmul %56, %60, %cst_60 {dimension_numbers = #tpu.dot_dimension_numbers<[1], [0], [0], [1], [0, 0, 1, 1], [], []>} : vector<8x128xf32>, vector<128x128xf32>, vector<8x128xf32> -> vector<8x128xf32>
    %62 = vector.broadcast %58 : vector<1x128xf32> to vector<8x128xf32>
    %63 = arith.addf %62, %61 : vector<8x128xf32>
    %c1_61 = arith.constant 1 : index
    %c0_62 = arith.constant 0 : index
    %c0_63 = arith.constant 0 : index
    %64 = vector.load %arg7[%c1_61, %c0_62, %c0_63] : memref<4x128x128xf32, #tpu.memory_space<vmem>>, vector<1x128x128xf32>
    %65 = vector.shape_cast %64 : vector<1x128x128xf32> to vector<128x128xf32>
    %cst_64 = arith.constant dense<0.000000e+00> : vector<8x128xf32>
    %66 = tpu.matmul %51, %65, %cst_64 {dimension_numbers = #tpu.dot_dimension_numbers<[1], [0], [0], [1], [0, 0, 1, 1], [], []>} : vector<8x128xf32>, vector<128x128xf32>, vector<8x128xf32> -> vector<8x128xf32>
    %67 = arith.addf %63, %66 : vector<8x128xf32>
    %cst_65 = arith.constant 0.000000e+00 : f32
    %68 = vector.broadcast %cst_65 : f32 to vector<8x128xf32>
    %69 = arith.maximumf %67, %68 : vector<8x128xf32>
    %c2_66 = arith.constant 2 : index
    %c0_67 = arith.constant 0 : index
    %c0_68 = arith.constant 0 : index
    %70 = vector.load %arg7[%c2_66, %c0_67, %c0_68] : memref<4x128x128xf32, #tpu.memory_space<vmem>>, vector<1x128x128xf32>
    %71 = vector.shape_cast %70 : vector<1x128x128xf32> to vector<128x128xf32>
    %cst_69 = arith.constant dense<0.000000e+00> : vector<8x128xf32>
    %72 = tpu.matmul %51, %71, %cst_69 {dimension_numbers = #tpu.dot_dimension_numbers<[1], [0], [0], [1], [0, 0, 1, 1], [], []>} : vector<8x128xf32>, vector<128x128xf32>, vector<8x128xf32> -> vector<8x128xf32>
    %73 = vector.broadcast %58 : vector<1x128xf32> to vector<8x128xf32>
    %74 = arith.addf %73, %72 : vector<8x128xf32>
    %c3_70 = arith.constant 3 : index
    %c0_71 = arith.constant 0 : index
    %c0_72 = arith.constant 0 : index
    %75 = vector.load %arg7[%c3_70, %c0_71, %c0_72] : memref<4x128x128xf32, #tpu.memory_space<vmem>>, vector<1x128x128xf32>
    %76 = vector.shape_cast %75 : vector<1x128x128xf32> to vector<128x128xf32>
    %cst_73 = arith.constant dense<0.000000e+00> : vector<8x128xf32>
    %77 = tpu.matmul %57, %76, %cst_73 {dimension_numbers = #tpu.dot_dimension_numbers<[1], [0], [0], [1], [0, 0, 1, 1], [], []>} : vector<8x128xf32>, vector<128x128xf32>, vector<8x128xf32> -> vector<8x128xf32>
    %78 = arith.addf %74, %77 : vector<8x128xf32>
    %cst_74 = arith.constant 0.000000e+00 : f32
    %79 = vector.broadcast %cst_74 : f32 to vector<8x128xf32>
    %80 = arith.maximumf %78, %79 : vector<8x128xf32>
    %c0_75 = arith.constant 0 : index
    %c0_76 = arith.constant 0 : index
    %c0_77 = arith.constant 0 : index
    %c0_78 = arith.constant 0 : index
    %81 = vector.load %arg10[%c0_75, %c0_76, %c0_77, %c0_78] : memref<1x2x8x128xf32, #tpu.memory_space<vmem>>, vector<1x1x8x128xf32>
    %82 = vector.shape_cast %81 : vector<1x1x8x128xf32> to vector<8x128xf32>
    %83 = vector.shape_cast %69 : vector<8x128xf32> to vector<1x1x8x128xf32>
    tpu.vector_store %arg10[%c0_75, %c0_76, %c0_77, %c0_78], %83 {strides = array<i32>} : memref<1x2x8x128xf32, #tpu.memory_space<vmem>>, vector<1x1x8x128xf32>,
    %c0_79 = arith.constant 0 : index
    %c1_80 = arith.constant 1 : index
    %c0_81 = arith.constant 0 : index
    %c0_82 = arith.constant 0 : index
    %84 = vector.load %arg10[%c0_79, %c1_80, %c0_81, %c0_82] : memref<1x2x8x128xf32, #tpu.memory_space<vmem>>, vector<1x1x8x128xf32>
    %85 = vector.shape_cast %84 : vector<1x1x8x128xf32> to vector<8x128xf32>
    %86 = vector.shape_cast %80 : vector<8x128xf32> to vector<1x1x8x128xf32>
    tpu.vector_store %arg10[%c0_79, %c1_80, %c0_81, %c0_82], %86 {strides = array<i32>} : memref<1x2x8x128xf32, #tpu.memory_space<vmem>>, vector<1x1x8x128xf32>,
    return
  }
  func.func @transform_0(%arg0: i32) -> (i32, i32, i32) {
    %c0_i32 = arith.constant 0 : i32
    %c0_i32_0 = arith.constant 0 : i32
    %c0_i32_1 = arith.constant 0 : i32
    return %arg0, %c0_i32, %c0_i32_0 : i32, i32, i32
  }
  func.func @transform_1(%arg0: i32) -> (i32, i32, i32) {
    %c0_i32 = arith.constant 0 : i32
    %c0_i32_0 = arith.constant 0 : i32
    %c0_i32_1 = arith.constant 0 : i32
    %c0_i32_2 = arith.constant 0 : i32
    return %c0_i32, %c0_i32_0, %c0_i32_1 : i32, i32, i32
  }
  func.func @transform_2(%arg0: i32) -> (i32, i32) {
    %c0_i32 = arith.constant 0 : i32
    %c0_i32_0 = arith.constant 0 : i32
    %c0_i32_1 = arith.constant 0 : i32
    return %c0_i32, %c0_i32_0 : i32, i32
  }
  func.func @transform_3(%arg0: i32) -> (i32, i32) {
    %c0_i32 = arith.constant 0 : i32
    %c0_i32_0 = arith.constant 0 : i32
    %c0_i32_1 = arith.constant 0 : i32
    return %c0_i32, %c0_i32_0 : i32, i32
  }
  func.func @transform_4(%arg0: i32) -> (i32, i32) {
    %c0_i32 = arith.constant 0 : i32
    %c0_i32_0 = arith.constant 0 : i32
    %c0_i32_1 = arith.constant 0 : i32
    return %c0_i32, %c0_i32_0 : i32, i32
  }
  func.func @transform_5(%arg0: i32) -> (i32, i32) {
    %c0_i32 = arith.constant 0 : i32
    %c0_i32_0 = arith.constant 0 : i32
    %c0_i32_1 = arith.constant 0 : i32
    return %c0_i32, %c0_i32_0 : i32, i32
  }
  func.func @transform_6(%arg0: i32) -> (i32, i32, i32) {
    %c0_i32 = arith.constant 0 : i32
    %c0_i32_0 = arith.constant 0 : i32
    %c0_i32_1 = arith.constant 0 : i32
    %c0_i32_2 = arith.constant 0 : i32
    return %c0_i32, %c0_i32_0, %c0_i32_1 : i32, i32, i32
  }
  func.func @transform_7(%arg0: i32) -> (i32, i32) {
    %c0_i32 = arith.constant 0 : i32
    %c0_i32_0 = arith.constant 0 : i32
    %c0_i32_1 = arith.constant 0 : i32
    return %c0_i32, %c0_i32_0 : i32, i32
  }
  func.func @transform_8(%arg0: i32) -> (i32, i32, i32) {
    %c0_i32 = arith.constant 0 : i32
    %c0_i32_0 = arith.constant 0 : i32
    %c0_i32_1 = arith.constant 0 : i32
    return %arg0, %c0_i32, %c0_i32_0 : i32, i32, i32
  }
  func.func @transform_9(%arg0: i32) -> (i32, i32, i32, i32) {
    %c0_i32 = arith.constant 0 : i32
    %c0_i32_0 = arith.constant 0 : i32
    %c0_i32_1 = arith.constant 0 : i32
    %c0_i32_2 = arith.constant 0 : i32
    return %arg0, %c0_i32, %c0_i32_0, %c0_i32_1 : i32, i32, i32, i32
  }
}

module attributes {stable_mosaic.version = 11 : i64} {
  func.func @_aspa_kernel(%arg0: i32, %arg1: memref<1x16x128xf32, #tpu.memory_space<vmem>>, %arg2: memref<1x16x128xf32, #tpu.memory_space<vmem>>, %arg3: memref<7x128x128xf32, #tpu.memory_space<vmem>>, %arg4: memref<1x128xf32, #tpu.memory_space<vmem>>, %arg5: memref<128x8xf32, #tpu.memory_space<vmem>>, %arg6: memref<1x8xf32, #tpu.memory_space<vmem>>, %arg7: memref<8x128xf32, #tpu.memory_space<vmem>>, %arg8: memref<1x16x128xf32, #tpu.memory_space<vmem>>, %arg9: memref<34x128xf32, #tpu.memory_space<vmem>>) attributes {dimension_semantics = [#tpu.dimension_semantics<parallel>], iteration_bounds = array<i64: 2>, scalar_prefetch = 0 : i64, scratch_operands = 1 : i64, tpu.core_type = #tpu.core_type<tc>, window_params = [{transform_indices = @transform_0, window_bounds = array<i64: 1, 16, 128>}, {transform_indices = @transform_1, window_bounds = array<i64: 1, 16, 128>}, {pipeline_mode = #tpu.pipeline_mode<synchronous>, transform_indices = @transform_2, window_bounds = array<i64: 7, 128, 128>}, {pipeline_mode = #tpu.pipeline_mode<synchronous>, transform_indices = @transform_3, window_bounds = array<i64: 1, 128>}, {pipeline_mode = #tpu.pipeline_mode<synchronous>, transform_indices = @transform_4, window_bounds = array<i64: 128, 8>}, {pipeline_mode = #tpu.pipeline_mode<synchronous>, transform_indices = @transform_5, window_bounds = array<i64: 1, 8>}, {pipeline_mode = #tpu.pipeline_mode<synchronous>, transform_indices = @transform_6, window_bounds = array<i64: 8, 128>}, {transform_indices = @transform_7, window_bounds = array<i64: 1, 16, 128>}]} {
    %c0 = arith.constant 0 : index
    %c0_0 = arith.constant 0 : index
    %c0_1 = arith.constant 0 : index
    %0 = vector.load %arg1[%c0, %c0_0, %c0_1] : memref<1x16x128xf32, #tpu.memory_space<vmem>>, vector<1x16x128xf32>
    %1 = vector.shape_cast %0 : vector<1x16x128xf32> to vector<16x128xf32>
    %cst = arith.constant 0.000000e+00 : f32
    %2 = vector.broadcast %cst : f32 to vector<9x128xf32>
    %c0_2 = arith.constant 0 : index
    %c0_3 = arith.constant 0 : index
    %3 = vector.load %arg9[%c0_2, %c0_3] : memref<34x128xf32, #tpu.memory_space<vmem>>, vector<9x128xf32>
    tpu.vector_store %arg9[%c0_2, %c0_3], %2 {strides = array<i32>} : memref<34x128xf32, #tpu.memory_space<vmem>>, vector<9x128xf32>,
    %c9 = arith.constant 9 : index
    %c0_4 = arith.constant 0 : index
    %4 = vector.load %arg9[%c9, %c0_4] : memref<34x128xf32, #tpu.memory_space<vmem>>, vector<16x128xf32>
    tpu.vector_store %arg9[%c9, %c0_4], %1 {strides = array<i32>} : memref<34x128xf32, #tpu.memory_space<vmem>>, vector<16x128xf32>,
    %cst_5 = arith.constant 0.000000e+00 : f32
    %5 = vector.broadcast %cst_5 : f32 to vector<9x128xf32>
    %c25 = arith.constant 25 : index
    %c0_6 = arith.constant 0 : index
    %6 = vector.load %arg9[%c25, %c0_6] : memref<34x128xf32, #tpu.memory_space<vmem>>, vector<9x128xf32>
    tpu.vector_store %arg9[%c25, %c0_6], %5 {strides = array<i32>} : memref<34x128xf32, #tpu.memory_space<vmem>>, vector<9x128xf32>,
    %c0_7 = arith.constant 0 : index
    %c0_8 = arith.constant 0 : index
    %7 = vector.load %arg4[%c0_7, %c0_8] : memref<1x128xf32, #tpu.memory_space<vmem>>, vector<1x128xf32>
    %c0_9 = arith.constant 0 : index
    %c0_10 = arith.constant 0 : index
    %8 = vector.load %arg9[%c0_9, %c0_10] : memref<34x128xf32, #tpu.memory_space<vmem>>, vector<16x128xf32>
    %c0_11 = arith.constant 0 : index
    %c0_12 = arith.constant 0 : index
    %c0_13 = arith.constant 0 : index
    %9 = vector.load %arg3[%c0_11, %c0_12, %c0_13] : memref<7x128x128xf32, #tpu.memory_space<vmem>>, vector<1x128x128xf32>
    %10 = vector.shape_cast %9 : vector<1x128x128xf32> to vector<128x128xf32>
    %cst_14 = arith.constant dense<0.000000e+00> : vector<16x128xf32>
    %11 = tpu.matmul %8, %10, %cst_14 {dimension_numbers = #tpu.dot_dimension_numbers<[1], [0], [0], [1], [0, 0, 1, 1], [], []>} : vector<16x128xf32>, vector<128x128xf32>, vector<16x128xf32> -> vector<16x128xf32>
    %12 = vector.broadcast %7 : vector<1x128xf32> to vector<16x128xf32>
    %13 = arith.addf %12, %11 : vector<16x128xf32>
    %c6 = arith.constant 6 : index
    %c0_15 = arith.constant 0 : index
    %14 = vector.load %arg9[%c6, %c0_15] : memref<34x128xf32, #tpu.memory_space<vmem>>, vector<16x128xf32>
    %c1 = arith.constant 1 : index
    %c0_16 = arith.constant 0 : index
    %c0_17 = arith.constant 0 : index
    %15 = vector.load %arg3[%c1, %c0_16, %c0_17] : memref<7x128x128xf32, #tpu.memory_space<vmem>>, vector<1x128x128xf32>
    %16 = vector.shape_cast %15 : vector<1x128x128xf32> to vector<128x128xf32>
    %cst_18 = arith.constant dense<0.000000e+00> : vector<16x128xf32>
    %17 = tpu.matmul %14, %16, %cst_18 {dimension_numbers = #tpu.dot_dimension_numbers<[1], [0], [0], [1], [0, 0, 1, 1], [], []>} : vector<16x128xf32>, vector<128x128xf32>, vector<16x128xf32> -> vector<16x128xf32>
    %18 = arith.addf %13, %17 : vector<16x128xf32>
    %c8 = arith.constant 8 : index
    %c0_19 = arith.constant 0 : index
    %19 = vector.load %arg9[%c8, %c0_19] : memref<34x128xf32, #tpu.memory_space<vmem>>, vector<16x128xf32>
    %c2 = arith.constant 2 : index
    %c0_20 = arith.constant 0 : index
    %c0_21 = arith.constant 0 : index
    %20 = vector.load %arg3[%c2, %c0_20, %c0_21] : memref<7x128x128xf32, #tpu.memory_space<vmem>>, vector<1x128x128xf32>
    %21 = vector.shape_cast %20 : vector<1x128x128xf32> to vector<128x128xf32>
    %cst_22 = arith.constant dense<0.000000e+00> : vector<16x128xf32>
    %22 = tpu.matmul %19, %21, %cst_22 {dimension_numbers = #tpu.dot_dimension_numbers<[1], [0], [0], [1], [0, 0, 1, 1], [], []>} : vector<16x128xf32>, vector<128x128xf32>, vector<16x128xf32> -> vector<16x128xf32>
    %23 = arith.addf %18, %22 : vector<16x128xf32>
    %c9_23 = arith.constant 9 : index
    %c0_24 = arith.constant 0 : index
    %24 = vector.load %arg9[%c9_23, %c0_24] : memref<34x128xf32, #tpu.memory_space<vmem>>, vector<16x128xf32>
    %c3 = arith.constant 3 : index
    %c0_25 = arith.constant 0 : index
    %c0_26 = arith.constant 0 : index
    %25 = vector.load %arg3[%c3, %c0_25, %c0_26] : memref<7x128x128xf32, #tpu.memory_space<vmem>>, vector<1x128x128xf32>
    %26 = vector.shape_cast %25 : vector<1x128x128xf32> to vector<128x128xf32>
    %cst_27 = arith.constant dense<0.000000e+00> : vector<16x128xf32>
    %27 = tpu.matmul %24, %26, %cst_27 {dimension_numbers = #tpu.dot_dimension_numbers<[1], [0], [0], [1], [0, 0, 1, 1], [], []>} : vector<16x128xf32>, vector<128x128xf32>, vector<16x128xf32> -> vector<16x128xf32>
    %28 = arith.addf %23, %27 : vector<16x128xf32>
    %c10 = arith.constant 10 : index
    %c0_28 = arith.constant 0 : index
    %29 = vector.load %arg9[%c10, %c0_28] : memref<34x128xf32, #tpu.memory_space<vmem>>, vector<16x128xf32>
    %c4 = arith.constant 4 : index
    %c0_29 = arith.constant 0 : index
    %c0_30 = arith.constant 0 : index
    %30 = vector.load %arg3[%c4, %c0_29, %c0_30] : memref<7x128x128xf32, #tpu.memory_space<vmem>>, vector<1x128x128xf32>
    %31 = vector.shape_cast %30 : vector<1x128x128xf32> to vector<128x128xf32>
    %cst_31 = arith.constant dense<0.000000e+00> : vector<16x128xf32>
    %32 = tpu.matmul %29, %31, %cst_31 {dimension_numbers = #tpu.dot_dimension_numbers<[1], [0], [0], [1], [0, 0, 1, 1], [], []>} : vector<16x128xf32>, vector<128x128xf32>, vector<16x128xf32> -> vector<16x128xf32>
    %33 = arith.addf %28, %32 : vector<16x128xf32>
    %c12 = arith.constant 12 : index
    %c0_32 = arith.constant 0 : index
    %34 = vector.load %arg9[%c12, %c0_32] : memref<34x128xf32, #tpu.memory_space<vmem>>, vector<16x128xf32>
    %c5 = arith.constant 5 : index
    %c0_33 = arith.constant 0 : index
    %c0_34 = arith.constant 0 : index
    %35 = vector.load %arg3[%c5, %c0_33, %c0_34] : memref<7x128x128xf32, #tpu.memory_space<vmem>>, vector<1x128x128xf32>
    %36 = vector.shape_cast %35 : vector<1x128x128xf32> to vector<128x128xf32>
    %cst_35 = arith.constant dense<0.000000e+00> : vector<16x128xf32>
    %37 = tpu.matmul %34, %36, %cst_35 {dimension_numbers = #tpu.dot_dimension_numbers<[1], [0], [0], [1], [0, 0, 1, 1], [], []>} : vector<16x128xf32>, vector<128x128xf32>, vector<16x128xf32> -> vector<16x128xf32>
    %38 = arith.addf %33, %37 : vector<16x128xf32>
    %c18 = arith.constant 18 : index
    %c0_36 = arith.constant 0 : index
    %39 = vector.load %arg9[%c18, %c0_36] : memref<34x128xf32, #tpu.memory_space<vmem>>, vector<16x128xf32>
    %c6_37 = arith.constant 6 : index
    %c0_38 = arith.constant 0 : index
    %c0_39 = arith.constant 0 : index
    %40 = vector.load %arg3[%c6_37, %c0_38, %c0_39] : memref<7x128x128xf32, #tpu.memory_space<vmem>>, vector<1x128x128xf32>
    %41 = vector.shape_cast %40 : vector<1x128x128xf32> to vector<128x128xf32>
    %cst_40 = arith.constant dense<0.000000e+00> : vector<16x128xf32>
    %42 = tpu.matmul %39, %41, %cst_40 {dimension_numbers = #tpu.dot_dimension_numbers<[1], [0], [0], [1], [0, 0, 1, 1], [], []>} : vector<16x128xf32>, vector<128x128xf32>, vector<16x128xf32> -> vector<16x128xf32>
    %43 = arith.addf %38, %42 : vector<16x128xf32>
    %cst_41 = arith.constant 0.000000e+00 : f32
    %44 = vector.broadcast %cst_41 : f32 to vector<16x128xf32>
    %45 = arith.maximumf %43, %44 : vector<16x128xf32>
    %cst_42 = arith.constant dense<0.000000e+00> : vector<128xf32>
    %46 = vector.multi_reduction <add>, %45, %cst_42 [0] : vector<16x128xf32> to vector<128xf32>
    %47 = vector.shape_cast %46 : vector<128xf32> to vector<1x128xf32>
    %c0_43 = arith.constant 0 : index
    %c0_44 = arith.constant 0 : index
    %48 = vector.load %arg5[%c0_43, %c0_44] : memref<128x8xf32, #tpu.memory_space<vmem>>, vector<128x8xf32>
    %cst_45 = arith.constant dense<0.000000e+00> : vector<1x8xf32>
    %49 = tpu.matmul %47, %48, %cst_45 {dimension_numbers = #tpu.dot_dimension_numbers<[1], [0], [0], [1], [0, 0, 1, 1], [], []>} : vector<1x128xf32>, vector<128x8xf32>, vector<1x8xf32> -> vector<1x8xf32>
    %c0_46 = arith.constant 0 : index
    %c0_47 = arith.constant 0 : index
    %50 = vector.load %arg6[%c0_46, %c0_47] : memref<1x8xf32, #tpu.memory_space<vmem>>, vector<1x8xf32>
    %51 = arith.addf %49, %50 : vector<1x8xf32>
    %52 = arith.negf %51 : vector<1x8xf32>
    %53 = math.exp %52 : vector<1x8xf32>
    %cst_48 = arith.constant 1.000000e+00 : f32
    %54 = vector.broadcast %cst_48 : f32 to vector<1x8xf32>
    %55 = arith.addf %54, %53 : vector<1x8xf32>
    %56 = arith.divf %54, %55 : vector<1x8xf32>
    %c0_49 = arith.constant 0 : index
    %c0_50 = arith.constant 0 : index
    %57 = vector.load %arg7[%c0_49, %c0_50] : memref<8x128xf32, #tpu.memory_space<vmem>>, vector<8x128xf32>
    %cst_51 = arith.constant dense<0.000000e+00> : vector<1x128xf32>
    %58 = tpu.matmul %56, %57, %cst_51 {dimension_numbers = #tpu.dot_dimension_numbers<[1], [0], [0], [1], [0, 0, 1, 1], [], []>} : vector<1x8xf32>, vector<8x128xf32>, vector<1x128xf32> -> vector<1x128xf32>
    %59 = vector.broadcast %58 : vector<1x128xf32> to vector<16x128xf32>
    %60 = arith.mulf %45, %59 : vector<16x128xf32>
    %61 = arith.addf %1, %60 : vector<16x128xf32>
    %c0_52 = arith.constant 0 : index
    %c0_53 = arith.constant 0 : index
    %c0_54 = arith.constant 0 : index
    %62 = vector.load %arg2[%c0_52, %c0_53, %c0_54] : memref<1x16x128xf32, #tpu.memory_space<vmem>>, vector<1x16x128xf32>
    %63 = vector.shape_cast %62 : vector<1x16x128xf32> to vector<16x128xf32>
    %64 = arith.addf %61, %63 : vector<16x128xf32>
    %c0_55 = arith.constant 0 : index
    %c0_56 = arith.constant 0 : index
    %c0_57 = arith.constant 0 : index
    %65 = vector.load %arg8[%c0_55, %c0_56, %c0_57] : memref<1x16x128xf32, #tpu.memory_space<vmem>>, vector<1x16x128xf32>
    %66 = vector.shape_cast %65 : vector<1x16x128xf32> to vector<16x128xf32>
    %67 = vector.shape_cast %64 : vector<16x128xf32> to vector<1x16x128xf32>
    tpu.vector_store %arg8[%c0_55, %c0_56, %c0_57], %67 {strides = array<i32>} : memref<1x16x128xf32, #tpu.memory_space<vmem>>, vector<1x16x128xf32>,
    return
  }
  func.func @transform_0(%arg0: i32) -> (i32, i32, i32) {
    %c0_i32 = arith.constant 0 : i32
    %c0_i32_0 = arith.constant 0 : i32
    %c0_i32_1 = arith.constant 0 : i32
    return %arg0, %c0_i32, %c0_i32_0 : i32, i32, i32
  }
  func.func @transform_1(%arg0: i32) -> (i32, i32, i32) {
    %c0_i32 = arith.constant 0 : i32
    %c0_i32_0 = arith.constant 0 : i32
    %c0_i32_1 = arith.constant 0 : i32
    return %arg0, %c0_i32, %c0_i32_0 : i32, i32, i32
  }
  func.func @transform_2(%arg0: i32) -> (i32, i32, i32) {
    %c0_i32 = arith.constant 0 : i32
    %c0_i32_0 = arith.constant 0 : i32
    %c0_i32_1 = arith.constant 0 : i32
    %c0_i32_2 = arith.constant 0 : i32
    return %c0_i32, %c0_i32_0, %c0_i32_1 : i32, i32, i32
  }
  func.func @transform_3(%arg0: i32) -> (i32, i32) {
    %c0_i32 = arith.constant 0 : i32
    %c0_i32_0 = arith.constant 0 : i32
    %c0_i32_1 = arith.constant 0 : i32
    return %c0_i32, %c0_i32_0 : i32, i32
  }
  func.func @transform_4(%arg0: i32) -> (i32, i32) {
    %c0_i32 = arith.constant 0 : i32
    %c0_i32_0 = arith.constant 0 : i32
    %c0_i32_1 = arith.constant 0 : i32
    return %c0_i32, %c0_i32_0 : i32, i32
  }
  func.func @transform_5(%arg0: i32) -> (i32, i32) {
    %c0_i32 = arith.constant 0 : i32
    %c0_i32_0 = arith.constant 0 : i32
    %c0_i32_1 = arith.constant 0 : i32
    return %c0_i32, %c0_i32_0 : i32, i32
  }
  func.func @transform_6(%arg0: i32) -> (i32, i32) {
    %c0_i32 = arith.constant 0 : i32
    %c0_i32_0 = arith.constant 0 : i32
    %c0_i32_1 = arith.constant 0 : i32
    return %c0_i32, %c0_i32_0 : i32, i32
  }
  func.func @transform_7(%arg0: i32) -> (i32, i32, i32) {
    %c0_i32 = arith.constant 0 : i32
    %c0_i32_0 = arith.constant 0 : i32
    %c0_i32_1 = arith.constant 0 : i32
    return %arg0, %c0_i32, %c0_i32_0 : i32, i32, i32
  }
}

module attributes {stable_mosaic.version = 11 : i64} {
  func.func @_aspa_kernel(%arg0: i32, %arg1: memref<1x8x128xf32, #tpu.memory_space<vmem>>, %arg2: memref<5x128x128xf32, #tpu.memory_space<vmem>>, %arg3: memref<1x128xf32, #tpu.memory_space<vmem>>, %arg4: memref<128x16xf32, #tpu.memory_space<vmem>>, %arg5: memref<1x16xf32, #tpu.memory_space<vmem>>, %arg6: memref<16x128xf32, #tpu.memory_space<vmem>>, %arg7: memref<4x128x128xf32, #tpu.memory_space<vmem>>, %arg8: memref<1x128xf32, #tpu.memory_space<vmem>>, %arg9: memref<1x8x128xf32, #tpu.memory_space<vmem>>, %arg10: memref<1x2x8x128xf32, #tpu.memory_space<vmem>>, %arg11: memref<14x128xf32, #tpu.memory_space<vmem>>) attributes {dimension_semantics = [#tpu.dimension_semantics<parallel>], iteration_bounds = array<i64: 2>, scalar_prefetch = 0 : i64, scratch_operands = 1 : i64, tpu.core_type = #tpu.core_type<tc>, window_params = [{transform_indices = @transform_0, window_bounds = array<i64: 1, 8, 128>}, {pipeline_mode = #tpu.pipeline_mode<synchronous>, transform_indices = @transform_1, window_bounds = array<i64: 5, 128, 128>}, {pipeline_mode = #tpu.pipeline_mode<synchronous>, transform_indices = @transform_2, window_bounds = array<i64: 1, 128>}, {pipeline_mode = #tpu.pipeline_mode<synchronous>, transform_indices = @transform_3, window_bounds = array<i64: 128, 16>}, {pipeline_mode = #tpu.pipeline_mode<synchronous>, transform_indices = @transform_4, window_bounds = array<i64: 1, 16>}, {pipeline_mode = #tpu.pipeline_mode<synchronous>, transform_indices = @transform_5, window_bounds = array<i64: 16, 128>}, {pipeline_mode = #tpu.pipeline_mode<synchronous>, transform_indices = @transform_6, window_bounds = array<i64: 4, 128, 128>}, {pipeline_mode = #tpu.pipeline_mode<synchronous>, transform_indices = @transform_7, window_bounds = array<i64: 1, 128>}, {transform_indices = @transform_8, window_bounds = array<i64: 1, 8, 128>}, {transform_indices = @transform_9, window_bounds = array<i64: 1, 2, 8, 128>}]} {
    %c0 = arith.constant 0 : index
    %c0_0 = arith.constant 0 : index
    %c0_1 = arith.constant 0 : index
    %0 = vector.load %arg1[%c0, %c0_0, %c0_1] : memref<1x8x128xf32, #tpu.memory_space<vmem>>, vector<1x8x128xf32>
    %1 = vector.shape_cast %0 : vector<1x8x128xf32> to vector<8x128xf32>
    %cst = arith.constant 0.000000e+00 : f32
    %2 = vector.broadcast %cst : f32 to vector<3x128xf32>
    %c0_2 = arith.constant 0 : index
    %c0_3 = arith.constant 0 : index
    %3 = vector.load %arg11[%c0_2, %c0_3] : memref<14x128xf32, #tpu.memory_space<vmem>>, vector<3x128xf32>
    tpu.vector_store %arg11[%c0_2, %c0_3], %2 {strides = array<i32>} : memref<14x128xf32, #tpu.memory_space<vmem>>, vector<3x128xf32>,
    %c3 = arith.constant 3 : index
    %c0_4 = arith.constant 0 : index
    %4 = vector.load %arg11[%c3, %c0_4] : memref<14x128xf32, #tpu.memory_space<vmem>>, vector<8x128xf32>
    tpu.vector_store %arg11[%c3, %c0_4], %1 {strides = array<i32>} : memref<14x128xf32, #tpu.memory_space<vmem>>, vector<8x128xf32>,
    %cst_5 = arith.constant 0.000000e+00 : f32
    %5 = vector.broadcast %cst_5 : f32 to vector<3x128xf32>
    %c11 = arith.constant 11 : index
    %c0_6 = arith.constant 0 : index
    %6 = vector.load %arg11[%c11, %c0_6] : memref<14x128xf32, #tpu.memory_space<vmem>>, vector<3x128xf32>
    tpu.vector_store %arg11[%c11, %c0_6], %5 {strides = array<i32>} : memref<14x128xf32, #tpu.memory_space<vmem>>, vector<3x128xf32>,
    %c0_7 = arith.constant 0 : index
    %c0_8 = arith.constant 0 : index
    %7 = vector.load %arg3[%c0_7, %c0_8] : memref<1x128xf32, #tpu.memory_space<vmem>>, vector<1x128xf32>
    %c0_9 = arith.constant 0 : index
    %c0_10 = arith.constant 0 : index
    %8 = vector.load %arg11[%c0_9, %c0_10] : memref<14x128xf32, #tpu.memory_space<vmem>>, vector<8x128xf32>
    %c0_11 = arith.constant 0 : index
    %c0_12 = arith.constant 0 : index
    %c0_13 = arith.constant 0 : index
    %9 = vector.load %arg2[%c0_11, %c0_12, %c0_13] : memref<5x128x128xf32, #tpu.memory_space<vmem>>, vector<1x128x128xf32>
    %10 = vector.shape_cast %9 : vector<1x128x128xf32> to vector<128x128xf32>
    %cst_14 = arith.constant dense<0.000000e+00> : vector<8x128xf32>
    %11 = tpu.matmul %8, %10, %cst_14 {dimension_numbers = #tpu.dot_dimension_numbers<[1], [0], [0], [1], [0, 0, 1, 1], [], []>} : vector<8x128xf32>, vector<128x128xf32>, vector<8x128xf32> -> vector<8x128xf32>
    %12 = vector.broadcast %7 : vector<1x128xf32> to vector<8x128xf32>
    %13 = arith.addf %12, %11 : vector<8x128xf32>
    %c2 = arith.constant 2 : index
    %c0_15 = arith.constant 0 : index
    %14 = vector.load %arg11[%c2, %c0_15] : memref<14x128xf32, #tpu.memory_space<vmem>>, vector<8x128xf32>
    %c1 = arith.constant 1 : index
    %c0_16 = arith.constant 0 : index
    %c0_17 = arith.constant 0 : index
    %15 = vector.load %arg2[%c1, %c0_16, %c0_17] : memref<5x128x128xf32, #tpu.memory_space<vmem>>, vector<1x128x128xf32>
    %16 = vector.shape_cast %15 : vector<1x128x128xf32> to vector<128x128xf32>
    %cst_18 = arith.constant dense<0.000000e+00> : vector<8x128xf32>
    %17 = tpu.matmul %14, %16, %cst_18 {dimension_numbers = #tpu.dot_dimension_numbers<[1], [0], [0], [1], [0, 0, 1, 1], [], []>} : vector<8x128xf32>, vector<128x128xf32>, vector<8x128xf32> -> vector<8x128xf32>
    %18 = arith.addf %13, %17 : vector<8x128xf32>
    %c3_19 = arith.constant 3 : index
    %c0_20 = arith.constant 0 : index
    %19 = vector.load %arg11[%c3_19, %c0_20] : memref<14x128xf32, #tpu.memory_space<vmem>>, vector<8x128xf32>
    %c2_21 = arith.constant 2 : index
    %c0_22 = arith.constant 0 : index
    %c0_23 = arith.constant 0 : index
    %20 = vector.load %arg2[%c2_21, %c0_22, %c0_23] : memref<5x128x128xf32, #tpu.memory_space<vmem>>, vector<1x128x128xf32>
    %21 = vector.shape_cast %20 : vector<1x128x128xf32> to vector<128x128xf32>
    %cst_24 = arith.constant dense<0.000000e+00> : vector<8x128xf32>
    %22 = tpu.matmul %19, %21, %cst_24 {dimension_numbers = #tpu.dot_dimension_numbers<[1], [0], [0], [1], [0, 0, 1, 1], [], []>} : vector<8x128xf32>, vector<128x128xf32>, vector<8x128xf32> -> vector<8x128xf32>
    %23 = arith.addf %18, %22 : vector<8x128xf32>
    %c4 = arith.constant 4 : index
    %c0_25 = arith.constant 0 : index
    %24 = vector.load %arg11[%c4, %c0_25] : memref<14x128xf32, #tpu.memory_space<vmem>>, vector<8x128xf32>
    %c3_26 = arith.constant 3 : index
    %c0_27 = arith.constant 0 : index
    %c0_28 = arith.constant 0 : index
    %25 = vector.load %arg2[%c3_26, %c0_27, %c0_28] : memref<5x128x128xf32, #tpu.memory_space<vmem>>, vector<1x128x128xf32>
    %26 = vector.shape_cast %25 : vector<1x128x128xf32> to vector<128x128xf32>
    %cst_29 = arith.constant dense<0.000000e+00> : vector<8x128xf32>
    %27 = tpu.matmul %24, %26, %cst_29 {dimension_numbers = #tpu.dot_dimension_numbers<[1], [0], [0], [1], [0, 0, 1, 1], [], []>} : vector<8x128xf32>, vector<128x128xf32>, vector<8x128xf32> -> vector<8x128xf32>
    %28 = arith.addf %23, %27 : vector<8x128xf32>
    %c6 = arith.constant 6 : index
    %c0_30 = arith.constant 0 : index
    %29 = vector.load %arg11[%c6, %c0_30] : memref<14x128xf32, #tpu.memory_space<vmem>>, vector<8x128xf32>
    %c4_31 = arith.constant 4 : index
    %c0_32 = arith.constant 0 : index
    %c0_33 = arith.constant 0 : index
    %30 = vector.load %arg2[%c4_31, %c0_32, %c0_33] : memref<5x128x128xf32, #tpu.memory_space<vmem>>, vector<1x128x128xf32>
    %31 = vector.shape_cast %30 : vector<1x128x128xf32> to vector<128x128xf32>
    %cst_34 = arith.constant dense<0.000000e+00> : vector<8x128xf32>
    %32 = tpu.matmul %29, %31, %cst_34 {dimension_numbers = #tpu.dot_dimension_numbers<[1], [0], [0], [1], [0, 0, 1, 1], [], []>} : vector<8x128xf32>, vector<128x128xf32>, vector<8x128xf32> -> vector<8x128xf32>
    %33 = arith.addf %28, %32 : vector<8x128xf32>
    %cst_35 = arith.constant 0.000000e+00 : f32
    %34 = vector.broadcast %cst_35 : f32 to vector<8x128xf32>
    %35 = arith.maximumf %33, %34 : vector<8x128xf32>
    %cst_36 = arith.constant dense<0.000000e+00> : vector<128xf32>
    %36 = vector.multi_reduction <add>, %35, %cst_36 [0] : vector<8x128xf32> to vector<128xf32>
    %37 = vector.shape_cast %36 : vector<128xf32> to vector<1x128xf32>
    %c0_37 = arith.constant 0 : index
    %c0_38 = arith.constant 0 : index
    %38 = vector.load %arg4[%c0_37, %c0_38] : memref<128x16xf32, #tpu.memory_space<vmem>>, vector<128x16xf32>
    %cst_39 = arith.constant dense<0.000000e+00> : vector<1x16xf32>
    %39 = tpu.matmul %37, %38, %cst_39 {dimension_numbers = #tpu.dot_dimension_numbers<[1], [0], [0], [1], [0, 0, 1, 1], [], []>} : vector<1x128xf32>, vector<128x16xf32>, vector<1x16xf32> -> vector<1x16xf32>
    %c0_40 = arith.constant 0 : index
    %c0_41 = arith.constant 0 : index
    %40 = vector.load %arg5[%c0_40, %c0_41] : memref<1x16xf32, #tpu.memory_space<vmem>>, vector<1x16xf32>
    %41 = arith.addf %39, %40 : vector<1x16xf32>
    %42 = arith.negf %41 : vector<1x16xf32>
    %43 = math.exp %42 : vector<1x16xf32>
    %cst_42 = arith.constant 1.000000e+00 : f32
    %44 = vector.broadcast %cst_42 : f32 to vector<1x16xf32>
    %45 = arith.addf %44, %43 : vector<1x16xf32>
    %46 = arith.divf %44, %45 : vector<1x16xf32>
    %c0_43 = arith.constant 0 : index
    %c0_44 = arith.constant 0 : index
    %47 = vector.load %arg6[%c0_43, %c0_44] : memref<16x128xf32, #tpu.memory_space<vmem>>, vector<16x128xf32>
    %cst_45 = arith.constant dense<0.000000e+00> : vector<1x128xf32>
    %48 = tpu.matmul %46, %47, %cst_45 {dimension_numbers = #tpu.dot_dimension_numbers<[1], [0], [0], [1], [0, 0, 1, 1], [], []>} : vector<1x16xf32>, vector<16x128xf32>, vector<1x128xf32> -> vector<1x128xf32>
    %49 = vector.broadcast %48 : vector<1x128xf32> to vector<8x128xf32>
    %50 = arith.mulf %35, %49 : vector<8x128xf32>
    %51 = arith.addf %1, %50 : vector<8x128xf32>
    %c0_46 = arith.constant 0 : index
    %c0_47 = arith.constant 0 : index
    %c0_48 = arith.constant 0 : index
    %52 = vector.load %arg9[%c0_46, %c0_47, %c0_48] : memref<1x8x128xf32, #tpu.memory_space<vmem>>, vector<1x8x128xf32>
    %53 = vector.shape_cast %52 : vector<1x8x128xf32> to vector<8x128xf32>
    %54 = vector.shape_cast %51 : vector<8x128xf32> to vector<1x8x128xf32>
    tpu.vector_store %arg9[%c0_46, %c0_47, %c0_48], %54 {strides = array<i32>} : memref<1x8x128xf32, #tpu.memory_space<vmem>>, vector<1x8x128xf32>,
    %c3_49 = arith.constant 3 : index
    %c0_50 = arith.constant 0 : index
    %55 = vector.load %arg11[%c3_49, %c0_50] : memref<14x128xf32, #tpu.memory_space<vmem>>, vector<8x128xf32>
    tpu.vector_store %arg11[%c3_49, %c0_50], %51 {strides = array<i32>} : memref<14x128xf32, #tpu.memory_space<vmem>>, vector<8x128xf32>,
    %c2_51 = arith.constant 2 : index
    %c0_52 = arith.constant 0 : index
    %56 = vector.load %arg11[%c2_51, %c0_52] : memref<14x128xf32, #tpu.memory_space<vmem>>, vector<8x128xf32>
    %c4_53 = arith.constant 4 : index
    %c0_54 = arith.constant 0 : index
    %57 = vector.load %arg11[%c4_53, %c0_54] : memref<14x128xf32, #tpu.memory_space<vmem>>, vector<8x128xf32>
    %c0_55 = arith.constant 0 : index
    %c0_56 = arith.constant 0 : index
    %58 = vector.load %arg8[%c0_55, %c0_56] : memref<1x128xf32, #tpu.memory_space<vmem>>, vector<1x128xf32>
    %c0_57 = arith.constant 0 : index
    %c0_58 = arith.constant 0 : index
    %c0_59 = arith.constant 0 : index
    %59 = vector.load %arg7[%c0_57, %c0_58, %c0_59] : memref<4x128x128xf32, #tpu.memory_space<vmem>>, vector<1x128x128xf32>
    %60 = vector.shape_cast %59 : vector<1x128x128xf32> to vector<128x128xf32>
    %cst_60 = arith.constant dense<0.000000e+00> : vector<8x128xf32>
    %61 = tpu.matmul %56, %60, %cst_60 {dimension_numbers = #tpu.dot_dimension_numbers<[1], [0], [0], [1], [0, 0, 1, 1], [], []>} : vector<8x128xf32>, vector<128x128xf32>, vector<8x128xf32> -> vector<8x128xf32>
    %62 = vector.broadcast %58 : vector<1x128xf32> to vector<8x128xf32>
    %63 = arith.addf %62, %61 : vector<8x128xf32>
    %c1_61 = arith.constant 1 : index
    %c0_62 = arith.constant 0 : index
    %c0_63 = arith.constant 0 : index
    %64 = vector.load %arg7[%c1_61, %c0_62, %c0_63] : memref<4x128x128xf32, #tpu.memory_space<vmem>>, vector<1x128x128xf32>
    %65 = vector.shape_cast %64 : vector<1x128x128xf32> to vector<128x128xf32>
    %cst_64 = arith.constant dense<0.000000e+00> : vector<8x128xf32>
    %66 = tpu.matmul %51, %65, %cst_64 {dimension_numbers = #tpu.dot_dimension_numbers<[1], [0], [0], [1], [0, 0, 1, 1], [], []>} : vector<8x128xf32>, vector<128x128xf32>, vector<8x128xf32> -> vector<8x128xf32>
    %67 = arith.addf %63, %66 : vector<8x128xf32>
    %cst_65 = arith.constant 0.000000e+00 : f32
    %68 = vector.broadcast %cst_65 : f32 to vector<8x128xf32>
    %69 = arith.maximumf %67, %68 : vector<8x128xf32>
    %c2_66 = arith.constant 2 : index
    %c0_67 = arith.constant 0 : index
    %c0_68 = arith.constant 0 : index
    %70 = vector.load %arg7[%c2_66, %c0_67, %c0_68] : memref<4x128x128xf32, #tpu.memory_space<vmem>>, vector<1x128x128xf32>
    %71 = vector.shape_cast %70 : vector<1x128x128xf32> to vector<128x128xf32>
    %cst_69 = arith.constant dense<0.000000e+00> : vector<8x128xf32>
    %72 = tpu.matmul %51, %71, %cst_69 {dimension_numbers = #tpu.dot_dimension_numbers<[1], [0], [0], [1], [0, 0, 1, 1], [], []>} : vector<8x128xf32>, vector<128x128xf32>, vector<8x128xf32> -> vector<8x128xf32>
    %73 = vector.broadcast %58 : vector<1x128xf32> to vector<8x128xf32>
    %74 = arith.addf %73, %72 : vector<8x128xf32>
    %c3_70 = arith.constant 3 : index
    %c0_71 = arith.constant 0 : index
    %c0_72 = arith.constant 0 : index
    %75 = vector.load %arg7[%c3_70, %c0_71, %c0_72] : memref<4x128x128xf32, #tpu.memory_space<vmem>>, vector<1x128x128xf32>
    %76 = vector.shape_cast %75 : vector<1x128x128xf32> to vector<128x128xf32>
    %cst_73 = arith.constant dense<0.000000e+00> : vector<8x128xf32>
    %77 = tpu.matmul %57, %76, %cst_73 {dimension_numbers = #tpu.dot_dimension_numbers<[1], [0], [0], [1], [0, 0, 1, 1], [], []>} : vector<8x128xf32>, vector<128x128xf32>, vector<8x128xf32> -> vector<8x128xf32>
    %78 = arith.addf %74, %77 : vector<8x128xf32>
    %cst_74 = arith.constant 0.000000e+00 : f32
    %79 = vector.broadcast %cst_74 : f32 to vector<8x128xf32>
    %80 = arith.maximumf %78, %79 : vector<8x128xf32>
    %c0_75 = arith.constant 0 : index
    %c0_76 = arith.constant 0 : index
    %c0_77 = arith.constant 0 : index
    %c0_78 = arith.constant 0 : index
    %81 = vector.load %arg10[%c0_75, %c0_76, %c0_77, %c0_78] : memref<1x2x8x128xf32, #tpu.memory_space<vmem>>, vector<1x1x8x128xf32>
    %82 = vector.shape_cast %81 : vector<1x1x8x128xf32> to vector<8x128xf32>
    %83 = vector.shape_cast %69 : vector<8x128xf32> to vector<1x1x8x128xf32>
    tpu.vector_store %arg10[%c0_75, %c0_76, %c0_77, %c0_78], %83 {strides = array<i32>} : memref<1x2x8x128xf32, #tpu.memory_space<vmem>>, vector<1x1x8x128xf32>,
    %c0_79 = arith.constant 0 : index
    %c1_80 = arith.constant 1 : index
    %c0_81 = arith.constant 0 : index
    %c0_82 = arith.constant 0 : index
    %84 = vector.load %arg10[%c0_79, %c1_80, %c0_81, %c0_82] : memref<1x2x8x128xf32, #tpu.memory_space<vmem>>, vector<1x1x8x128xf32>
    %85 = vector.shape_cast %84 : vector<1x1x8x128xf32> to vector<8x128xf32>
    %86 = vector.shape_cast %80 : vector<8x128xf32> to vector<1x1x8x128xf32>
    tpu.vector_store %arg10[%c0_79, %c1_80, %c0_81, %c0_82], %86 {strides = array<i32>} : memref<1x2x8x128xf32, #tpu.memory_space<vmem>>, vector<1x1x8x128xf32>,
    return
  }
  func.func @transform_0(%arg0: i32) -> (i32, i32, i32) {
    %c0_i32 = arith.constant 0 : i32
    %c0_i32_0 = arith.constant 0 : i32
    %c0_i32_1 = arith.constant 0 : i32
    return %arg0, %c0_i32, %c0_i32_0 : i32, i32, i32
  }
  func.func @transform_1(%arg0: i32) -> (i32, i32, i32) {
    %c0_i32 = arith.constant 0 : i32
    %c0_i32_0 = arith.constant 0 : i32
    %c0_i32_1 = arith.constant 0 : i32
    %c0_i32_2 = arith.constant 0 : i32
    return %c0_i32, %c0_i32_0, %c0_i32_1 : i32, i32, i32
  }
  func.func @transform_2(%arg0: i32) -> (i32, i32) {
    %c0_i32 = arith.constant 0 : i32
    %c0_i32_0 = arith.constant 0 : i32
    %c0_i32_1 = arith.constant 0 : i32
    return %c0_i32, %c0_i32_0 : i32, i32
  }
  func.func @transform_3(%arg0: i32) -> (i32, i32) {
    %c0_i32 = arith.constant 0 : i32
    %c0_i32_0 = arith.constant 0 : i32
    %c0_i32_1 = arith.constant 0 : i32
    return %c0_i32, %c0_i32_0 : i32, i32
  }
  func.func @transform_4(%arg0: i32) -> (i32, i32) {
    %c0_i32 = arith.constant 0 : i32
    %c0_i32_0 = arith.constant 0 : i32
    %c0_i32_1 = arith.constant 0 : i32
    return %c0_i32, %c0_i32_0 : i32, i32
  }
  func.func @transform_5(%arg0: i32) -> (i32, i32) {
    %c0_i32 = arith.constant 0 : i32
    %c0_i32_0 = arith.constant 0 : i32
    %c0_i32_1 = arith.constant 0 : i32
    return %c0_i32, %c0_i32_0 : i32, i32
  }
  func.func @transform_6(%arg0: i32) -> (i32, i32, i32) {
    %c0_i32 = arith.constant 0 : i32
    %c0_i32_0 = arith.constant 0 : i32
    %c0_i32_1 = arith.constant 0 : i32
    %c0_i32_2 = arith.constant 0 : i32
    return %c0_i32, %c0_i32_0, %c0_i32_1 : i32, i32, i32
  }
  func.func @transform_7(%arg0: i32) -> (i32, i32) {
    %c0_i32 = arith.constant 0 : i32
    %c0_i32_0 = arith.constant 0 : i32
    %c0_i32_1 = arith.constant 0 : i32
    return %c0_i32, %c0_i32_0 : i32, i32
  }
  func.func @transform_8(%arg0: i32) -> (i32, i32, i32) {
    %c0_i32 = arith.constant 0 : i32
    %c0_i32_0 = arith.constant 0 : i32
    %c0_i32_1 = arith.constant 0 : i32
    return %arg0, %c0_i32, %c0_i32_0 : i32, i32, i32
  }
  func.func @transform_9(%arg0: i32) -> (i32, i32, i32, i32) {
    %c0_i32 = arith.constant 0 : i32
    %c0_i32_0 = arith.constant 0 : i32
    %c0_i32_1 = arith.constant 0 : i32
    %c0_i32_2 = arith.constant 0 : i32
    return %arg0, %c0_i32, %c0_i32_0, %c0_i32_1 : i32, i32, i32, i32
  }
}

module attributes {stable_mosaic.version = 11 : i64} {
  func.func @_heads_kernel(%arg0: i32, %arg1: memref<1x16x128xf32, #tpu.memory_space<vmem>>, %arg2: memref<1x16x128xf32, #tpu.memory_space<vmem>>, %arg3: memref<1x16x128xf32, #tpu.memory_space<vmem>>, %arg4: memref<128x64xf32, #tpu.memory_space<vmem>>, %arg5: memref<128x64xf32, #tpu.memory_space<vmem>>, %arg6: memref<128x64xf32, #tpu.memory_space<vmem>>, %arg7: memref<1x64xf32, #tpu.memory_space<vmem>>, %arg8: memref<1x16x64xf32, #tpu.memory_space<vmem>>) attributes {dimension_semantics = [#tpu.dimension_semantics<parallel>], iteration_bounds = array<i64: 2>, scalar_prefetch = 0 : i64, scratch_operands = 0 : i64, tpu.core_type = #tpu.core_type<tc>, window_params = [{transform_indices = @transform_0, window_bounds = array<i64: 1, 16, 128>}, {transform_indices = @transform_1, window_bounds = array<i64: 1, 16, 128>}, {transform_indices = @transform_2, window_bounds = array<i64: 1, 16, 128>}, {pipeline_mode = #tpu.pipeline_mode<synchronous>, transform_indices = @transform_3, window_bounds = array<i64: 128, 64>}, {pipeline_mode = #tpu.pipeline_mode<synchronous>, transform_indices = @transform_4, window_bounds = array<i64: 128, 64>}, {pipeline_mode = #tpu.pipeline_mode<synchronous>, transform_indices = @transform_5, window_bounds = array<i64: 128, 64>}, {pipeline_mode = #tpu.pipeline_mode<synchronous>, transform_indices = @transform_6, window_bounds = array<i64: 1, 64>}, {transform_indices = @transform_7, window_bounds = array<i64: 1, 16, 64>}]} {
    %c0 = arith.constant 0 : index
    %c0_0 = arith.constant 0 : index
    %0 = vector.load %arg7[%c0, %c0_0] : memref<1x64xf32, #tpu.memory_space<vmem>>, vector<1x64xf32>
    %c0_1 = arith.constant 0 : index
    %c0_2 = arith.constant 0 : index
    %c0_3 = arith.constant 0 : index
    %1 = vector.load %arg1[%c0_1, %c0_2, %c0_3] : memref<1x16x128xf32, #tpu.memory_space<vmem>>, vector<1x16x128xf32>
    %2 = vector.shape_cast %1 : vector<1x16x128xf32> to vector<16x128xf32>
    %c0_4 = arith.constant 0 : index
    %c0_5 = arith.constant 0 : index
    %3 = vector.load %arg4[%c0_4, %c0_5] : memref<128x64xf32, #tpu.memory_space<vmem>>, vector<128x64xf32>
    %cst = arith.constant dense<0.000000e+00> : vector<16x64xf32>
    %4 = tpu.matmul %2, %3, %cst {dimension_numbers = #tpu.dot_dimension_numbers<[1], [0], [0], [1], [0, 0, 1, 1], [], []>} : vector<16x128xf32>, vector<128x64xf32>, vector<16x64xf32> -> vector<16x64xf32>
    %5 = vector.broadcast %0 : vector<1x64xf32> to vector<16x64xf32>
    %6 = arith.addf %5, %4 : vector<16x64xf32>
    %c0_6 = arith.constant 0 : index
    %c0_7 = arith.constant 0 : index
    %c0_8 = arith.constant 0 : index
    %7 = vector.load %arg2[%c0_6, %c0_7, %c0_8] : memref<1x16x128xf32, #tpu.memory_space<vmem>>, vector<1x16x128xf32>
    %8 = vector.shape_cast %7 : vector<1x16x128xf32> to vector<16x128xf32>
    %c0_9 = arith.constant 0 : index
    %c0_10 = arith.constant 0 : index
    %9 = vector.load %arg5[%c0_9, %c0_10] : memref<128x64xf32, #tpu.memory_space<vmem>>, vector<128x64xf32>
    %cst_11 = arith.constant dense<0.000000e+00> : vector<16x64xf32>
    %10 = tpu.matmul %8, %9, %cst_11 {dimension_numbers = #tpu.dot_dimension_numbers<[1], [0], [0], [1], [0, 0, 1, 1], [], []>} : vector<16x128xf32>, vector<128x64xf32>, vector<16x64xf32> -> vector<16x64xf32>
    %11 = arith.addf %6, %10 : vector<16x64xf32>
    %c0_12 = arith.constant 0 : index
    %c0_13 = arith.constant 0 : index
    %c0_14 = arith.constant 0 : index
    %12 = vector.load %arg3[%c0_12, %c0_13, %c0_14] : memref<1x16x128xf32, #tpu.memory_space<vmem>>, vector<1x16x128xf32>
    %13 = vector.shape_cast %12 : vector<1x16x128xf32> to vector<16x128xf32>
    %c0_15 = arith.constant 0 : index
    %c0_16 = arith.constant 0 : index
    %14 = vector.load %arg6[%c0_15, %c0_16] : memref<128x64xf32, #tpu.memory_space<vmem>>, vector<128x64xf32>
    %cst_17 = arith.constant dense<0.000000e+00> : vector<16x64xf32>
    %15 = tpu.matmul %13, %14, %cst_17 {dimension_numbers = #tpu.dot_dimension_numbers<[1], [0], [0], [1], [0, 0, 1, 1], [], []>} : vector<16x128xf32>, vector<128x64xf32>, vector<16x64xf32> -> vector<16x64xf32>
    %16 = arith.addf %11, %15 : vector<16x64xf32>
    %c0_18 = arith.constant 0 : index
    %c0_19 = arith.constant 0 : index
    %c0_20 = arith.constant 0 : index
    %17 = vector.load %arg8[%c0_18, %c0_19, %c0_20] : memref<1x16x64xf32, #tpu.memory_space<vmem>>, vector<1x16x64xf32>
    %18 = vector.shape_cast %17 : vector<1x16x64xf32> to vector<16x64xf32>
    %19 = vector.shape_cast %16 : vector<16x64xf32> to vector<1x16x64xf32>
    tpu.vector_store %arg8[%c0_18, %c0_19, %c0_20], %19 {strides = array<i32>} : memref<1x16x64xf32, #tpu.memory_space<vmem>>, vector<1x16x64xf32>,
    return
  }
  func.func @transform_0(%arg0: i32) -> (i32, i32, i32) {
    %c0_i32 = arith.constant 0 : i32
    %c0_i32_0 = arith.constant 0 : i32
    %c0_i32_1 = arith.constant 0 : i32
    return %arg0, %c0_i32, %c0_i32_0 : i32, i32, i32
  }
  func.func @transform_1(%arg0: i32) -> (i32, i32, i32) {
    %c0_i32 = arith.constant 0 : i32
    %c0_i32_0 = arith.constant 0 : i32
    %c0_i32_1 = arith.constant 0 : i32
    return %arg0, %c0_i32, %c0_i32_0 : i32, i32, i32
  }
  func.func @transform_2(%arg0: i32) -> (i32, i32, i32) {
    %c0_i32 = arith.constant 0 : i32
    %c0_i32_0 = arith.constant 0 : i32
    %c0_i32_1 = arith.constant 0 : i32
    return %arg0, %c0_i32, %c0_i32_0 : i32, i32, i32
  }
  func.func @transform_3(%arg0: i32) -> (i32, i32) {
    %c0_i32 = arith.constant 0 : i32
    %c0_i32_0 = arith.constant 0 : i32
    %c0_i32_1 = arith.constant 0 : i32
    return %c0_i32, %c0_i32_0 : i32, i32
  }
  func.func @transform_4(%arg0: i32) -> (i32, i32) {
    %c0_i32 = arith.constant 0 : i32
    %c0_i32_0 = arith.constant 0 : i32
    %c0_i32_1 = arith.constant 0 : i32
    return %c0_i32, %c0_i32_0 : i32, i32
  }
  func.func @transform_5(%arg0: i32) -> (i32, i32) {
    %c0_i32 = arith.constant 0 : i32
    %c0_i32_0 = arith.constant 0 : i32
    %c0_i32_1 = arith.constant 0 : i32
    return %c0_i32, %c0_i32_0 : i32, i32
  }
  func.func @transform_6(%arg0: i32) -> (i32, i32) {
    %c0_i32 = arith.constant 0 : i32
    %c0_i32_0 = arith.constant 0 : i32
    %c0_i32_1 = arith.constant 0 : i32
    return %c0_i32, %c0_i32_0 : i32, i32
  }
  func.func @transform_7(%arg0: i32) -> (i32, i32, i32) {
    %c0_i32 = arith.constant 0 : i32
    %c0_i32_0 = arith.constant 0 : i32
    %c0_i32_1 = arith.constant 0 : i32
    return %arg0, %c0_i32, %c0_i32_0 : i32, i32, i32
  }
}

</mosaic_0001>

<bundles_post_ra>
// kernel: hacnetv2_forward.9
= control target key start
LH: loop header
LB: loop body
LE: loop exit
PB: predicated region body
PF: predicated region fallthrough
CT: control target
= control target key end

     0   :  { %8 = vsyncpa [#allocation4], 0  ;;  %s629_s0 = inlined_call_operand.vmem [shape: f32[2,16,48], index: 0, kind: input, shape index: {}]   ;;  %s630_s1 = inlined_call_operand.hbm [shape: f32[3,48,128], index: 1, kind: input, shape index: {}]   ;;  %s631_s2 = inlined_call_operand.hbm [shape: f32[1,128], index: 2, kind: input, shape index: {}]   ;;  %s632_s3 = inlined_call_operand.vmem [shape: f32[2,16,128], index: 3, kind: output, shape index: {}]  }
   0x1   :  { %9 = vsyncpa [#allocation6], 0  ;;  %s578_s12 = smov 0  }
   0x2 LB: > { %s125_s15 = sshll.u32 %s630_s1, 4  ;;  %s415_s16 = sadd.s32 4294967295, %s551_s12   ;;  %s551_s12 = sphi %s578_s12, %s15_s12   ;;  %s126_s15 = int_to_ptr.hbm [resolvable:$true] %s125_s15 }
   0x3   : > { %p417_p0 = scmp.ge.s32.totalorder %s551_s12, 1  ;;  %p114_p1 = scmp.lt.s32.totalorder %s551_s12, 3 }
   0x4   : > { %p459_p2 = scmp.eq.s32.totalorder %s415_s16, 0  ;;  %s553_s18 = smov [#allocation3]  }
   0x5   : > { %p589_p3 = pnand %p417_p0, %p114_p1  ;;  %s127_s19 = sshll.u32 %s553_s18, 4  ;;  %s128_s19 = int_to_ptr.vmem [resolvable:$true] %s127_s19 }
   0x6   : > { %s140_s22 = sshll.u32 %s631_s2, 4  ;;  %s554_s23 = smov [#allocation5]   ;;  %s141_s22 = int_to_ptr.hbm [resolvable:$true] %s140_s22 }
   0x7   : > { %p452_p4 = pneg %p589_p3  ;;  %s142_s24 = sshll.u32 %s554_s23, 4  ;;  %s143_s24 = int_to_ptr.vmem [resolvable:$true] %s142_s24 }
   0x8   : > { %s555_s25 = smov 128   ;;  %s556_s26 = smov 8  }
   0x9   : > { %p453_p5 = pnand %p459_p2, %p452_p4  ;;  %163 = sbr.rel (%p589_p3) target bundleno = 178 (0xb2), region = 32 }
   0xb   : > { %455 = dma.hbm_to_vmem [thread:$0]  (!%p453_p5), %s126_s15, 2304, %s128_s19, [#allocation4], %s555_s25, %s555_s25, %s556_s26  }
   0xc   : > { %458 = dma.hbm_to_vmem [thread:$0]  (!%p453_p5), %s141_s22, 16, %s143_s24, [#allocation6]  }
   0xe   : > { %542 = dma.done.wait (%p459_p2), [#allocation4], 2304  }
   0xf   : > { %544 = vsyncadd (%p459_p2), [#allocation4], 4294964992 }
  0x10   : > { %546 = dma.done.wait (%p459_p2), [#allocation6], 16  }
  0x11   : > { %548 = vsyncadd (%p459_p2), [#allocation6], 4294967280  ;;  %p193_p6 = scmp.lt.s32.totalorder %s415_s16, 1  ;;  %vm203_vm0 = vcmask 385024   ;;  %v557_v0 = vmov 0.0   ;;  %v302_v1 = vld [vmem:[#allocation3 + $0x88] sm:$0xff] }
  0x12   : > { %204 = vst.msk [vmem:[#allocation2] sm:$0x1] %vm203_vm0, %v557_v0  ;;  %v219_v2 = vld [vmem:[#allocation3 + $0x28] sm:$0xff]  ;;  %v301_v3 = vld [vmem:[#allocation3 + $0x80] sm:$0xff]  ;;  %319 = vmatpush.msra.mxu2 %v302_v1  ;;  %v262_v5 = vld [vmem:[#allocation3 + $0x58] sm:$0xff]  ;;  %vm207_vm1 = vcmask 392192  }
  0x13   : > { %s635_s16 = smov (!%p193_p6, %s415_s16), 1  ;;  %210 = vst.msk [vmem:[#allocation2 + $0x11] sm:$0x1] %vm203_vm0, %v557_v0  ;;  %236 = vmatpush.msra.mxu0 %v219_v2  ;;  %v218_v4 = vld [vmem:[#allocation3 + $0x20] sm:$0xff]  ;;  %438 = vmatpush.msra.mxu3 %v219_v2  ;;  %v300_v6 = vld [vmem:[#allocation3 + $0x78] sm:$0xff]  ;;  %v261_v8 = vld [vmem:[#allocation3 + $0x50] sm:$0xff] }
  0x14   : > { %s436_s27 = sshll.u32 %s635_s16, 4  ;;  %279 = vmatpush.msra.mxu1 %v262_v5  ;;  %v217_v7 = vld [vmem:[#allocation3 + $0x18] sm:$0xff]  ;;  %320 = vmatpush.msra.mxu2 %v301_v3  ;;  %v260_v9 = vld [vmem:[#allocation3 + $0x48] sm:$0xff]  ;;  %v299_v10 = vld [vmem:[#allocation3 + $0x70] sm:$0xff] }
  0x15   : > { %s197_s30 = scalar_lea.vmem %s629_s0, %s436_s27  ;;  %237 = vmatpush.msra.mxu0 %v218_v4  ;;  %439 = vmatpush.msra.mxu3 %v218_v4  ;;  %v216_v11 = vld [vmem:[#allocation3 + $0x10] sm:$0xff]  ;;  %v259_v12 = vld [vmem:[#allocation3 + $0x40] sm:$0xff]  ;;  %v298_v15 = vld [vmem:[#allocation3 + $0x68] sm:$0xff]  ;;  %s202_s6 = scalar_lea.vmem %s632_s3, %s436_s27 }
  0x16   : > { %280 = vmatpush.msra.mxu1 %v261_v8  ;;  %321 = vmatpush.msra.mxu2 %v300_v6  ;;  %v205_v13 = vld [vmem:[%s197_s30] sm:$0xff]  ;;  %v206_v14 = vld [vmem:[%s197_s30 + $0x8] sm:$0xff]  ;;  %v258_v17 = vld [vmem:[#allocation3 + $0x38] sm:$0xff] }
  0x17   : > { %238 = vmatpush.msra.mxu0 %v217_v7  ;;  %440 = vmatpush.msra.mxu3 %v217_v7  ;;  %v215_v16 = vld [vmem:[#allocation3 + $0x8] sm:$0xff]  ;;  %208 = vst.msk [vmem:[#allocation2 + $0x1] sm:$0xff] %vm207_vm1, %v205_v13  ;;  %v297_v18 = vld [vmem:[#allocation3 + $0x60] sm:$0xff]  ;;  %v257_v20 = vld [vmem:[#allocation3 + $0x30] sm:$0xff] }
  0x18   : > { %281 = vmatpush.msra.mxu1 %v260_v9  ;;  %322 = vmatpush.msra.mxu2 %v299_v10  ;;  %209 = vst.msk [vmem:[#allocation2 + $0x9] sm:$0xff] %vm207_vm1, %v206_v14  ;;  %v214_v19 = vld [vmem:[#allocation3] sm:$0xff]  ;;  %v476_v27 = vld [vmem:[#allocation5] ss:$0 sm:$0xff] }
  0x19   : > { %239 = vmatpush.msra.mxu0 %v216_v11  ;;  %441 = vmatpush.msra.mxu3 %v216_v11 }
  0x1a   : > { %282 = vmatpush.msra.mxu1 %v259_v12  ;;  %323 = vmatpush.msra.mxu2 %v298_v15 }
  0x1b   : > { %240 = vmatpush.msra.mxu0 %v215_v16  ;;  %442 = vmatpush.msra.mxu3 %v215_v16 }
  0x1c   : > { %283 = vmatpush.msra.mxu1 %v258_v17  ;;  %324 = vmatpush.msra.mxu2 %v297_v18 }
  0x1d   : > { %241 = vmatpush.msra.mxu0 %v214_v19  ;;  %443 = vmatpush.msra.mxu3 %v214_v19 }
  0x1e   : > { %284 = vmatpush.msra.mxu1 %v257_v20  ;;  %v212_v21 = vld [vmem:[#allocation2] sm:$0xff] }
  0x1f   : > { %v254_v22 = vld [vmem:[#allocation2 + $0x1] sm:$0xff]  ;;  %428 = vmatmul.msk.f32.vlgmr.msra.gmra.mxu0 %vm207_vm1, %v212_v21  ;;  %v255_v25 = vld [vmem:[#allocation2 + $0x9] sm:$0xff] }
  0x20   : > { %v294_v23 = vld [vmem:[#allocation2 + $0x2] sm:$0xff]  ;;  %430 = vmatmul.msk.f32.vlgmr.msra.gmra.mxu1 %vm207_vm1, %v254_v22  ;;  %v295_v26 = vld [vmem:[#allocation2 + $0xa] sm:$0xff] }
  0x21   : > { %v213_v24 = vld [vmem:[#allocation2 + $0x8] sm:$0xff]  ;;  %432 = vmatmul.msk.f32.vlgmr.msra.gmra.mxu2 %vm207_vm1, %v294_v23 }
  0x22   : > { %429 = vmatmul.msk.f32.vlgmr.msra.gmra.mxu3 %vm207_vm1, %v213_v24 }
  0x28   : > { %431 = vmatmul.msk.f32.gmra.mxu1 %vm207_vm1, %v255_v25 }
  0x29   : > { %433 = vmatmul.msk.f32.gmra.mxu2 %vm207_vm1, %v295_v26 }
  0x9c   : > { %v243_v28 = vpop.f32.mrf.mxu0 }
  0x9d   : > { %v286_v29 = vpop.f32.mrf.mxu1  ;;  %v252_v30 = vadd.f32 %v476_v27, %v243_v28 }
  0x9f   : > { %v292_v31 = vadd.f32 %v286_v29, %v252_v30 }
  0xa4   : > { %v326_v32 = vpop.f32.mrf.mxu2 }
  0xa5   : > { %v246_v33 = vpop.f32.mrf.mxu3  ;;  %v332_v34 = vadd.f32 %v326_v32, %v292_v31  ;;  %v289_v36 = vpop.f32.mrf.mxu1 }
  0xa6   : > { %v253_v35 = vadd.f32 %v476_v27, %v246_v33 }
  0xa7   : > { %v334_v37 = vmax.f32 %v332_v34, 0.0 }
  0xa8   : > { %v293_v38 = vadd.f32 %v289_v36, %v253_v35 }
  0xa9   : > { %336 = vst [vmem:[%s202_s6] sm:$0xff] %v334_v37 }
  0xac   : > { %v329_v39 = vpop.f32.mrf.mxu2 }
  0xad   : > { %v333_v40 = vadd.f32 %v329_v39, %v293_v38 }
  0xaf   : > { %v335_v41 = vmax.f32 %v333_v40, 0.0 }
  0xb1   : > { %337 = vst [vmem:[%s202_s6 + $0x8] sm:$0xff] %v335_v41 }
  0xb2 PF: > { %s15_s12 = sadd.s32 1, %s551_s12  }
  0xb3   : > { %p12_p7 = scmp.ge.s32.totalorder %s15_s12, 4  }
  0xb5   :  { %14 = sbr.rel (!%p12_p7) target bundleno = 2 (0x2), region = 73 }
  0xba   :  { %359 = vsyncpa [#allocation4], 1 }
  0xbb   :  { %361 = vsyncpa [#allocation4 + $0x1], 1 }
  0xbc   :  { %362 = vsyncpa [#allocation6], 1 }

// kernel: hacnetv2_forward.10
= control target key start
LH: loop header
LB: loop body
LE: loop exit
PB: predicated region body
PF: predicated region fallthrough
CT: control target
= control target key end

     0   :  { %s486_s15 = smov 0   ;;  %s665_s0 = inlined_call_operand.vmem [shape: f32[2,8,128], index: 0, kind: input, shape index: {}]   ;;  %s666_s1 = inlined_call_operand.vmem [shape: f32[2,9,128], index: 1, kind: input, shape index: {}]   ;;  %s667_s2 = inlined_call_operand.vmem [shape: f32[3,128,128], index: 2, kind: input, shape index: {}]   ;;  %s668_s3 = inlined_call_operand.vmem [shape: f32[1,128], index: 3, kind: input, shape index: {}]   ;;  %s669_s4 = inlined_call_operand.vmem [shape: f32[2,8,128], index: 4, kind: output, shape index: {}]  }
   0x1 LB: > { %s400_s16 = sadd.s32 4294967295, %s459_s15   ;;  %p404_p0 = scmp.ge.s32.totalorder %s459_s15, 1  ;;  %s459_s15 = sphi %s486_s15, %s14_s15  }
   0x2   : > { %p171_p1 = scmp.lt.s32.totalorder %s459_s15, 3 }
   0x4   : > { %p172_p2 = pnand %p404_p0, %p171_p1 }
   0x5   : > { %p200_p3 = scmp.lt.s32.totalorder (!%p172_p2), %s400_s16, 1 }
   0x6   : > { %175 = sbr.rel (%p172_p2) target bundleno = 180 (0xb4), region = 36 }
   0xb   : > { %v440_v0 = vld [vmem:[%s667_s2 + $0x178] sm:$0xff]  ;;  %v439_v2 = vld [vmem:[%s667_s2 + $0x170] sm:$0xff]  ;;  %v438_v5 = vld [vmem:[%s667_s2 + $0x168] sm:$0xff]  ;;  %s671_s16 = smov (!%p200_p3, %s400_s16), 1 }
   0xc   : > { %v230_v1 = vld [vmem:[%s667_s2 + $0x78] sm:$0xff]  ;;  %312 = vmatpush.msra.mxu2 %v440_v0  ;;  %v229_v3 = vld [vmem:[%s667_s2 + $0x70] sm:$0xff]  ;;  %v228_v6 = vld [vmem:[%s667_s2 + $0x68] sm:$0xff]  ;;  %s443_s23 = sshll.u32 %s671_s16, 4  ;;  %s405_s30 = sshll.u32 %s671_s16, 3 }
   0xd   : > { %231 = vmatpush.msra.mxu0 %v230_v1  ;;  %v424_v4 = vld [vmem:[%s667_s2 + $0xf8] sm:$0xff]  ;;  %v423_v7 = vld [vmem:[%s667_s2 + $0xf0] sm:$0xff]  ;;  %v422_v8 = vld [vmem:[%s667_s2 + $0xe8] sm:$0xff]  ;;  %s208_s11 = scalar_lea.vmem %s666_s1, %s443_s23  ;;  %s203_s22 = scalar_lea.vmem %s665_s0, %s405_s30 }
   0xe   : > { %273 = vmatpush.msra.mxu1 %v424_v4  ;;  %313 = vmatpush.msra.mxu2 %v439_v2  ;;  %v437_v9 = vld [vmem:[%s667_s2 + $0x160] sm:$0xff]  ;;  %v436_v12 = vld [vmem:[%s667_s2 + $0x158] sm:$0xff]  ;;  %v435_v15 = vld [vmem:[%s667_s2 + $0x150] sm:$0xff]  ;;  %s212_s29 = scalar_lea.vmem %s669_s4, %s405_s30 }
   0xf   : > { %232 = vmatpush.msra.mxu0 %v229_v3  ;;  %v227_v10 = vld [vmem:[%s667_s2 + $0x60] sm:$0xff]  ;;  %v226_v13 = vld [vmem:[%s667_s2 + $0x58] sm:$0xff]  ;;  %v225_v16 = vld [vmem:[%s667_s2 + $0x50] sm:$0xff] }
  0x10   : > { %274 = vmatpush.msra.mxu1 %v423_v7  ;;  %314 = vmatpush.msra.mxu2 %v438_v5  ;;  %v421_v11 = vld [vmem:[%s667_s2 + $0xe0] sm:$0xff]  ;;  %v420_v14 = vld [vmem:[%s667_s2 + $0xd8] sm:$0xff]  ;;  %v419_v17 = vld [vmem:[%s667_s2 + $0xd0] sm:$0xff] }
  0x11   : > { %233 = vmatpush.msra.mxu0 %v228_v6  ;;  %v434_v18 = vld [vmem:[%s667_s2 + $0x148] sm:$0xff]  ;;  %v433_v21 = vld [vmem:[%s667_s2 + $0x140] sm:$0xff]  ;;  %v432_v24 = vld [vmem:[%s667_s2 + $0x138] sm:$0xff] }
  0x12   : > { %275 = vmatpush.msra.mxu1 %v422_v8  ;;  %315 = vmatpush.msra.mxu2 %v437_v9  ;;  %v224_v19 = vld [vmem:[%s667_s2 + $0x48] sm:$0xff]  ;;  %v223_v22 = vld [vmem:[%s667_s2 + $0x40] sm:$0xff]  ;;  %v222_v25 = vld [vmem:[%s667_s2 + $0x38] sm:$0xff] }
  0x13   : > { %234 = vmatpush.msra.mxu0 %v227_v10  ;;  %v418_v20 = vld [vmem:[%s667_s2 + $0xc8] sm:$0xff]  ;;  %v417_v23 = vld [vmem:[%s667_s2 + $0xc0] sm:$0xff]  ;;  %v416_v26 = vld [vmem:[%s667_s2 + $0xb8] sm:$0xff] }
  0x14   : > { %276 = vmatpush.msra.mxu1 %v421_v11  ;;  %316 = vmatpush.msra.mxu2 %v436_v12  ;;  %v431_v27 = vld [vmem:[%s667_s2 + $0x130] sm:$0xff]  ;;  %v430_v30 = vld [vmem:[%s667_s2 + $0x128] sm:$0xff]  ;;  %v429_v33 = vld [vmem:[%s667_s2 + $0x120] sm:$0xff] }
  0x15   : > { %235 = vmatpush.msra.mxu0 %v226_v13  ;;  %v221_v28 = vld [vmem:[%s667_s2 + $0x30] sm:$0xff]  ;;  %v220_v31 = vld [vmem:[%s667_s2 + $0x28] sm:$0xff]  ;;  %v219_v34 = vld [vmem:[%s667_s2 + $0x20] sm:$0xff] }
  0x16   : > { %277 = vmatpush.msra.mxu1 %v420_v14  ;;  %317 = vmatpush.msra.mxu2 %v435_v15  ;;  %v415_v29 = vld [vmem:[%s667_s2 + $0xb0] sm:$0xff]  ;;  %v414_v32 = vld [vmem:[%s667_s2 + $0xa8] sm:$0xff]  ;;  %v413_v35 = vld [vmem:[%s667_s2 + $0xa0] sm:$0xff] }
  0x17   : > { %236 = vmatpush.msra.mxu0 %v225_v16  ;;  %v428_v36 = vld [vmem:[%s667_s2 + $0x118] sm:$0xff]  ;;  %v427_v39 = vld [vmem:[%s667_s2 + $0x110] sm:$0xff]  ;;  %v426_v42 = vld [vmem:[%s667_s2 + $0x108] sm:$0xff] }
  0x18   : > { %278 = vmatpush.msra.mxu1 %v419_v17  ;;  %318 = vmatpush.msra.mxu2 %v434_v18  ;;  %v218_v37 = vld [vmem:[%s667_s2 + $0x18] sm:$0xff]  ;;  %v217_v40 = vld [vmem:[%s667_s2 + $0x10] sm:$0xff]  ;;  %v216_v43 = vld [vmem:[%s667_s2 + $0x8] sm:$0xff] }
  0x19   : > { %237 = vmatpush.msra.mxu0 %v224_v19  ;;  %v412_v38 = vld [vmem:[%s667_s2 + $0x98] sm:$0xff]  ;;  %v411_v41 = vld [vmem:[%s667_s2 + $0x90] sm:$0xff]  ;;  %v410_v44 = vld [vmem:[%s667_s2 + $0x88] sm:$0xff] }
  0x1a   : > { %279 = vmatpush.msra.mxu1 %v418_v20  ;;  %319 = vmatpush.msra.mxu2 %v433_v21  ;;  %v425_v45 = vld [vmem:[%s667_s2 + $0x100] sm:$0xff] }
  0x1b   : > { %238 = vmatpush.msra.mxu0 %v223_v22  ;;  %v215_v46 = vld [vmem:[%s667_s2] sm:$0xff] }
  0x1c   : > { %280 = vmatpush.msra.mxu1 %v417_v23  ;;  %320 = vmatpush.msra.mxu2 %v432_v24  ;;  %v294_v47 = vld [vmem:[%s208_s11 + $0x1] sm:$0xff]  ;;  %v452_v51 = vld [vmem:[%s668_s3] ss:$0 sm:$0xff] }
  0x1d   : > { %239 = vmatpush.msra.mxu0 %v222_v25  ;;  %v214_v48 = vld [vmem:[%s208_s11] sm:$0xff] }
  0x1e   : > { %281 = vmatpush.msra.mxu1 %v416_v26  ;;  %321 = vmatpush.msra.mxu2 %v431_v27  ;;  %v409_v49 = vld [vmem:[%s667_s2 + $0x80] sm:$0xff] }
  0x1f   : > { %240 = vmatpush.msra.mxu0 %v221_v28  ;;  %v255_v50 = vld [vmem:[%s203_s22] sm:$0xff] }
  0x20   : > { %282 = vmatpush.msra.mxu1 %v415_v29  ;;  %322 = vmatpush.msra.mxu2 %v430_v30 }
  0x21   : > { %241 = vmatpush.msra.mxu0 %v220_v31 }
  0x22   : > { %283 = vmatpush.msra.mxu1 %v414_v32  ;;  %323 = vmatpush.msra.mxu2 %v429_v33 }
  0x23   : > { %242 = vmatpush.msra.mxu0 %v219_v34 }
  0x24   : > { %284 = vmatpush.msra.mxu1 %v413_v35  ;;  %324 = vmatpush.msra.mxu2 %v428_v36 }
  0x25   : > { %243 = vmatpush.msra.mxu0 %v218_v37 }
  0x26   : > { %285 = vmatpush.msra.mxu1 %v412_v38  ;;  %325 = vmatpush.msra.mxu2 %v427_v39 }
  0x27   : > { %244 = vmatpush.msra.mxu0 %v217_v40 }
  0x28   : > { %286 = vmatpush.msra.mxu1 %v411_v41  ;;  %326 = vmatpush.msra.mxu2 %v426_v42 }
  0x29   : > { %245 = vmatpush.msra.mxu0 %v216_v43 }
  0x2a   : > { %287 = vmatpush.msra.mxu1 %v410_v44  ;;  %327 = vmatpush.msra.mxu2 %v425_v45 }
  0x2b   : > { %246 = vmatpush.msra.mxu0 %v215_v46  ;;  %328 = vmatmul.f32.vlgmr.msra.gmra.mxu2 %v294_v47 }
  0x2c   : > { %247 = vmatmul.f32.vlgmr.msra.gmra.mxu0 %v214_v48  ;;  %288 = vmatpush.msra.mxu1 %v409_v49 }
  0x2d   : > { %289 = vmatmul.f32.vlgmr.msra.gmra.mxu1 %v255_v50 }
  0xa9   : > { %v248_v52 = vpop.f32.mrf.mxu0 }
  0xaa   : > { %v254_v53 = vadd.f32 %v452_v51, %v248_v52  ;;  %v290_v54 = vpop.f32.mrf.mxu1 }
  0xac   : > { %v293_v55 = vadd.f32 %v290_v54, %v254_v53 }
  0xae   : > { %v329_v56 = vpop.f32.mrf.mxu2 }
  0xaf   : > { %v332_v57 = vadd.f32 %v329_v56, %v293_v55 }
  0xb1   : > { %v333_v58 = vmax.f32 %v332_v57, 0.0 }
  0xb3   : > { %334 = vst [vmem:[%s212_s29] sm:$0xff] %v333_v58 }
  0xb4 PF: > { %s14_s15 = sadd.s32 1, %s459_s15  }
  0xb5   : > { %p11_p4 = scmp.ge.s32.totalorder %s14_s15, 4  }
  0xb7   :  { %13 = sbr.rel (!%p11_p4) target bundleno = 1 (0x1), region = 71 }

// kernel: hacnetv2_forward.11
= control target key start
LH: loop header
LB: loop body
LE: loop exit
PB: predicated region body
PF: predicated region fallthrough
CT: control target
= control target key end

     0   :  { %15 = vsyncpa [#allocation4], 0  ;;  %s1261_s0 = inlined_call_operand.vmem [shape: f32[2,8,128], index: 0, kind: input, shape index: {}]   ;;  %s1262_s1 = inlined_call_operand.hbm [shape: f32[5,128,128], index: 1, kind: input, shape index: {}]   ;;  %s1263_s2 = inlined_call_operand.vmem [shape: f32[1,128], index: 2, kind: input, shape index: {}]   ;;  %s1264_s3 = inlined_call_operand.vmem [shape: f32[128,16], index: 3, kind: input, shape index: {}]   ;;  %s1265_s4 = inlined_call_operand.vmem [shape: f32[1,16], index: 4, kind: input, shape index: {}]   ;;  %s1266_s5 = inlined_call_operand.vmem [shape: f32[16,128], index: 5, kind: input, shape index: {}]   ;;  %s1267_s6 = inlined_call_operand.hbm [shape: f32[4,128,128], index: 6, kind: input, shape index: {}]   ;;  %s1268_s7 = inlined_call_operand.vmem [shape: f32[1,128], index: 7, kind: input, shape index: {}]   ;;  %s1269_s8 = inlined_call_operand.vmem [shape: f32[2,8,128], index: 8, kind: output, shape index: {0}]   ;;  %s1270_s9 = inlined_call_operand.vmem [shape: f32[2,2,8,128], index: 9, kind: output, shape index: {1}]  }
   0x1   :  { %16 = vsyncpa [#allocation6], 0  ;;  %s1129_s30 = smov 0  }
   0x2 LB: > { %s263_s12 = sshll.u32 %s1262_s1, 4  ;;  %s1138_s13 = sadd.s32 4294967295, %s1072_s30   ;;  %s1072_s30 = sphi %s1129_s30, %s22_s30   ;;  %s264_s12 = int_to_ptr.hbm [resolvable:$true] %s263_s12 }
   0x3   : > { %p943_p0 = scmp.ge.s32.totalorder %s1072_s30, 1  ;;  %p252_p1 = scmp.lt.s32.totalorder %s1072_s30, 3 }
   0x4   : > { %p975_p2 = scmp.eq.s32.totalorder %s1138_s13, 0  ;;  %s1074_s15 = smov [#allocation3]  }
   0x5   : > { %p1143_p3 = pnand %p943_p0, %p252_p1  ;;  %s265_s16 = sshll.u32 %s1074_s15, 4  ;;  %s266_s16 = int_to_ptr.vmem [resolvable:$true] %s265_s16 }
   0x6   : > { %s289_s19 = sshll.u32 %s1267_s6, 4  ;;  %s1075_s20 = smov [#allocation5]   ;;  %s290_s19 = int_to_ptr.hbm [resolvable:$true] %s289_s19 }
   0x7   : > { %p968_p4 = pneg %p1143_p3  ;;  %s291_s21 = sshll.u32 %s1075_s20, 4  ;;  %s292_s21 = int_to_ptr.vmem [resolvable:$true] %s291_s21 }
   0x8   : > { %s1076_s22 = smov 128   ;;  %s1077_s23 = smov 8  }
   0x9   : > { %p969_p5 = pnand %p975_p2, %p968_p4  ;;  %317 = sbr.rel (%p1143_p3) target bundleno = 665 (0x299), region = 52 }
   0xb   : > { %971 = dma.hbm_to_vmem [thread:$0]  (!%p969_p5), %s264_s12, 10240, %s266_s16, [#allocation4], %s1076_s22, %s1076_s22, %s1077_s23  }
   0xc   : > { %974 = dma.hbm_to_vmem [thread:$0]  (!%p969_p5), %s290_s19, 8192, %s292_s21, [#allocation6], %s1076_s22, %s1076_s22, %s1077_s23  }
   0xe   : > { %1063 = dma.done.wait (%p975_p2), [#allocation4], 10240  }
   0xf   : > { %1065 = vsyncadd (%p975_p2), [#allocation4], 4294957056 }
  0x10   : > { %1067 = dma.done.wait (%p975_p2), [#allocation6], 8192  }
  0x11   : > { %1069 = vsyncadd (%p975_p2), [#allocation6], 4294959104  ;;  %v396_v0 = vld [vmem:[#allocation3 + $0x78] sm:$0xff]  ;;  %v395_v1 = vld [vmem:[#allocation3 + $0x70] sm:$0xff]  ;;  %p362_p6 = scmp.lt.s32.totalorder %s1138_s13, 1  ;;  %v1078_v31 = vmov 0.0  }
  0x12   : > { %397 = vmatpush.msra.mxu0 %v396_v0  ;;  %v394_v2 = vld [vmem:[#allocation3 + $0x68] sm:$0xff]  ;;  %v477_v3 = vld [vmem:[#allocation3 + $0x178] sm:$0xff]  ;;  %v393_v4 = vld [vmem:[#allocation3 + $0x60] sm:$0xff]  ;;  %376 = vst [vmem:[#allocation2] sm:$0x7] %v1078_v31  ;;  %vm642_vm3 = vcmask 130048  }
  0x13   : > { %478 = vmatpush.msra.mxu2 %v477_v3  ;;  %v476_v5 = vld [vmem:[#allocation3 + $0x170] sm:$0xff]  ;;  %v516_v6 = vld [vmem:[#allocation3 + $0x1f8] sm:$0xff]  ;;  %v475_v8 = vld [vmem:[#allocation3 + $0x168] sm:$0xff]  ;;  %s1273_s13 = smov (!%p362_p6, %s1138_s13), 1  ;;  %378 = vst [vmem:[#allocation2 + $0xb] sm:$0x7] %v1078_v31 }
  0x14   : > { %398 = vmatpush.msra.mxu0 %v395_v1  ;;  %517 = vmatpush.msra.mxu3 %v516_v6  ;;  %v438_v7 = vld [vmem:[#allocation3 + $0xf8] sm:$0xff]  ;;  %v515_v10 = vld [vmem:[#allocation3 + $0x1f0] sm:$0xff]  ;;  %v474_v12 = vld [vmem:[#allocation3 + $0x160] sm:$0xff]  ;;  %s950_s24 = sshll.u32 %s1273_s13, 3  ;;  %s959_s18 = sshll.u32 %s1273_s13, 4 }
  0x15   : > { %v392_v9 = vld [vmem:[#allocation3 + $0x58] sm:$0xff]  ;;  %479 = vmatpush.msra.mxu2 %v476_v5  ;;  %439 = vmatpush.msra.mxu1 %v438_v7  ;;  %v437_v11 = vld [vmem:[#allocation3 + $0xf0] sm:$0xff]  ;;  %v514_v13 = vld [vmem:[#allocation3 + $0x1e8] sm:$0xff]  ;;  %s365_s27 = scalar_lea.vmem %s1261_s0, %s950_s24  ;;  %s369_s15 = scalar_lea.vmem %s1269_s8, %s950_s24 }
  0x16   : > { %399 = vmatpush.msra.mxu0 %v394_v2  ;;  %518 = vmatpush.msra.mxu3 %v515_v10  ;;  %v391_v14 = vld [vmem:[#allocation3 + $0x50] sm:$0xff]  ;;  %v436_v15 = vld [vmem:[#allocation3 + $0xe8] sm:$0xff]  ;;  %v513_v16 = vld [vmem:[#allocation3 + $0x1e0] sm:$0xff]  ;;  %s374_s20 = scalar_lea.vmem %s1270_s9, %s959_s18 }
  0x17   : > { %480 = vmatpush.msra.mxu2 %v475_v8  ;;  %440 = vmatpush.msra.mxu1 %v437_v11  ;;  %v473_v17 = vld [vmem:[#allocation3 + $0x158] sm:$0xff]  ;;  %v435_v18 = vld [vmem:[#allocation3 + $0xe0] sm:$0xff]  ;;  %v390_v19 = vld [vmem:[#allocation3 + $0x48] sm:$0xff] }
  0x18   : > { %400 = vmatpush.msra.mxu0 %v393_v4  ;;  %519 = vmatpush.msra.mxu3 %v514_v13  ;;  %v512_v20 = vld [vmem:[#allocation3 + $0x1d8] sm:$0xff]  ;;  %v472_v21 = vld [vmem:[#allocation3 + $0x150] sm:$0xff]  ;;  %v389_v23 = vld [vmem:[#allocation3 + $0x40] sm:$0xff] }
  0x19   : > { %481 = vmatpush.msra.mxu2 %v474_v12  ;;  %441 = vmatpush.msra.mxu1 %v436_v15  ;;  %v434_v22 = vld [vmem:[#allocation3 + $0xd8] sm:$0xff]  ;;  %v511_v24 = vld [vmem:[#allocation3 + $0x1d0] sm:$0xff]  ;;  %v471_v25 = vld [vmem:[#allocation3 + $0x148] sm:$0xff] }
  0x1a   : > { %401 = vmatpush.msra.mxu0 %v392_v9  ;;  %520 = vmatpush.msra.mxu3 %v513_v16  ;;  %v433_v26 = vld [vmem:[#allocation3 + $0xd0] sm:$0xff]  ;;  %v388_v27 = vld [vmem:[#allocation3 + $0x38] sm:$0xff]  ;;  %v510_v28 = vld [vmem:[#allocation3 + $0x1c8] sm:$0xff] }
  0x1b   : > { %482 = vmatpush.msra.mxu2 %v473_v17  ;;  %442 = vmatpush.msra.mxu1 %v435_v18  ;;  %v470_v29 = vld [vmem:[#allocation3 + $0x140] sm:$0xff]  ;;  %v432_v30 = vld [vmem:[#allocation3 + $0xc8] sm:$0xff]  ;;  %v387_v32 = vld [vmem:[#allocation3 + $0x30] sm:$0xff] }
  0x1c   : > { %402 = vmatpush.msra.mxu0 %v391_v14  ;;  %521 = vmatpush.msra.mxu3 %v512_v20  ;;  %v509_v33 = vld [vmem:[#allocation3 + $0x1c0] sm:$0xff]  ;;  %v469_v34 = vld [vmem:[#allocation3 + $0x138] sm:$0xff]  ;;  %v386_v36 = vld [vmem:[#allocation3 + $0x28] sm:$0xff] }
  0x1d   : > { %483 = vmatpush.msra.mxu2 %v472_v21  ;;  %443 = vmatpush.msra.mxu1 %v434_v22  ;;  %v431_v35 = vld [vmem:[#allocation3 + $0xc0] sm:$0xff]  ;;  %v508_v37 = vld [vmem:[#allocation3 + $0x1b8] sm:$0xff]  ;;  %v468_v38 = vld [vmem:[#allocation3 + $0x130] sm:$0xff] }
  0x1e   : > { %403 = vmatpush.msra.mxu0 %v390_v19  ;;  %522 = vmatpush.msra.mxu3 %v511_v24  ;;  %v430_v39 = vld [vmem:[#allocation3 + $0xb8] sm:$0xff]  ;;  %v385_v40 = vld [vmem:[#allocation3 + $0x20] sm:$0xff]  ;;  %v507_v41 = vld [vmem:[#allocation3 + $0x1b0] sm:$0xff] }
  0x1f   : > { %484 = vmatpush.msra.mxu2 %v471_v25  ;;  %444 = vmatpush.msra.mxu1 %v433_v26  ;;  %v467_v42 = vld [vmem:[#allocation3 + $0x128] sm:$0xff]  ;;  %v429_v43 = vld [vmem:[#allocation3 + $0xb0] sm:$0xff]  ;;  %v384_v44 = vld [vmem:[#allocation3 + $0x18] sm:$0xff] }
  0x20   : > { %404 = vmatpush.msra.mxu0 %v389_v23  ;;  %523 = vmatpush.msra.mxu3 %v510_v28  ;;  %v506_v45 = vld [vmem:[#allocation3 + $0x1a8] sm:$0xff]  ;;  %v466_v46 = vld [vmem:[#allocation3 + $0x120] sm:$0xff]  ;;  %v383_v48 = vld [vmem:[#allocation3 + $0x10] sm:$0xff] }
  0x21   : > { %485 = vmatpush.msra.mxu2 %v470_v29  ;;  %445 = vmatpush.msra.mxu1 %v432_v30  ;;  %v428_v47 = vld [vmem:[#allocation3 + $0xa8] sm:$0xff]  ;;  %v505_v49 = vld [vmem:[#allocation3 + $0x1a0] sm:$0xff]  ;;  %v1176_v50 = vld [vmem:[%s365_s27] sm:$0xff] }
  0x22   : > { %405 = vmatpush.msra.mxu0 %v388_v27  ;;  %524 = vmatpush.msra.mxu3 %v509_v33  ;;  %v465_v51 = vld [vmem:[#allocation3 + $0x118] sm:$0xff]  ;;  %v427_v52 = vld [vmem:[#allocation3 + $0xa0] sm:$0xff]  ;;  %377 = vst [vmem:[#allocation2 + $0x3] sm:$0xff] %v1176_v50  ;;  %v382_v53 = vld [vmem:[#allocation3 + $0x8] sm:$0xff] }
  0x23   : > { %486 = vmatpush.msra.mxu2 %v469_v34  ;;  %446 = vmatpush.msra.mxu1 %v431_v35  ;;  %v504_v54 = vld [vmem:[#allocation3 + $0x198] sm:$0xff]  ;;  %v464_v55 = vld [vmem:[#allocation3 + $0x110] sm:$0xff]  ;;  %v381_v57 = vld [vmem:[#allocation3] sm:$0xff] }
  0x24   : > { %406 = vmatpush.msra.mxu0 %v387_v32  ;;  %525 = vmatpush.msra.mxu3 %v508_v37  ;;  %v426_v56 = vld [vmem:[#allocation3 + $0x98] sm:$0xff]  ;;  %v503_v58 = vld [vmem:[#allocation3 + $0x190] sm:$0xff]  ;;  %v463_v60 = vld [vmem:[#allocation3 + $0x108] sm:$0xff] }
  0x25   : > { %487 = vmatpush.msra.mxu2 %v468_v38  ;;  %447 = vmatpush.msra.mxu1 %v430_v39  ;;  %v555_v59 = vld [vmem:[#allocation3 + $0x278] sm:$0xff]  ;;  %v425_v61 = vld [vmem:[#allocation3 + $0x90] sm:$0xff]  ;;  %v502_v62 = vld [vmem:[#allocation3 + $0x188] sm:$0xff] }
  0x26   : > { %407 = vmatpush.msra.mxu0 %v386_v36  ;;  %526 = vmatpush.msra.mxu3 %v507_v41  ;;  %v554_v63 = vld [vmem:[#allocation3 + $0x270] sm:$0xff]  ;;  %v462_v0 = vld [vmem:[#allocation3 + $0x100] sm:$0xff]  ;;  %v424_v1 = vld [vmem:[#allocation3 + $0x88] sm:$0xff] }
  0x27   : > { %488 = vmatpush.msra.mxu2 %v467_v42  ;;  %448 = vmatpush.msra.mxu1 %v429_v43  ;;  %v553_v2 = vld [vmem:[#allocation3 + $0x268] sm:$0xff]  ;;  %v501_v3 = vld [vmem:[#allocation3 + $0x180] sm:$0xff]  ;;  %v551_v9 = vld [vmem:[#allocation3 + $0x258] sm:$0xff] }
  0x28   : > { %408 = vmatpush.msra.mxu0 %v385_v40  ;;  %527 = vmatpush.msra.mxu3 %v506_v45  ;;  %v552_v6 = vld [vmem:[#allocation3 + $0x260] sm:$0xff]  ;;  %v599_v10 = vld [vmem:[%s1264_s3 + $0x78] sm:$0xff]  ;;  %v550_v11 = vld [vmem:[#allocation3 + $0x250] sm:$0xff] }
  0x29   : > { %489 = vmatpush.msra.mxu2 %v466_v46  ;;  %449 = vmatpush.msra.mxu1 %v428_v47  ;;  %v380_v4 = vld [vmem:[#allocation2] sm:$0xff]  ;;  %v423_v7 = vld [vmem:[#allocation3 + $0x80] sm:$0xff]  ;;  %v549_v13 = vld [vmem:[#allocation3 + $0x248] sm:$0xff] }
  0x2a   : > { %409 = vmatpush.msra.mxu0 %v384_v44  ;;  %528 = vmatpush.msra.mxu3 %v505_v49  ;;  %v499_v5 = vld [vmem:[#allocation2 + $0x4] sm:$0xff]  ;;  %v598_v12 = vld [vmem:[%s1264_s3 + $0x70] sm:$0xff]  ;;  %v545_v18 = vld [vmem:[#allocation3 + $0x228] sm:$0xff] }
  0x2b   : > { %490 = vmatpush.msra.mxu2 %v465_v51  ;;  %450 = vmatpush.msra.mxu1 %v427_v52  ;;  %v421_v8 = vld [vmem:[#allocation2 + $0x2] sm:$0xff]  ;;  %v548_v15 = vld [vmem:[#allocation3 + $0x240] sm:$0xff]  ;;  %v541_v22 = vld [vmem:[#allocation3 + $0x208] sm:$0xff] }
  0x2c   : > { %410 = vmatpush.msra.mxu0 %v383_v48  ;;  %529 = vmatpush.msra.mxu3 %v504_v54  ;;  %v597_v14 = vld [vmem:[%s1264_s3 + $0x68] sm:$0xff]  ;;  %v546_v17 = vld [vmem:[#allocation3 + $0x230] sm:$0xff]  ;;  %v544_v19 = vld [vmem:[#allocation3 + $0x220] sm:$0xff] }
  0x2d   : > { %491 = vmatpush.msra.mxu2 %v464_v55  ;;  %451 = vmatpush.msra.mxu1 %v426_v56  ;;  %v547_v16 = vld [vmem:[#allocation3 + $0x238] sm:$0xff]  ;;  %v542_v21 = vld [vmem:[#allocation3 + $0x210] sm:$0xff]  ;;  %v540_v23 = vld [vmem:[#allocation3 + $0x200] sm:$0xff] }
  0x2e   : > { %411 = vmatpush.msra.mxu0 %v382_v53  ;;  %530 = vmatpush.msra.mxu3 %v503_v58  ;;  %v543_v20 = vld [vmem:[#allocation3 + $0x218] sm:$0xff]  ;;  %v596_v25 = vld [vmem:[%s1264_s3 + $0x60] sm:$0xff]  ;;  %v595_v26 = vld [vmem:[%s1264_s3 + $0x58] sm:$0xff] }
  0x2f   : > { %492 = vmatpush.msra.mxu2 %v463_v60  ;;  %452 = vmatpush.msra.mxu1 %v425_v61  ;;  %v538_v24 = vld [vmem:[#allocation2 + $0x6] sm:$0xff]  ;;  %v594_v27 = vld [vmem:[%s1264_s3 + $0x50] sm:$0xff]  ;;  %v591_v30 = vld [vmem:[%s1264_s3 + $0x38] sm:$0xff] }
  0x30   : > { %412 = vmatpush.msra.mxu0 %v381_v57  ;;  %531 = vmatpush.msra.mxu3 %v502_v62  ;;  %v593_v28 = vld [vmem:[%s1264_s3 + $0x48] sm:$0xff]  ;;  %v592_v29 = vld [vmem:[%s1264_s3 + $0x40] sm:$0xff]  ;;  %v590_v31 = vld [vmem:[%s1264_s3 + $0x30] sm:$0xff] }
  0x31   : > { %493 = vmatpush.msra.mxu2 %v462_v0  ;;  %453 = vmatpush.msra.mxu1 %v424_v1  ;;  %v589_v32 = vld [vmem:[%s1264_s3 + $0x28] sm:$0xff]  ;;  %v588_v33 = vld [vmem:[%s1264_s3 + $0x20] sm:$0xff]  ;;  %v587_v34 = vld [vmem:[%s1264_s3 + $0x18] sm:$0xff] }
  0x32   : > { %556 = vmatpush.msrb.mxu0 %v555_v59  ;;  %494 = vmatmul.f32.vlgmr.msra.gmra.mxu2 %v1176_v50  ;;  %v586_v35 = vld [vmem:[%s1264_s3 + $0x10] sm:$0xff]  ;;  %v585_v36 = vld [vmem:[%s1264_s3 + $0x8] sm:$0xff]  ;;  %v992_v37 = vld [vmem:[%s1263_s2] ss:$0 sm:$0xff] }
  0x33   : > { %532 = vmatpush.msra.mxu3 %v501_v3  ;;  %413 = vmatmul.f32.vlgmr.msra.gmra.mxu0 %v380_v4  ;;  %v584_v38 = vld [vmem:[%s1264_s3] sm:$0xff]  ;;  %v641_v57 = vld [vmem:[%s1266_s5 + $0x8] sm:$0xff]  ;;  %v767_v3 = vld [vmem:[#allocation5 + $0x168] sm:$0xff] }
  0x34   : > { %557 = vmatpush.msrb.mxu0 %v554_v63  ;;  %533 = vmatmul.f32.vlgmr.msra.gmra.mxu3 %v499_v5  ;;  %v640_v58 = vld [vmem:[%s1266_s5] sm:$0xff]  ;;  %v730_v60 = vld [vmem:[#allocation5 + $0xf8] sm:$0xff] }
  0x35   : > { %454 = vmatpush.msra.mxu1 %v423_v7  ;;  %660 = vmatpush.msrb.mxu2 %v641_v57  ;;  %v600_v59 = vld [vmem:[%s1265_s4] sm:$0x1]  ;;  %v769_v61 = vld [vmem:[#allocation5 + $0x178] sm:$0xff]  ;;  %v727_v7 = vld [vmem:[#allocation5 + $0xe0] sm:$0xff] }
  0x36   : > { %558 = vmatpush.msrb.mxu0 %v553_v2  ;;  %455 = vmatmul.f32.vlgmr.msra.gmra.mxu1 %v421_v8  ;;  %v729_v62 = vld [vmem:[#allocation5 + $0xf0] sm:$0xff]  ;;  %v728_v2 = vld [vmem:[#allocation5 + $0xe8] sm:$0xff]  ;;  %v689_v4 = vld [vmem:[#allocation5 + $0x78] sm:$0xff] }
  0x37   : > { %601 = vmatpush.msrb.mxu1 %v599_v10  ;;  %661 = vmatpush.msrb.mxu2 %v640_v58  ;;  %v768_v0 = vld [vmem:[#allocation5 + $0x170] sm:$0xff]  ;;  %v807_v5 = vld [vmem:[#allocation5 + $0x1f8] sm:$0xff]  ;;  %v766_v8 = vld [vmem:[#allocation5 + $0x160] sm:$0xff] }
  0x38   : > { %559 = vmatpush.msrb.mxu0 %v552_v6  ;;  %690 = vmatpush.msrb.mxu3 %v689_v4  ;;  %v806_v10 = vld [vmem:[#allocation5 + $0x1f0] sm:$0xff]  ;;  %v796_v4 = vld [vmem:[#allocation5 + $0x1a0] sm:$0xff] }
  0x39   : > { %602 = vmatpush.msrb.mxu1 %v598_v12  ;;  %731 = vmatpush.msra.mxu2 %v730_v60  ;;  %v726_v12 = vld [vmem:[#allocation5 + $0xd8] sm:$0xff]  ;;  %v680_v57 = vld [vmem:[#allocation5 + $0x30] sm:$0xff] }
  0x3a   : > { %560 = vmatpush.msrb.mxu0 %v551_v9  ;;  %v688_v9 = vld [vmem:[#allocation5 + $0x70] sm:$0xff] }
  0x3b   : > { %603 = vmatpush.msrb.mxu1 %v597_v14  ;;  %732 = vmatpush.msra.mxu2 %v729_v62  ;;  %v805_v14 = vld [vmem:[#allocation5 + $0x1e8] sm:$0xff]  ;;  %v717_v58 = vld [vmem:[#allocation5 + $0x90] sm:$0xff] }
  0x3c   : > { %561 = vmatpush.msrb.mxu0 %v550_v11  ;;  %v687_v11 = vld [vmem:[#allocation5 + $0x68] sm:$0xff]  ;;  %691 = vmatpush.msrb.mxu3 %v688_v9  ;;  %v798_v60 = vld [vmem:[#allocation5 + $0x1b0] sm:$0xff] }
  0x3d   : > { %604 = vmatpush.msrb.mxu1 %v596_v25  ;;  %733 = vmatpush.msra.mxu2 %v728_v2  ;;  %v716_v62 = vld [vmem:[#allocation5 + $0x88] sm:$0xff]  ;;  %v715_v2 = vld [vmem:[#allocation5 + $0x80] sm:$0xff] }
  0x3e   : > { %562 = vmatpush.msrb.mxu0 %v549_v13  ;;  %v765_v13 = vld [vmem:[#allocation5 + $0x158] sm:$0xff]  ;;  %692 = vmatpush.msrb.mxu3 %v687_v11  ;;  %v675_v9 = vld [vmem:[#allocation5 + $0x8] sm:$0xff]  ;;  %v674_v11 = vld [vmem:[#allocation5] sm:$0xff] }
  0x3f   : > { %605 = vmatpush.msrb.mxu1 %v595_v26  ;;  %734 = vmatpush.msra.mxu2 %v727_v7  ;;  %v723_v26 = vld [vmem:[#allocation5 + $0xc0] sm:$0xff]  ;;  %v676_v7 = vld [vmem:[#allocation5 + $0x10] sm:$0xff] }
  0x40   : > { %563 = vmatpush.msrb.mxu0 %v548_v15  ;;  %v686_v15 = vld [vmem:[#allocation5 + $0x60] sm:$0xff] }
  0x41   : > { %606 = vmatpush.msrb.mxu1 %v594_v27  ;;  %735 = vmatpush.msra.mxu2 %v726_v12  ;;  %v762_v27 = vld [vmem:[#allocation5 + $0x140] sm:$0xff] }
  0x42   : > { %564 = vmatpush.msrb.mxu0 %v547_v16  ;;  %v804_v16 = vld [vmem:[#allocation5 + $0x1e0] sm:$0xff]  ;;  %693 = vmatpush.msrb.mxu3 %v686_v15 }
  0x43   : > { %607 = vmatpush.msrb.mxu1 %v593_v28  ;;  %v792_v12 = vld [vmem:[#allocation5 + $0x180] sm:$0xff] }
  0x44   : > { %565 = vmatpush.msrb.mxu0 %v546_v17  ;;  %v725_v17 = vld [vmem:[#allocation5 + $0xd0] sm:$0xff] }
  0x45   : > { %608 = vmatpush.msrb.mxu1 %v592_v29  ;;  %736 = vmatpush.msra.mxu2 %v725_v17  ;;  %v683_v29 = vld [vmem:[#allocation5 + $0x48] sm:$0xff] }
  0x46   : > { %566 = vmatpush.msrb.mxu0 %v545_v18  ;;  %v764_v18 = vld [vmem:[#allocation5 + $0x150] sm:$0xff] }
  0x47   : > { %609 = vmatpush.msrb.mxu1 %v591_v30  ;;  %v801_v30 = vld [vmem:[#allocation5 + $0x1c8] sm:$0xff] }
  0x48   : > { %567 = vmatpush.msrb.mxu0 %v544_v19  ;;  %v685_v19 = vld [vmem:[#allocation5 + $0x58] sm:$0xff] }
  0x49   : > { %610 = vmatpush.msrb.mxu1 %v590_v31  ;;  %694 = vmatpush.msrb.mxu3 %v685_v19  ;;  %v722_v31 = vld [vmem:[#allocation5 + $0xb8] sm:$0xff]  ;;  %v993_v19 = vld [vmem:[%s1268_s7] ss:$0 sm:$0xff] }
  0x4a   : > { %568 = vmatpush.msrb.mxu0 %v543_v20  ;;  %v803_v20 = vld [vmem:[#allocation5 + $0x1d8] sm:$0xff] }
  0x4b   : > { %611 = vmatpush.msrb.mxu1 %v589_v32  ;;  %v761_v32 = vld [vmem:[#allocation5 + $0x138] sm:$0xff] }
  0x4c   : > { %569 = vmatpush.msrb.mxu0 %v542_v21  ;;  %v724_v21 = vld [vmem:[#allocation5 + $0xc8] sm:$0xff] }
  0x4d   : > { %612 = vmatpush.msrb.mxu1 %v588_v33  ;;  %737 = vmatpush.msra.mxu2 %v724_v21  ;;  %v682_v33 = vld [vmem:[#allocation5 + $0x40] sm:$0xff] }
  0x4e   : > { %570 = vmatpush.msrb.mxu0 %v541_v22  ;;  %v763_v22 = vld [vmem:[#allocation5 + $0x148] sm:$0xff] }
  0x4f   : > { %613 = vmatpush.msrb.mxu1 %v587_v34  ;;  %738 = vmatpush.msra.mxu2 %v723_v26  ;;  %v800_v34 = vld [vmem:[#allocation5 + $0x1c0] sm:$0xff] }
  0x50   : > { %571 = vmatpush.msrb.mxu0 %v540_v23  ;;  %v684_v23 = vld [vmem:[#allocation5 + $0x50] sm:$0xff] }
  0x51   : > { %572 = vmatmul.f32.vlgmr.msrb.gmra.mxu0 %v538_v24  ;;  %614 = vmatpush.msrb.mxu1 %v586_v35  ;;  %v802_v24 = vld [vmem:[#allocation5 + $0x1d0] sm:$0xff] }
  0x52   : > { %770 = vmatpush.msra.mxu0 %v769_v61  ;;  %695 = vmatpush.msrb.mxu3 %v684_v23  ;;  %v721_v35 = vld [vmem:[#allocation5 + $0xb0] sm:$0xff]  ;;  %v679_v61 = vld [vmem:[#allocation5 + $0x28] sm:$0xff] }
  0x53   : > { %615 = vmatpush.msrb.mxu1 %v585_v36  ;;  %v760_v36 = vld [vmem:[#allocation5 + $0x130] sm:$0xff]  ;;  %739 = vmatpush.msra.mxu2 %v722_v31 }
  0x54   : > { %771 = vmatpush.msra.mxu0 %v768_v0  ;;  %696 = vmatpush.msrb.mxu3 %v683_v29  ;;  %v797_v0 = vld [vmem:[#allocation5 + $0x1a8] sm:$0xff] }
  0x55   : > { %616 = vmatpush.msrb.mxu1 %v584_v38  ;;  %v759_v38 = vld [vmem:[#allocation5 + $0x128] sm:$0xff]  ;;  %740 = vmatpush.msra.mxu2 %v721_v35 }
  0x56   : > { %772 = vmatpush.msra.mxu0 %v767_v3  ;;  %697 = vmatpush.msrb.mxu3 %v682_v33  ;;  %v754_v3 = vld [vmem:[#allocation5 + $0x100] sm:$0xff] }
  0x57   : > { %808 = vmatpush.msra.mxu1 %v807_v5  ;;  %v677_v5 = vld [vmem:[#allocation5 + $0x18] sm:$0xff] }
  0x58   : > { %773 = vmatpush.msra.mxu0 %v766_v8  ;;  %v794_v8 = vld [vmem:[#allocation5 + $0x190] sm:$0xff] }
  0x59   : > { %809 = vmatpush.msra.mxu1 %v806_v10  ;;  %v793_v10 = vld [vmem:[#allocation5 + $0x188] sm:$0xff] }
  0x5a   : > { %774 = vmatpush.msra.mxu0 %v765_v13 }
  0x5b   : > { %810 = vmatpush.msra.mxu1 %v805_v14 }
  0x5c   : > { %775 = vmatpush.msra.mxu0 %v764_v18 }
  0x5d   : > { %811 = vmatpush.msra.mxu1 %v804_v16 }
  0x5e   : > { %776 = vmatpush.msra.mxu0 %v763_v22 }
  0x5f   : > { %812 = vmatpush.msra.mxu1 %v803_v20 }
  0x60   : > { %777 = vmatpush.msra.mxu0 %v762_v27 }
  0x61   : > { %813 = vmatpush.msra.mxu1 %v802_v24 }
  0x62   : > { %778 = vmatpush.msra.mxu0 %v761_v32 }
  0x63   : > { %814 = vmatpush.msra.mxu1 %v801_v30 }
  0x64   : > { %779 = vmatpush.msra.mxu0 %v760_v36 }
  0x65   : > { %815 = vmatpush.msra.mxu1 %v800_v34 }
  0x66   : > { %780 = vmatpush.msra.mxu0 %v759_v38 }
  0xb0   : > { %v414_v39 = vpop.f32.mrf.mxu0 }
  0xb1   : > { %v420_v40 = vadd.f32 %v992_v37, %v414_v39  ;;  %v720_v37 = vld [vmem:[#allocation5 + $0xa8] sm:$0xff]  ;;  %v719_v39 = vld [vmem:[#allocation5 + $0xa0] sm:$0xff] }
  0xb2   : > { %741 = vmatpush.msra.mxu2 %v720_v37 }
  0xb3   : > { %v456_v41 = vpop.f32.mrf.mxu1 }
  0xb4   : > { %v459_v42 = vadd.f32 %v456_v41, %v420_v40  ;;  %v758_v40 = vld [vmem:[#allocation5 + $0x120] sm:$0xff]  ;;  %742 = vmatpush.msra.mxu2 %v719_v39 }
  0xb5   : > { %v495_v43 = vpop.f32.mrf.mxu2  ;;  %781 = vmatpush.msra.mxu0 %v758_v40 }
  0xb6   : > { %v498_v44 = vadd.f32 %v495_v43, %v459_v42 }
  0xb7   : > { %v534_v45 = vpop.f32.mrf.mxu3 }
  0xb8   : > { %v537_v46 = vadd.f32 %v534_v45, %v498_v44 }
  0xce   : > { %v573_v47 = vpop.f32.mrf.mxu0 }
  0xcf   : > { %v576_v48 = vadd.f32 %v573_v47, %v537_v46 }
  0xd1   : > { %v1231_v49 = vmax.f32 %v576_v48, 0.0 }
  0xd3   : > { %v578_v51 = vrot.slane %v1231_v49, 4 }
  0xd5   : > { %v579_v52 = vadd.f32 %v578_v51, %v1231_v49 }
  0xd7   : > { %v580_v53 = vrot.slane %v579_v52, 2 }
  0xd9   : > { %v581_v54 = vadd.f32 %v580_v53, %v579_v52  ;;  %v681_v53 = vld [vmem:[#allocation5 + $0x38] sm:$0xff] }
  0xda   : > { %698 = vmatpush.msrb.mxu3 %v681_v53 }
  0xdb   : > { %v582_v55 = vrot.slane %v581_v54, 1 }
  0xdc   : > { %699 = vmatpush.msrb.mxu3 %v680_v57 }
  0xdd   : > { %v583_v56 = vadd.f32 %v582_v55, %v581_v54  ;;  %v718_v54 = vld [vmem:[#allocation5 + $0x98] sm:$0xff] }
  0xde   : > { %v757_v55 = vld [vmem:[#allocation5 + $0x118] sm:$0xff]  ;;  %743 = vmatpush.msra.mxu2 %v718_v54  ;;  %700 = vmatpush.msrb.mxu3 %v679_v61 }
  0xdf   : > { %617 = vmatmul.f32.vlgmr.msrb.gmra.mxu1 %v583_v56  ;;  %v799_v56 = vld [vmem:[#allocation5 + $0x1b8] sm:$0xff]  ;;  %782 = vmatpush.msra.mxu0 %v757_v55 }
  0xe0   : > { %816 = vmatpush.msra.mxu1 %v799_v56  ;;  %744 = vmatpush.msra.mxu2 %v717_v58 }
  0xe2   : > { %817 = vmatpush.msra.mxu1 %v798_v60  ;;  %745 = vmatpush.msra.mxu2 %v716_v62 }
  0xe4   : > { %818 = vmatpush.msra.mxu1 %v797_v0  ;;  %746 = vmatpush.msra.mxu2 %v715_v2 }
  0xe6   : > { %819 = vmatpush.msra.mxu1 %v796_v4 }
 0x15c   : > { %v618_v63 = vpop.f32.mrf.mxu1 }
 0x15d   : > { %v619_v1 = vadd.f32 %v618_v63, %v600_v59  ;;  %v756_v59 = vld [vmem:[#allocation5 + $0x110] sm:$0xff]  ;;  %v755_v63 = vld [vmem:[#allocation5 + $0x108] sm:$0xff] }
 0x15e   : > { %783 = vmatpush.msra.mxu0 %v756_v59 }
 0x15f   : > { %v954_v6 = vmul.f32 -1.442695, %v619_v1  ;;  %v678_v1 = vld [vmem:[#allocation5 + $0x20] sm:$0xff] }
 0x160   : > { %784 = vmatpush.msra.mxu0 %v755_v63  ;;  %701 = vmatpush.msrb.mxu3 %v678_v1 }
 0x161   : > { %994 = vpow2.f32 %v954_v6  ;;  %v795_v6 = vld [vmem:[#allocation5 + $0x198] sm:$0xff] }
 0x162   : > { %785 = vmatpush.msra.mxu0 %v754_v3  ;;  %702 = vmatpush.msrb.mxu3 %v677_v5 }
 0x163   : > { %820 = vmatpush.msra.mxu1 %v795_v6 }
 0x164   : > { %703 = vmatpush.msrb.mxu3 %v676_v7 }
 0x165   : > { %821 = vmatpush.msra.mxu1 %v794_v8 }
 0x166   : > { %704 = vmatpush.msrb.mxu3 %v675_v9 }
 0x167   : > { %v995_v25 = vpop.eup %994  ;;  %822 = vmatpush.msra.mxu1 %v793_v10 }
 0x168   : > { %v624_v28 = vadd.f32 1.0, %v995_v25  ;;  %705 = vmatpush.msrb.mxu3 %v674_v11 }
 0x169   : > { %823 = vmatpush.msra.mxu1 %v792_v12 }
 0x16a   : > { %996 = vrcp.f32 %v624_v28  ;;  %v636_v44 = vand.u32 2147483648, %v624_v28  ;;  %v634_v46 = vand.u32 2147483647, %v624_v28  ;;  %vm630_vm1 = vweird.f32 %v624_v28 }
 0x16c   : > { %v637_v48 = vor.u32 1.1754944e-38, %v636_v44  ;;  %vm635_vm4 = vcmp.eq.f32.partialorder %v634_v46, 8.507059e+37 }
 0x170   : > { %v997_v41 = vpop.eup %996 }
 0x171   : > { %v626_v42 = vmul.f32 %v997_v41, %v624_v28  ;;  %vm631_vm0 = vweird.f32 %v997_v41 }
 0x172   : > { %vm632_vm2 = vmor %vm630_vm1, %vm631_vm0 }
 0x173   : > { %v627_v43 = vsub.f32 1.0, %v626_v42 }
 0x175   : > { %v628_v45 = vmul.f32 %v997_v41, %v627_v43 }
 0x177   : > { %v629_v47 = vadd.f32 %v997_v41, %v628_v45 }
 0x179   : > { %v633_v51 = vsel %vm632_vm2, %v997_v41, %v629_v47 }
 0x17a   : > { %v638_v52 = vsel %vm635_vm4, %v637_v48, %v633_v51 }
 0x17b   : > { %955 = vmatmul.msk.f32.vlgmr.msrb.gmra.mxu2 %vm642_vm3, %v638_v52 }
 0x1fe   : > { %v663_v13 = vpop.f32.mrf.mxu2 }
 0x1ff   : > { %v666_v14 = vperm.slane %v663_v13, 0 }
 0x201   : > { %v667_v15 = vmul.f32 %v666_v14, %v1231_v49 }
 0x203   : > { %v668_v16 = vadd.f32 %v667_v15, %v1176_v50 }
 0x205   : > { %669 = vst [vmem:[%s369_s15] sm:$0xff] %v668_v16  ;;  %747 = vmatmul.f32.vlgmr.msra.gmra.mxu2 %v668_v16  ;;  %786 = vmatmul.f32.vlgmr.msra.gmra.mxu0 %v668_v16 }
 0x206   : > { %670 = vst [vmem:[#allocation2 + $0x3] sm:$0xff] %v668_v16 }
 0x20d   : > { %v671_v17 = vld [vmem:[#allocation2 + $0x2] sm:$0xff] }
 0x20e   : > { %v672_v18 = vld [vmem:[#allocation2 + $0x4] sm:$0xff]  ;;  %706 = vmatmul.f32.vlgmr.msrb.gmra.mxu3 %v671_v17 }
 0x20f   : > { %824 = vmatmul.f32.vlgmr.msra.gmra.mxu1 %v672_v18 }
 0x282   : > { %v787_v49 = vpop.f32.mrf.mxu0 }
 0x283   : > { %v790_v20 = vadd.f32 %v993_v19, %v787_v49 }
 0x288   : > { %v748_v25 = vpop.f32.mrf.mxu2 }
 0x28c   : > { %v825_v21 = vpop.f32.mrf.mxu1 }
 0x28d   : > { %v828_v22 = vadd.f32 %v825_v21, %v790_v20 }
 0x28f   : > { %v829_v50 = vmax.f32 %v828_v22, 0.0 }
 0x291   : > { %956 = vst [vmem:[%s374_s20 + $0x8] sm:$0xff] %v829_v50  ;;  %v707_v23 = vpop.f32.mrf.mxu3 }
 0x292   : > { %v713_v24 = vadd.f32 %v993_v19, %v707_v23 }
 0x294   : > { %v751_v26 = vadd.f32 %v748_v25, %v713_v24 }
 0x296   : > { %v752_v27 = vmax.f32 %v751_v26, 0.0 }
 0x298   : > { %830 = vst [vmem:[%s374_s20] sm:$0xff] %v752_v27 }
 0x299 PF: > { %s22_s30 = sadd.s32 1, %s1072_s30  }
 0x29a   : > { %p19_p7 = scmp.ge.s32.totalorder %s22_s30, 4  }
 0x29c   :  { %21 = sbr.rel (!%p19_p7) target bundleno = 2 (0x2), region = 111 }
 0x2a1   :  { %868 = vsyncpa [#allocation4], 1 }
 0x2a2   :  { %870 = vsyncpa [#allocation4 + $0x1], 1 }
 0x2a3   :  { %871 = vsyncpa [#allocation6], 1 }

// kernel: hacnetv2_forward.14
= control target key start
LH: loop header
LB: loop body
LE: loop exit
PB: predicated region body
PF: predicated region fallthrough
CT: control target
= control target key end

     0   :  { %12 = vsyncpa [#allocation4], 0  ;;  %s948_s24 = smov 0   ;;  %s1059_s0 = inlined_call_operand.vmem [shape: f32[2,16,128], index: 0, kind: input, shape index: {}]   ;;  %s1060_s1 = inlined_call_operand.vmem [shape: f32[2,16,128], index: 1, kind: input, shape index: {}]   ;;  %s1061_s2 = inlined_call_operand.hbm [shape: f32[7,128,128], index: 2, kind: input, shape index: {}]   ;;  %s1062_s3 = inlined_call_operand.vmem [shape: f32[1,128], index: 3, kind: input, shape index: {}]   ;;  %s1063_s4 = inlined_call_operand.vmem [shape: f32[128,8], index: 4, kind: input, shape index: {}]   ;;  %s1064_s5 = inlined_call_operand.vmem [shape: f32[1,8], index: 5, kind: input, shape index: {}]   ;;  %s1065_s6 = inlined_call_operand.vmem [shape: f32[8,128], index: 6, kind: input, shape index: {}]   ;;  %s1066_s7 = inlined_call_operand.vmem [shape: f32[2,16,128], index: 7, kind: output, shape index: {}]  }
   0x1 LB: > { %s217_s27 = sshll.u32 %s1061_s2, 4  ;;  %s957_s28 = sadd.s32 4294967295, %s902_s24   ;;  %s902_s24 = sphi %s948_s24, %s18_s24   ;;  %s218_s27 = int_to_ptr.hbm [resolvable:$true] %s217_s27 }
   0x2   : > { %p817_p0 = scmp.ge.s32.totalorder %s902_s24, 1  ;;  %p206_p1 = scmp.lt.s32.totalorder %s902_s24, 3 }
   0x3   : > { %p843_p2 = scmp.eq.s32.totalorder %s957_s28, 0  ;;  %s904_s29 = smov [#allocation3]  }
   0x4   : > { %p207_p3 = pnand %p817_p0, %p206_p1  ;;  %s219_s30 = sshll.u32 %s904_s29, 4  ;;  %s220_s30 = int_to_ptr.vmem [resolvable:$true] %s219_s30 }
   0x5   : > { %s905_s8 = smov 128   ;;  %s906_s9 = smov 8  }
   0x6   : > { %p839_p4 = pneg %p207_p3  ;;  %263 = sbr.rel (%p207_p3) target bundleno = 539 (0x21b), region = 48 }
   0x8   : > { %p840_p5 = pnand %p843_p2, %p839_p4 }
   0xa   : > { %842 = dma.hbm_to_vmem [thread:$0]  (!%p840_p5), %s218_s27, 14336, %s220_s30, [#allocation4], %s905_s8, %s905_s8, %s906_s9  }
   0xb   : > { %897 = dma.done.wait (%p843_p2), [#allocation4], 14336  }
   0xc   : > { %899 = vsyncadd (%p843_p2), [#allocation4], 4294952960  ;;  %v342_v0 = vld [vmem:[#allocation3 + $0x78] sm:$0xff]  ;;  %v341_v2 = vld [vmem:[#allocation3 + $0x70] sm:$0xff]  ;;  %v907_v18 = vmov 0.0   ;;  %p301_p6 = scmp.lt.s32.totalorder %s957_s28, 1 }
   0xd   : > { %v433_v1 = vld [vmem:[#allocation3 + $0x178] sm:$0xff]  ;;  %343 = vmatpush.msra.mxu0 %v342_v0  ;;  %v432_v4 = vld [vmem:[#allocation3 + $0x170] sm:$0xff]  ;;  %v340_v5 = vld [vmem:[#allocation3 + $0x68] sm:$0xff]  ;;  %318 = vst [vmem:[#allocation2] sm:$0xff] %v907_v18  ;;  %vm701_vm3 = vcmask 64512  }
   0xe   : > { %434 = vmatpush.msra.mxu2 %v433_v1  ;;  %v389_v3 = vld [vmem:[#allocation3 + $0xf8] sm:$0xff]  ;;  %v388_v6 = vld [vmem:[#allocation3 + $0xf0] sm:$0xff]  ;;  %v431_v7 = vld [vmem:[#allocation3 + $0x168] sm:$0xff]  ;;  %319 = vst [vmem:[#allocation2 + $0x8] sm:$0x1] %v907_v18  ;;  %s1068_s28 = smov (!%p301_p6, %s957_s28), 1 }
   0xf   : > { %390 = vmatpush.msra.mxu1 %v389_v3  ;;  %344 = vmatpush.msra.mxu0 %v341_v2  ;;  %v387_v8 = vld [vmem:[#allocation3 + $0xe8] sm:$0xff]  ;;  %v339_v9 = vld [vmem:[#allocation3 + $0x60] sm:$0xff]  ;;  %v338_v12 = vld [vmem:[#allocation3 + $0x58] sm:$0xff]  ;;  %322 = vst [vmem:[#allocation2 + $0x19] sm:$0xff] %v907_v18  ;;  %s970_s10 = sshll.u32 %s1068_s28, 4 }
  0x10   : > { %435 = vmatpush.msra.mxu2 %v432_v4  ;;  %v430_v10 = vld [vmem:[#allocation3 + $0x160] sm:$0xff]  ;;  %v429_v13 = vld [vmem:[#allocation3 + $0x158] sm:$0xff]  ;;  %v337_v15 = vld [vmem:[#allocation3 + $0x50] sm:$0xff]  ;;  %323 = vst [vmem:[#allocation2 + $0x21] sm:$0x1] %v907_v18  ;;  %s976_s13 = scalar_lea.vmem %s1059_s0, %s970_s10  ;;  %s310_s12 = scalar_lea.vmem %s1060_s1, %s970_s10 }
  0x11   : > { %391 = vmatpush.msra.mxu1 %v388_v6  ;;  %345 = vmatpush.msra.mxu0 %v340_v5  ;;  %v386_v11 = vld [vmem:[#allocation3 + $0xe0] sm:$0xff]  ;;  %v385_v14 = vld [vmem:[#allocation3 + $0xd8] sm:$0xff]  ;;  %v428_v16 = vld [vmem:[#allocation3 + $0x150] sm:$0xff]  ;;  %s315_s15 = scalar_lea.vmem %s1066_s7, %s970_s10 }
  0x12   : > { %436 = vmatpush.msra.mxu2 %v431_v7  ;;  %v477_v17 = vld [vmem:[#allocation3 + $0x1f8] sm:$0xff]  ;;  %v384_v19 = vld [vmem:[#allocation3 + $0xd0] sm:$0xff]  ;;  %v336_v20 = vld [vmem:[#allocation3 + $0x48] sm:$0xff] }
  0x13   : > { %392 = vmatpush.msra.mxu1 %v387_v8  ;;  %346 = vmatpush.msra.mxu0 %v339_v9  ;;  %v427_v21 = vld [vmem:[#allocation3 + $0x148] sm:$0xff]  ;;  %v476_v22 = vld [vmem:[#allocation3 + $0x1f0] sm:$0xff]  ;;  %v335_v25 = vld [vmem:[#allocation3 + $0x40] sm:$0xff] }
  0x14   : > { %437 = vmatpush.msra.mxu2 %v430_v10  ;;  %478 = vmatpush.msra.mxu3 %v477_v17  ;;  %v383_v23 = vld [vmem:[#allocation3 + $0xc8] sm:$0xff]  ;;  %v426_v26 = vld [vmem:[#allocation3 + $0x140] sm:$0xff]  ;;  %v334_v29 = vld [vmem:[#allocation3 + $0x38] sm:$0xff] }
  0x15   : > { %393 = vmatpush.msra.mxu1 %v386_v11  ;;  %347 = vmatpush.msra.mxu0 %v338_v12  ;;  %v475_v24 = vld [vmem:[#allocation3 + $0x1e8] sm:$0xff]  ;;  %v382_v27 = vld [vmem:[#allocation3 + $0xc0] sm:$0xff]  ;;  %v425_v30 = vld [vmem:[#allocation3 + $0x138] sm:$0xff] }
  0x16   : > { %438 = vmatpush.msra.mxu2 %v429_v13  ;;  %479 = vmatpush.msra.mxu3 %v476_v22  ;;  %v474_v28 = vld [vmem:[#allocation3 + $0x1e0] sm:$0xff]  ;;  %v381_v31 = vld [vmem:[#allocation3 + $0xb8] sm:$0xff]  ;;  %v333_v33 = vld [vmem:[#allocation3 + $0x30] sm:$0xff] }
  0x17   : > { %394 = vmatpush.msra.mxu1 %v385_v14  ;;  %348 = vmatpush.msra.mxu0 %v337_v15  ;;  %v473_v32 = vld [vmem:[#allocation3 + $0x1d8] sm:$0xff]  ;;  %v424_v34 = vld [vmem:[#allocation3 + $0x130] sm:$0xff]  ;;  %v332_v37 = vld [vmem:[#allocation3 + $0x28] sm:$0xff] }
  0x18   : > { %439 = vmatpush.msra.mxu2 %v428_v16  ;;  %480 = vmatpush.msra.mxu3 %v475_v24  ;;  %v380_v35 = vld [vmem:[#allocation3 + $0xb0] sm:$0xff]  ;;  %v423_v38 = vld [vmem:[#allocation3 + $0x128] sm:$0xff]  ;;  %v331_v41 = vld [vmem:[#allocation3 + $0x20] sm:$0xff] }
  0x19   : > { %395 = vmatpush.msra.mxu1 %v384_v19  ;;  %349 = vmatpush.msra.mxu0 %v336_v20  ;;  %v472_v36 = vld [vmem:[#allocation3 + $0x1d0] sm:$0xff]  ;;  %v379_v39 = vld [vmem:[#allocation3 + $0xa8] sm:$0xff]  ;;  %v422_v42 = vld [vmem:[#allocation3 + $0x120] sm:$0xff] }
  0x1a   : > { %440 = vmatpush.msra.mxu2 %v427_v21  ;;  %481 = vmatpush.msra.mxu3 %v474_v28  ;;  %v471_v40 = vld [vmem:[#allocation3 + $0x1c8] sm:$0xff]  ;;  %v378_v43 = vld [vmem:[#allocation3 + $0xa0] sm:$0xff]  ;;  %v330_v45 = vld [vmem:[#allocation3 + $0x18] sm:$0xff] }
  0x1b   : > { %396 = vmatpush.msra.mxu1 %v383_v23  ;;  %350 = vmatpush.msra.mxu0 %v335_v25  ;;  %v470_v44 = vld [vmem:[#allocation3 + $0x1c0] sm:$0xff]  ;;  %v421_v46 = vld [vmem:[#allocation3 + $0x118] sm:$0xff]  ;;  %v329_v49 = vld [vmem:[#allocation3 + $0x10] sm:$0xff] }
  0x1c   : > { %441 = vmatpush.msra.mxu2 %v426_v26  ;;  %482 = vmatpush.msra.mxu3 %v473_v32  ;;  %v377_v47 = vld [vmem:[#allocation3 + $0x98] sm:$0xff]  ;;  %v420_v50 = vld [vmem:[#allocation3 + $0x110] sm:$0xff]  ;;  %v328_v53 = vld [vmem:[#allocation3 + $0x8] sm:$0xff] }
  0x1d   : > { %397 = vmatpush.msra.mxu1 %v382_v27  ;;  %351 = vmatpush.msra.mxu0 %v334_v29  ;;  %v469_v48 = vld [vmem:[#allocation3 + $0x1b8] sm:$0xff]  ;;  %v376_v51 = vld [vmem:[#allocation3 + $0x90] sm:$0xff]  ;;  %v419_v54 = vld [vmem:[#allocation3 + $0x108] sm:$0xff] }
  0x1e   : > { %442 = vmatpush.msra.mxu2 %v425_v30  ;;  %483 = vmatpush.msra.mxu3 %v472_v36  ;;  %v468_v52 = vld [vmem:[#allocation3 + $0x1b0] sm:$0xff]  ;;  %v375_v55 = vld [vmem:[#allocation3 + $0x88] sm:$0xff]  ;;  %v327_v57 = vld [vmem:[#allocation3] sm:$0xff] }
  0x1f   : > { %398 = vmatpush.msra.mxu1 %v381_v31  ;;  %352 = vmatpush.msra.mxu0 %v333_v33  ;;  %v467_v56 = vld [vmem:[#allocation3 + $0x1a8] sm:$0xff]  ;;  %v418_v58 = vld [vmem:[#allocation3 + $0x100] sm:$0xff]  ;;  %v979_v59 = vld [vmem:[%s976_s13] sm:$0xff] }
  0x20   : > { %443 = vmatpush.msra.mxu2 %v424_v34  ;;  %484 = vmatpush.msra.mxu3 %v471_v40  ;;  %v521_v60 = vld [vmem:[#allocation3 + $0x278] sm:$0xff]  ;;  %320 = vst [vmem:[#allocation2 + $0x9] sm:$0xff] %v979_v59  ;;  %v374_v62 = vld [vmem:[#allocation3 + $0x80] sm:$0xff]  ;;  %v520_v0 = vld [vmem:[#allocation3 + $0x270] sm:$0xff] }
  0x21   : > { %399 = vmatpush.msra.mxu1 %v380_v35  ;;  %353 = vmatpush.msra.mxu0 %v332_v37  ;;  %v609_v61 = vld [vmem:[#allocation3 + $0x378] sm:$0xff]  ;;  %v466_v63 = vld [vmem:[#allocation3 + $0x1a0] sm:$0xff]  ;;  %v608_v2 = vld [vmem:[#allocation3 + $0x370] sm:$0xff] }
  0x22   : > { %444 = vmatpush.msra.mxu2 %v423_v38  ;;  %485 = vmatpush.msra.mxu3 %v470_v44  ;;  %v565_v1 = vld [vmem:[#allocation3 + $0x2f8] sm:$0xff]  ;;  %v519_v4 = vld [vmem:[#allocation3 + $0x268] sm:$0xff]  ;;  %v564_v5 = vld [vmem:[#allocation3 + $0x2f0] sm:$0xff] }
  0x23   : > { %400 = vmatpush.msra.mxu1 %v379_v39  ;;  %354 = vmatpush.msra.mxu0 %v331_v41  ;;  %v465_v3 = vld [vmem:[#allocation3 + $0x198] sm:$0xff]  ;;  %v983_v6 = vld [vmem:[%s976_s13 + $0x8] sm:$0xff]  ;;  %v607_v7 = vld [vmem:[#allocation3 + $0x368] sm:$0xff] }
  0x24   : > { %445 = vmatpush.msra.mxu2 %v422_v42  ;;  %486 = vmatpush.msra.mxu3 %v469_v48  ;;  %v464_v8 = vld [vmem:[#allocation3 + $0x190] sm:$0xff]  ;;  %321 = vst [vmem:[#allocation2 + $0x11] sm:$0xff] %v983_v6  ;;  %v518_v9 = vld [vmem:[#allocation3 + $0x260] sm:$0xff]  ;;  %v563_v10 = vld [vmem:[#allocation3 + $0x2e8] sm:$0xff] }
  0x25   : > { %401 = vmatpush.msra.mxu1 %v378_v43  ;;  %355 = vmatpush.msra.mxu0 %v330_v45  ;;  %v606_v11 = vld [vmem:[#allocation3 + $0x360] sm:$0xff]  ;;  %v463_v12 = vld [vmem:[#allocation3 + $0x188] sm:$0xff]  ;;  %v517_v13 = vld [vmem:[#allocation3 + $0x258] sm:$0xff] }
  0x26   : > { %446 = vmatpush.msra.mxu2 %v421_v46  ;;  %487 = vmatpush.msra.mxu3 %v468_v52  ;;  %v562_v14 = vld [vmem:[#allocation3 + $0x2e0] sm:$0xff]  ;;  %v605_v15 = vld [vmem:[#allocation3 + $0x358] sm:$0xff]  ;;  %v516_v16 = vld [vmem:[#allocation3 + $0x250] sm:$0xff] }
  0x27   : > { %402 = vmatpush.msra.mxu1 %v377_v47  ;;  %356 = vmatpush.msra.mxu0 %v329_v49  ;;  %v561_v17 = vld [vmem:[#allocation3 + $0x2d8] sm:$0xff]  ;;  %v604_v19 = vld [vmem:[#allocation3 + $0x350] sm:$0xff]  ;;  %v462_v20 = vld [vmem:[#allocation3 + $0x180] sm:$0xff] }
  0x28   : > { %447 = vmatpush.msra.mxu2 %v420_v50  ;;  %488 = vmatpush.msra.mxu3 %v467_v56  ;;  %v515_v21 = vld [vmem:[#allocation3 + $0x248] sm:$0xff]  ;;  %v560_v22 = vld [vmem:[#allocation3 + $0x2d0] sm:$0xff]  ;;  %v371_v24 = vld [vmem:[#allocation2 + $0x6] sm:$0xff] }
  0x29   : > { %403 = vmatpush.msra.mxu1 %v376_v51  ;;  %357 = vmatpush.msra.mxu0 %v328_v53  ;;  %v603_v23 = vld [vmem:[#allocation3 + $0x348] sm:$0xff]  ;;  %v514_v25 = vld [vmem:[#allocation3 + $0x240] sm:$0xff]  ;;  %v513_v29 = vld [vmem:[#allocation3 + $0x238] sm:$0xff] }
  0x2a   : > { %448 = vmatpush.msra.mxu2 %v419_v54  ;;  %489 = vmatpush.msra.mxu3 %v466_v63  ;;  %v559_v26 = vld [vmem:[#allocation3 + $0x2c8] sm:$0xff]  ;;  %v602_v27 = vld [vmem:[#allocation3 + $0x340] sm:$0xff]  ;;  %v601_v31 = vld [vmem:[#allocation3 + $0x338] sm:$0xff] }
  0x2b   : > { %404 = vmatpush.msra.mxu1 %v375_v55  ;;  %358 = vmatpush.msra.mxu0 %v327_v57  ;;  %v415_v28 = vld [vmem:[#allocation2 + $0x8] sm:$0xff]  ;;  %v557_v32 = vld [vmem:[#allocation3 + $0x2b8] sm:$0xff]  ;;  %v600_v33 = vld [vmem:[#allocation3 + $0x330] sm:$0xff] }
  0x2c   : > { %449 = vmatpush.msra.mxu2 %v418_v58  ;;  %490 = vmatpush.msra.mxu3 %v465_v3  ;;  %v558_v30 = vld [vmem:[#allocation3 + $0x2c0] sm:$0xff]  ;;  %v511_v34 = vld [vmem:[#allocation3 + $0x228] sm:$0xff]  ;;  %v556_v35 = vld [vmem:[#allocation3 + $0x2b0] sm:$0xff] }
  0x2d   : > { %522 = vmatpush.msrb.mxu0 %v521_v60  ;;  %405 = vmatpush.msra.mxu1 %v374_v62  ;;  %v599_v36 = vld [vmem:[#allocation3 + $0x328] sm:$0xff]  ;;  %v510_v37 = vld [vmem:[#allocation3 + $0x220] sm:$0xff]  ;;  %v509_v42 = vld [vmem:[#allocation3 + $0x218] sm:$0xff] }
  0x2e   : > { %610 = vmatpush.msrb.mxu2 %v609_v61  ;;  %491 = vmatpush.msra.mxu3 %v464_v8  ;;  %v372_v38 = vld [vmem:[#allocation2 + $0xe] sm:$0xff]  ;;  %v597_v44 = vld [vmem:[#allocation3 + $0x318] sm:$0xff]  ;;  %v508_v45 = vld [vmem:[#allocation3 + $0x210] sm:$0xff] }
  0x2f   : > { %523 = vmatpush.msrb.mxu0 %v520_v0  ;;  %566 = vmatpush.msrb.mxu1 %v565_v1  ;;  %v555_v39 = vld [vmem:[#allocation3 + $0x2a8] sm:$0xff]  ;;  %v598_v40 = vld [vmem:[#allocation3 + $0x320] sm:$0xff]  ;;  %v553_v46 = vld [vmem:[#allocation3 + $0x298] sm:$0xff] }
  0x30   : > { %611 = vmatpush.msrb.mxu2 %v608_v2  ;;  %492 = vmatpush.msra.mxu3 %v463_v12  ;;  %v416_v41 = vld [vmem:[#allocation2 + $0x10] sm:$0xff]  ;;  %v554_v43 = vld [vmem:[#allocation3 + $0x2a0] sm:$0xff]  ;;  %v596_v47 = vld [vmem:[#allocation3 + $0x310] sm:$0xff] }
  0x31   : > { %524 = vmatpush.msrb.mxu0 %v519_v4  ;;  %567 = vmatpush.msrb.mxu1 %v564_v5  ;;  %v507_v48 = vld [vmem:[#allocation3 + $0x208] sm:$0xff]  ;;  %v552_v49 = vld [vmem:[#allocation3 + $0x290] sm:$0xff]  ;;  %v506_v51 = vld [vmem:[#allocation3 + $0x200] sm:$0xff] }
  0x32   : > { %612 = vmatpush.msrb.mxu2 %v607_v7  ;;  %359 = vmatmul.f32.vlgmr.msra.gmra.mxu0 %v907_v18  ;;  %v512_v18 = vld [vmem:[#allocation3 + $0x230] sm:$0xff]  ;;  %v595_v50 = vld [vmem:[#allocation3 + $0x308] sm:$0xff]  ;;  %v594_v53 = vld [vmem:[#allocation3 + $0x300] sm:$0xff] }
  0x33   : > { %525 = vmatpush.msrb.mxu0 %v518_v9  ;;  %568 = vmatpush.msrb.mxu1 %v563_v10  ;;  %v551_v52 = vld [vmem:[#allocation3 + $0x288] sm:$0xff]  ;;  %v550_v56 = vld [vmem:[#allocation3 + $0x280] sm:$0xff]  ;;  %v592_v58 = vld [vmem:[#allocation2 + $0x1a] sm:$0xff] }
  0x34   : > { %613 = vmatpush.msrb.mxu2 %v606_v11  ;;  %493 = vmatpush.msra.mxu3 %v462_v20  ;;  %v503_v54 = vld [vmem:[#allocation2 + $0xa] sm:$0xff]  ;;  %v591_v55 = vld [vmem:[#allocation2 + $0x12] sm:$0xff]  ;;  %v656_v0 = vld [vmem:[%s1063_s4 + $0x60] sm:$0xff] }
  0x35   : > { %526 = vmatpush.msrb.mxu0 %v517_v13  ;;  %569 = vmatpush.msrb.mxu1 %v562_v14  ;;  %v547_v57 = vld [vmem:[#allocation2 + $0xc] sm:$0xff]  ;;  %v548_v60 = vld [vmem:[#allocation2 + $0x14] sm:$0xff]  ;;  %v652_v7 = vld [vmem:[%s1063_s4 + $0x40] sm:$0xff] }
  0x36   : > { %614 = vmatpush.msrb.mxu2 %v605_v15  ;;  %406 = vmatmul.f32.vlgmr.msra.gmra.mxu1 %v371_v24  ;;  %v659_v61 = vld [vmem:[%s1063_s4 + $0x78] sm:$0xff]  ;;  %v658_v62 = vld [vmem:[%s1063_s4 + $0x70] sm:$0xff]  ;;  %v657_v63 = vld [vmem:[%s1063_s4 + $0x68] sm:$0xff] }
  0x37   : > { %527 = vmatpush.msrb.mxu0 %v516_v16  ;;  %570 = vmatpush.msrb.mxu1 %v561_v17  ;;  %v655_v1 = vld [vmem:[%s1063_s4 + $0x58] sm:$0xff]  ;;  %v654_v2 = vld [vmem:[%s1063_s4 + $0x50] sm:$0xff]  ;;  %v653_v5 = vld [vmem:[%s1063_s4 + $0x48] sm:$0xff] }
  0x38   : > { %615 = vmatpush.msrb.mxu2 %v604_v19  ;;  %494 = vmatmul.f32.vlgmr.msra.gmra.mxu3 %v979_v59  ;;  %v651_v8 = vld [vmem:[%s1063_s4 + $0x38] sm:$0xff]  ;;  %v650_v9 = vld [vmem:[%s1063_s4 + $0x30] sm:$0xff]  ;;  %v857_v10 = vld [vmem:[%s1062_s3] ss:$0 sm:$0xff] }
  0x39   : > { %528 = vmatpush.msrb.mxu0 %v515_v21  ;;  %571 = vmatpush.msrb.mxu1 %v560_v22  ;;  %v649_v12 = vld [vmem:[%s1063_s4 + $0x28] sm:$0xff]  ;;  %v648_v15 = vld [vmem:[%s1063_s4 + $0x20] sm:$0xff]  ;;  %v647_v17 = vld [vmem:[%s1063_s4 + $0x18] sm:$0xff] }
  0x3a   : > { %616 = vmatpush.msrb.mxu2 %v603_v23  ;;  %362 = vmatmul.f32.gmra.mxu0 %v415_v28  ;;  %v646_v19 = vld [vmem:[%s1063_s4 + $0x10] sm:$0xff]  ;;  %v645_v22 = vld [vmem:[%s1063_s4 + $0x8] sm:$0xff] }
  0x3b   : > { %529 = vmatpush.msrb.mxu0 %v514_v25  ;;  %572 = vmatpush.msrb.mxu1 %v559_v26  ;;  %v644_v25 = vld [vmem:[%s1063_s4] sm:$0xff] }
  0x3c   : > { %617 = vmatpush.msrb.mxu2 %v602_v27  ;;  %661 = vmatpush.msrb.mxu3 %v659_v61 }
  0x3d   : > { %450 = vmatmul.f32.vlgmr.msra.gmra.mxu2 %v415_v28  ;;  %530 = vmatpush.msrb.mxu0 %v513_v29 }
  0x3e   : > { %573 = vmatpush.msrb.mxu1 %v558_v30  ;;  %618 = vmatpush.msrb.mxu2 %v601_v31 }
  0x3f   : > { %531 = vmatpush.msrb.mxu0 %v512_v18  ;;  %409 = vmatmul.f32.gmra.mxu1 %v372_v38 }
  0x40   : > { %574 = vmatpush.msrb.mxu1 %v557_v32  ;;  %619 = vmatpush.msrb.mxu2 %v600_v33 }
  0x41   : > { %532 = vmatpush.msrb.mxu0 %v511_v34  ;;  %497 = vmatmul.f32.gmra.mxu3 %v983_v6 }
  0x42   : > { %575 = vmatpush.msrb.mxu1 %v556_v35  ;;  %620 = vmatpush.msrb.mxu2 %v599_v36 }
  0x43   : > { %533 = vmatpush.msrb.mxu0 %v510_v37  ;;  %662 = vmatpush.msrb.mxu3 %v658_v62 }
  0x44   : > { %576 = vmatpush.msrb.mxu1 %v555_v39  ;;  %621 = vmatpush.msrb.mxu2 %v598_v40 }
  0x45   : > { %453 = vmatmul.f32.gmra.mxu2 %v416_v41  ;;  %534 = vmatpush.msrb.mxu0 %v509_v42 }
  0x46   : > { %577 = vmatpush.msrb.mxu1 %v554_v43  ;;  %622 = vmatpush.msrb.mxu2 %v597_v44 }
  0x47   : > { %535 = vmatpush.msrb.mxu0 %v508_v45  ;;  %663 = vmatpush.msrb.mxu3 %v657_v63 }
  0x48   : > { %578 = vmatpush.msrb.mxu1 %v553_v46  ;;  %623 = vmatpush.msrb.mxu2 %v596_v47 }
  0x49   : > { %536 = vmatpush.msrb.mxu0 %v507_v48  ;;  %664 = vmatpush.msrb.mxu3 %v656_v0 }
  0x4a   : > { %579 = vmatpush.msrb.mxu1 %v552_v49  ;;  %624 = vmatpush.msrb.mxu2 %v595_v50 }
  0x4b   : > { %537 = vmatpush.msrb.mxu0 %v506_v51  ;;  %665 = vmatpush.msrb.mxu3 %v655_v1 }
  0x4c   : > { %580 = vmatpush.msrb.mxu1 %v551_v52  ;;  %625 = vmatpush.msrb.mxu2 %v594_v53  ;;  %v700_v52 = vld [vmem:[%s1065_s6] sm:$0xff] }
  0x4d   : > { %538 = vmatmul.f32.vlgmr.msrb.gmra.mxu0 %v503_v54  ;;  %626 = vmatmul.f32.vlgmr.msrb.gmra.mxu2 %v591_v55  ;;  %v660_v53 = vld [vmem:[%s1064_s5] sm:$0x1] }
  0x4e   : > { %581 = vmatpush.msrb.mxu1 %v550_v56  ;;  %666 = vmatpush.msrb.mxu3 %v654_v2 }
  0x4f   : > { %582 = vmatmul.f32.vlgmr.msrb.gmra.mxu1 %v547_v57 }
  0x50   : > { %667 = vmatpush.msrb.mxu3 %v653_v5 }
  0x52   : > { %668 = vmatpush.msrb.mxu3 %v652_v7 }
  0x54   : > { %669 = vmatpush.msrb.mxu3 %v651_v8 }
  0x55   : > { %541 = vmatmul.f32.gmra.mxu0 %v591_v55  ;;  %629 = vmatmul.f32.gmra.mxu2 %v592_v58 }
  0x56   : > { %670 = vmatpush.msrb.mxu3 %v650_v9 }
  0x57   : > { %585 = vmatmul.f32.gmra.mxu1 %v548_v60 }
  0x58   : > { %671 = vmatpush.msrb.mxu3 %v649_v12  ;;  %v731_v12 = vld [vmem:[%s310_s12 + $0x8] sm:$0xff] }
  0x5a   : > { %672 = vmatpush.msrb.mxu3 %v648_v15 }
  0x5c   : > { %673 = vmatpush.msrb.mxu3 %v647_v17 }
  0x5e   : > { %674 = vmatpush.msrb.mxu3 %v646_v19 }
  0x60   : > { %675 = vmatpush.msrb.mxu3 %v645_v22 }
  0x62   : > { %676 = vmatpush.msrb.mxu3 %v644_v25 }
  0x64   : > { %720 = vmatpush.msra.mxu3 %v700_v52 }
  0xaf   : > { %v360_v3 = vpop.f32.mrf.mxu0 }
  0xb0   : > { %v369_v16 = vadd.f32 %v857_v10, %v360_v3 }
  0xb3   : > { %v407_v4 = vpop.f32.mrf.mxu1 }
  0xb4   : > { %v413_v23 = vadd.f32 %v407_v4, %v369_v16 }
  0xb7   : > { %v363_v13 = vpop.f32.mrf.mxu0 }
  0xb8   : > { %v370_v21 = vadd.f32 %v857_v10, %v363_v13 }
  0xbb   : > { %v495_v20 = vpop.f32.mrf.mxu3 }
  0xbc   : > { %v410_v14 = vpop.f32.mrf.mxu1 }
  0xbd   : > { %v414_v26 = vadd.f32 %v410_v14, %v370_v21 }
  0xc0   : > { %v451_v11 = vpop.f32.mrf.mxu2 }
  0xc1   : > { %v457_v28 = vadd.f32 %v451_v11, %v413_v23  ;;  %v730_v11 = vld [vmem:[%s310_s12] sm:$0xff] }
  0xc3   : > { %v501_v18 = vadd.f32 %v495_v20, %v457_v28 }
  0xc4   : > { %v498_v31 = vpop.f32.mrf.mxu3 }
  0xc8   : > { %v454_v24 = vpop.f32.mrf.mxu2 }
  0xc9   : > { %v458_v30 = vadd.f32 %v454_v24, %v414_v26 }
  0xca   : > { %v539_v27 = vpop.f32.mrf.mxu0 }
  0xcb   : > { %v502_v33 = vadd.f32 %v498_v31, %v458_v30  ;;  %v545_v34 = vadd.f32 %v539_v27, %v501_v18 }
  0xcc   : > { %v583_v29 = vpop.f32.mrf.mxu1 }
  0xcd   : > { %v589_v38 = vadd.f32 %v583_v29, %v545_v34 }
  0xd0   : > { %v627_v32 = vpop.f32.mrf.mxu2 }
  0xd1   : > { %v633_v39 = vadd.f32 %v627_v32, %v589_v38 }
  0xd2   : > { %v542_v35 = vpop.f32.mrf.mxu0 }
  0xd3   : > { %v546_v36 = vadd.f32 %v542_v35, %v502_v33  ;;  %v635_v43 = vmax.f32 %v633_v39, 0.0 }
  0xd4   : > { %v586_v37 = vpop.f32.mrf.mxu1 }
  0xd5   : > { %v590_v40 = vadd.f32 %v586_v37, %v546_v36 }
  0xd8   : > { %v630_v41 = vpop.f32.mrf.mxu2 }
  0xd9   : > { %v634_v42 = vadd.f32 %v630_v41, %v590_v40 }
  0xdb   : > { %v636_v44 = vmax.f32 %v634_v42, 0.0 }
  0xdd   : > { %v637_v45 = vadd.f32 %v636_v44, %v635_v43 }
  0xdf   : > { %v638_v46 = vrot.slane %v637_v45, 4 }
  0xe1   : > { %v639_v47 = vadd.f32 %v638_v46, %v637_v45 }
  0xe3   : > { %v640_v48 = vrot.slane %v639_v47, 2 }
  0xe5   : > { %v641_v49 = vadd.f32 %v640_v48, %v639_v47 }
  0xe7   : > { %v642_v50 = vrot.slane %v641_v49, 1 }
  0xe9   : > { %v643_v51 = vadd.f32 %v642_v50, %v641_v49 }
  0xeb   : > { %677 = vmatmul.f32.vlgmr.msrb.gmra.mxu3 %v643_v51 }
 0x16e   : > { %v678_v54 = vpop.f32.mrf.mxu3 }
 0x16f   : > { %v679_v55 = vadd.f32 %v678_v54, %v660_v53 }
 0x171   : > { %v828_v56 = vmul.f32 -1.442695, %v679_v55 }
 0x173   : > { %858 = vpow2.f32 %v828_v56 }
 0x179   : > { %v859_v57 = vpop.eup %858 }
 0x17a   : > { %v684_v58 = vadd.f32 1.0, %v859_v57 }
 0x17c   : > { %860 = vrcp.f32 %v684_v58  ;;  %v696_v63 = vand.u32 2147483648, %v684_v58  ;;  %v694_v1 = vand.u32 2147483647, %v684_v58  ;;  %vm690_vm1 = vweird.f32 %v684_v58 }
 0x17e   : > { %v697_v3 = vor.u32 1.1754944e-38, %v696_v63  ;;  %vm695_vm4 = vcmp.eq.f32.partialorder %v694_v1, 8.507059e+37 }
 0x182   : > { %v861_v60 = vpop.eup %860 }
 0x183   : > { %v686_v61 = vmul.f32 %v861_v60, %v684_v58  ;;  %vm691_vm0 = vweird.f32 %v861_v60 }
 0x184   : > { %vm692_vm2 = vmor %vm690_vm1, %vm691_vm0 }
 0x185   : > { %v687_v62 = vsub.f32 1.0, %v686_v61 }
 0x187   : > { %v688_v0 = vmul.f32 %v861_v60, %v687_v62 }
 0x189   : > { %v689_v2 = vadd.f32 %v861_v60, %v688_v0 }
 0x18b   : > { %v693_v4 = vsel %vm692_vm2, %v861_v60, %v689_v2 }
 0x18c   : > { %v698_v5 = vsel %vm695_vm4, %v697_v3, %v693_v4 }
 0x18d   : > { %829 = vmatmul.msk.f32.vlgmr.msra.gmra.mxu3 %vm701_vm3, %v698_v5 }
 0x210   : > { %v722_v7 = vpop.f32.mrf.mxu3 }
 0x211   : > { %v725_v8 = vperm.slane %v722_v7, 0 }
 0x213   : > { %v726_v9 = vmul.f32 %v725_v8, %v635_v43  ;;  %v727_v10 = vmul.f32 %v725_v8, %v636_v44 }
 0x215   : > { %v728_v13 = vadd.f32 %v726_v9, %v979_v59  ;;  %v729_v14 = vadd.f32 %v727_v10, %v983_v6 }
 0x217   : > { %v732_v15 = vadd.f32 %v730_v11, %v728_v13  ;;  %v733_v16 = vadd.f32 %v731_v12, %v729_v14 }
 0x219   : > { %734 = vst [vmem:[%s315_s15] sm:$0xff] %v732_v15 }
 0x21a   : > { %735 = vst [vmem:[%s315_s15 + $0x8] sm:$0xff] %v733_v16 }
 0x21b PF: > { %s18_s24 = sadd.s32 1, %s902_s24  }
 0x21c   : > { %p15_p7 = scmp.ge.s32.totalorder %s18_s24, 4  }
 0x21e   :  { %17 = sbr.rel (!%p15_p7) target bundleno = 1 (0x1), region = 92 }
 0x223   :  { %757 = vsyncpa [#allocation4], 1 }
 0x224   :  { %759 = vsyncpa [#allocation4 + $0x1], 1 }

// kernel: hacnetv2_forward.17
= control target key start
LH: loop header
LB: loop body
LE: loop exit
PB: predicated region body
PF: predicated region fallthrough
CT: control target
= control target key end

     0   :  { %s626_s24 = smov 0   ;;  %s812_s0 = inlined_call_operand.vmem [shape: f32[2,16,128], index: 0, kind: input, shape index: {}]   ;;  %s813_s1 = inlined_call_operand.vmem [shape: f32[2,16,128], index: 1, kind: input, shape index: {}]   ;;  %s814_s2 = inlined_call_operand.vmem [shape: f32[2,16,128], index: 2, kind: input, shape index: {}]   ;;  %s815_s3 = inlined_call_operand.vmem [shape: f32[128,64], index: 3, kind: input, shape index: {}]   ;;  %s816_s4 = inlined_call_operand.vmem [shape: f32[128,64], index: 4, kind: input, shape index: {}]   ;;  %s817_s5 = inlined_call_operand.vmem [shape: f32[128,64], index: 5, kind: input, shape index: {}]   ;;  %s818_s6 = inlined_call_operand.vmem [shape: f32[1,64], index: 6, kind: input, shape index: {}]   ;;  %s819_s7 = inlined_call_operand.vmem [shape: f32[2,16,64], index: 7, kind: output, shape index: {}]  }
   0x1 LB: > { %s534_s25 = sadd.s32 4294967295, %s584_s24   ;;  %p538_p0 = scmp.ge.s32.totalorder %s584_s24, 1  ;;  %s584_s24 = sphi %s626_s24, %s17_s24  }
   0x2   : > { %p257_p1 = scmp.lt.s32.totalorder %s584_s24, 3 }
   0x4   : > { %p258_p2 = pnand %p538_p0, %p257_p1 }
   0x5   : > { %p717_p3 = scmp.lt.s32.totalorder (!%p258_p2), %s534_s25, 1 }
   0x6   : > { %261 = sbr.rel (%p258_p2) target bundleno = 186 (0xba), region = 48 }
   0xb   : > { %v426_v0 = vld [vmem:[%s817_s5 + $0x78] sm:$0xff]  ;;  %v425_v2 = vld [vmem:[%s817_s5 + $0x70] sm:$0xff]  ;;  %v424_v5 = vld [vmem:[%s817_s5 + $0x68] sm:$0xff]  ;;  %s822_s25 = smov (!%p717_p3, %s534_s25), 1  ;;  %vm452_vm0 = vcmask 523264  }
   0xc   : > { %v337_v1 = vld [vmem:[%s815_s3 + $0x78] sm:$0xff]  ;;  %427 = vmatpush.msra.mxu2 %v426_v0  ;;  %v336_v3 = vld [vmem:[%s815_s3 + $0x70] sm:$0xff]  ;;  %v335_v6 = vld [vmem:[%s815_s3 + $0x68] sm:$0xff]  ;;  %s761_s19 = sshll.u32 %s822_s25, 4 }
   0xd   : > { %338 = vmatpush.msra.mxu0 %v337_v1  ;;  %v383_v4 = vld [vmem:[%s816_s4 + $0x78] sm:$0xff]  ;;  %553 = vmatpush.msra.mxu3 %v337_v1  ;;  %v382_v7 = vld [vmem:[%s816_s4 + $0x70] sm:$0xff]  ;;  %v381_v8 = vld [vmem:[%s816_s4 + $0x68] sm:$0xff]  ;;  %s313_s10 = scalar_lea.vmem %s814_s2, %s761_s19  ;;  %s303_s13 = scalar_lea.vmem %s812_s0, %s761_s19 }
   0xe   : > { %384 = vmatpush.msra.mxu1 %v383_v4  ;;  %428 = vmatpush.msra.mxu2 %v425_v2  ;;  %v423_v9 = vld [vmem:[%s817_s5 + $0x60] sm:$0xff]  ;;  %v422_v12 = vld [vmem:[%s817_s5 + $0x58] sm:$0xff]  ;;  %v421_v15 = vld [vmem:[%s817_s5 + $0x50] sm:$0xff]  ;;  %s308_s23 = scalar_lea.vmem %s813_s1, %s761_s19  ;;  %s318_s8 = scalar_lea.vmem %s819_s7, %s761_s19 }
   0xf   : > { %339 = vmatpush.msra.mxu0 %v336_v3  ;;  %554 = vmatpush.msra.mxu3 %v336_v3  ;;  %v334_v10 = vld [vmem:[%s815_s3 + $0x60] sm:$0xff]  ;;  %v333_v13 = vld [vmem:[%s815_s3 + $0x58] sm:$0xff]  ;;  %v332_v16 = vld [vmem:[%s815_s3 + $0x50] sm:$0xff] }
  0x10   : > { %385 = vmatpush.msra.mxu1 %v382_v7  ;;  %429 = vmatpush.msra.mxu2 %v424_v5  ;;  %v380_v11 = vld [vmem:[%s816_s4 + $0x60] sm:$0xff]  ;;  %v379_v14 = vld [vmem:[%s816_s4 + $0x58] sm:$0xff]  ;;  %v378_v17 = vld [vmem:[%s816_s4 + $0x50] sm:$0xff] }
  0x11   : > { %340 = vmatpush.msra.mxu0 %v335_v6  ;;  %555 = vmatpush.msra.mxu3 %v335_v6  ;;  %v420_v18 = vld [vmem:[%s817_s5 + $0x48] sm:$0xff]  ;;  %v419_v21 = vld [vmem:[%s817_s5 + $0x40] sm:$0xff]  ;;  %v418_v24 = vld [vmem:[%s817_s5 + $0x38] sm:$0xff] }
  0x12   : > { %386 = vmatpush.msra.mxu1 %v381_v8  ;;  %430 = vmatpush.msra.mxu2 %v423_v9  ;;  %v331_v19 = vld [vmem:[%s815_s3 + $0x48] sm:$0xff]  ;;  %v330_v22 = vld [vmem:[%s815_s3 + $0x40] sm:$0xff]  ;;  %v329_v25 = vld [vmem:[%s815_s3 + $0x38] sm:$0xff] }
  0x13   : > { %341 = vmatpush.msra.mxu0 %v334_v10  ;;  %556 = vmatpush.msra.mxu3 %v334_v10  ;;  %v377_v20 = vld [vmem:[%s816_s4 + $0x48] sm:$0xff]  ;;  %v376_v23 = vld [vmem:[%s816_s4 + $0x40] sm:$0xff]  ;;  %v375_v26 = vld [vmem:[%s816_s4 + $0x38] sm:$0xff] }
  0x14   : > { %387 = vmatpush.msra.mxu1 %v380_v11  ;;  %431 = vmatpush.msra.mxu2 %v422_v12  ;;  %v417_v27 = vld [vmem:[%s817_s5 + $0x30] sm:$0xff]  ;;  %v416_v30 = vld [vmem:[%s817_s5 + $0x28] sm:$0xff]  ;;  %v415_v33 = vld [vmem:[%s817_s5 + $0x20] sm:$0xff] }
  0x15   : > { %342 = vmatpush.msra.mxu0 %v333_v13  ;;  %557 = vmatpush.msra.mxu3 %v333_v13  ;;  %v328_v28 = vld [vmem:[%s815_s3 + $0x30] sm:$0xff]  ;;  %v327_v31 = vld [vmem:[%s815_s3 + $0x28] sm:$0xff]  ;;  %v326_v34 = vld [vmem:[%s815_s3 + $0x20] sm:$0xff] }
  0x16   : > { %388 = vmatpush.msra.mxu1 %v379_v14  ;;  %432 = vmatpush.msra.mxu2 %v421_v15  ;;  %v374_v29 = vld [vmem:[%s816_s4 + $0x30] sm:$0xff]  ;;  %v373_v32 = vld [vmem:[%s816_s4 + $0x28] sm:$0xff]  ;;  %v372_v35 = vld [vmem:[%s816_s4 + $0x20] sm:$0xff] }
  0x17   : > { %343 = vmatpush.msra.mxu0 %v332_v16  ;;  %558 = vmatpush.msra.mxu3 %v332_v16  ;;  %v414_v36 = vld [vmem:[%s817_s5 + $0x18] sm:$0xff]  ;;  %v413_v39 = vld [vmem:[%s817_s5 + $0x10] sm:$0xff]  ;;  %v412_v42 = vld [vmem:[%s817_s5 + $0x8] sm:$0xff] }
  0x18   : > { %389 = vmatpush.msra.mxu1 %v378_v17  ;;  %433 = vmatpush.msra.mxu2 %v420_v18  ;;  %v325_v37 = vld [vmem:[%s815_s3 + $0x18] sm:$0xff]  ;;  %v324_v40 = vld [vmem:[%s815_s3 + $0x10] sm:$0xff]  ;;  %v323_v43 = vld [vmem:[%s815_s3 + $0x8] sm:$0xff] }
  0x19   : > { %344 = vmatpush.msra.mxu0 %v331_v19  ;;  %559 = vmatpush.msra.mxu3 %v331_v19  ;;  %v371_v38 = vld [vmem:[%s816_s4 + $0x18] sm:$0xff]  ;;  %v370_v41 = vld [vmem:[%s816_s4 + $0x10] sm:$0xff]  ;;  %v369_v44 = vld [vmem:[%s816_s4 + $0x8] sm:$0xff] }
  0x1a   : > { %390 = vmatpush.msra.mxu1 %v377_v20  ;;  %434 = vmatpush.msra.mxu2 %v419_v21  ;;  %v411_v45 = vld [vmem:[%s817_s5] sm:$0xff]  ;;  %v321_v50 = vld [vmem:[%s303_s13 + $0x8] sm:$0xff] }
  0x1b   : > { %345 = vmatpush.msra.mxu0 %v330_v22  ;;  %560 = vmatpush.msra.mxu3 %v330_v22  ;;  %v322_v46 = vld [vmem:[%s815_s3] sm:$0xff]  ;;  %v410_v52 = vld [vmem:[%s313_s10 + $0x8] sm:$0xff] }
  0x1c   : > { %391 = vmatpush.msra.mxu1 %v376_v23  ;;  %435 = vmatpush.msra.mxu2 %v418_v24  ;;  %v409_v47 = vld [vmem:[%s313_s10] sm:$0xff]  ;;  %v367_v53 = vld [vmem:[%s308_s23 + $0x8] sm:$0xff] }
  0x1d   : > { %346 = vmatpush.msra.mxu0 %v329_v25  ;;  %561 = vmatpush.msra.mxu3 %v329_v25  ;;  %v320_v48 = vld [vmem:[%s303_s13] sm:$0xff] }
  0x1e   : > { %392 = vmatpush.msra.mxu1 %v375_v26  ;;  %436 = vmatpush.msra.mxu2 %v417_v27  ;;  %v368_v49 = vld [vmem:[%s816_s4] sm:$0xff] }
  0x1f   : > { %347 = vmatpush.msra.mxu0 %v328_v28  ;;  %562 = vmatpush.msra.mxu3 %v328_v28  ;;  %v366_v51 = vld [vmem:[%s308_s23] sm:$0xff] }
  0x20   : > { %393 = vmatpush.msra.mxu1 %v374_v29  ;;  %437 = vmatpush.msra.mxu2 %v416_v30  ;;  %v577_v54 = vld [vmem:[%s818_s6] ss:$0 sm:$0xff] }
  0x21   : > { %348 = vmatpush.msra.mxu0 %v327_v31  ;;  %563 = vmatpush.msra.mxu3 %v327_v31 }
  0x22   : > { %394 = vmatpush.msra.mxu1 %v373_v32  ;;  %438 = vmatpush.msra.mxu2 %v415_v33 }
  0x23   : > { %349 = vmatpush.msra.mxu0 %v326_v34  ;;  %564 = vmatpush.msra.mxu3 %v326_v34 }
  0x24   : > { %395 = vmatpush.msra.mxu1 %v372_v35  ;;  %439 = vmatpush.msra.mxu2 %v414_v36 }
  0x25   : > { %350 = vmatpush.msra.mxu0 %v325_v37  ;;  %565 = vmatpush.msra.mxu3 %v325_v37 }
  0x26   : > { %396 = vmatpush.msra.mxu1 %v371_v38  ;;  %440 = vmatpush.msra.mxu2 %v413_v39 }
  0x27   : > { %351 = vmatpush.msra.mxu0 %v324_v40  ;;  %566 = vmatpush.msra.mxu3 %v324_v40 }
  0x28   : > { %397 = vmatpush.msra.mxu1 %v370_v41  ;;  %441 = vmatpush.msra.mxu2 %v412_v42 }
  0x29   : > { %352 = vmatpush.msra.mxu0 %v323_v43  ;;  %567 = vmatpush.msra.mxu3 %v323_v43 }
  0x2a   : > { %398 = vmatpush.msra.mxu1 %v369_v44  ;;  %442 = vmatpush.msra.mxu2 %v411_v45 }
  0x2b   : > { %353 = vmatpush.msra.mxu0 %v322_v46  ;;  %443 = vmatmul.f32.vlgmr.msra.gmra.mxu2 %v409_v47 }
  0x2c   : > { %354 = vmatmul.f32.vlgmr.msra.gmra.mxu0 %v320_v48  ;;  %568 = vmatpush.msra.mxu3 %v322_v46 }
  0x2d   : > { %399 = vmatpush.msra.mxu1 %v368_v49  ;;  %357 = vmatmul.f32.vlgmr.msra.gmra.mxu3 %v321_v50 }
  0x2e   : > { %400 = vmatmul.f32.vlgmr.msra.gmra.mxu1 %v366_v51 }
  0x33   : > { %446 = vmatmul.f32.gmra.mxu2 %v410_v52 }
  0x36   : > { %403 = vmatmul.f32.gmra.mxu1 %v367_v53 }
  0xa9   : > { %v355_v55 = vpop.f32.mrf.mxu0 }
  0xaa   : > { %v364_v56 = vadd.f32 %v577_v54, %v355_v55 }
  0xab   : > { %v401_v57 = vpop.f32.mrf.mxu1 }
  0xac   : > { %v407_v58 = vadd.f32 %v401_v57, %v364_v56 }
  0xae   : > { %v444_v59 = vpop.f32.mrf.mxu2 }
  0xaf   : > { %v450_v60 = vadd.f32 %v444_v59, %v407_v58 }
  0xb0   : > { %v358_v61 = vpop.f32.mrf.mxu3 }
  0xb1   : > { %453 = vst.msk [vmem:[%s318_s8] sm:$0xff] %vm452_vm0, %v450_v60  ;;  %v365_v62 = vadd.f32 %v577_v54, %v358_v61 }
  0xb3   : > { %v404_v63 = vpop.f32.mrf.mxu1 }
  0xb4   : > { %v408_v0 = vadd.f32 %v404_v63, %v365_v62 }
  0xb6   : > { %v447_v1 = vpop.f32.mrf.mxu2 }
  0xb7   : > { %v451_v2 = vadd.f32 %v447_v1, %v408_v0 }
  0xb9   : > { %454 = vst.msk [vmem:[%s318_s8 + $0x8] sm:$0xff] %vm452_vm0, %v451_v2 }
  0xba PF: > { %s17_s24 = sadd.s32 1, %s584_s24  }
  0xbb   : > { %p14_p4 = scmp.ge.s32.totalorder %s17_s24, 4  }
  0xbd   :  { %16 = sbr.rel (!%p14_p4) target bundleno = 1 (0x1), region = 84 }

// kernel: hacnetv2_forward.13
= control target key start
LH: loop header
LB: loop body
LE: loop exit
PB: predicated region body
PF: predicated region fallthrough
CT: control target
= control target key end

     0   :  { %s1431_s0 = inlined_call_operand.vmem [shape: f32[2,8,128], index: 0, kind: input, shape index: {}]   ;;  %s1432_s1 = inlined_call_operand.hbm [shape: f32[5,128,128], index: 1, kind: input, shape index: {}]   ;;  %s1433_s2 = inlined_call_operand.vmem [shape: f32[1,128], index: 2, kind: input, shape index: {}]   ;;  %s1434_s3 = inlined_call_operand.vmem [shape: f32[128,16], index: 3, kind: input, shape index: {}]   ;;  %s1435_s4 = inlined_call_operand.vmem [shape: f32[1,16], index: 4, kind: input, shape index: {}]   ;;  %s1436_s5 = inlined_call_operand.vmem [shape: f32[16,128], index: 5, kind: input, shape index: {}]   ;;  %s1437_s6 = inlined_call_operand.hbm [shape: f32[4,128,128], index: 6, kind: input, shape index: {}]   ;;  %s1438_s7 = inlined_call_operand.vmem [shape: f32[1,128], index: 7, kind: input, shape index: {}]   ;;  %s1439_s8 = inlined_call_operand.hbm [shape: f32[2,8,128], index: 8, kind: output, shape index: {0}]   ;;  %s1440_s9 = inlined_call_operand.vmem [shape: f32[2,2,8,128], index: 9, kind: output, shape index: {1}]  }
   0x1   :  { %1441 = sst [smem:[#allocation12_spill]] %s1431_s0 }
   0x2   :  { %1442 = sst [smem:[#allocation13_spill]] %s1432_s1 }
   0x3   :  { %1443 = sst [smem:[#allocation14_spill]] %s1433_s2 }
   0x4   :  { %1444 = sst [smem:[#allocation15_spill]] %s1434_s3 }
   0x5   :  { %15 = vsyncpa [#allocation4], 0 }
   0x6   :  { %16 = vsyncpa [#allocation7], 0 }
   0x7   :  { %17 = vsyncpa [#allocation5], 0 }
   0x8   :  { %19 = vsyncpa [#allocation5 + $0x1], 0  ;;  %s1239_s30 = smov 0   ;;  %s1241_s10 = smov 0  }
   0x9   :  { %s1243_s11 = smov 0   ;;  %s1245_s12 = smov 0  }
   0xa LB: > { %s1260_s13 = sadd.s32 4294967295, %s1182_s12   ;;  %s963_s14 = sadd.s32 4294967294, %s1182_s12   ;;  %s1182_s12 = sphi %s1245_s12, %s1455_s12   ;;  %s1178_s11 = sphi %s1243_s11, %s1454_s11   ;;  %s1174_s10 = sphi %s1241_s10, %s1453_s10   ;;  %s1170_s30 = sphi %s1239_s30, %s1452_s30  }
   0xb   : > { %s1264_s15 = sadd.s32 1, %s1182_s12   ;;  %s205_s16 = sadd.s32 1, %s1178_s11 }
   0xc   : > { %s202_s17 = ssub.s32 %s1182_s12, %s1264_s15  ;;  %p215_p0 = scmp.ne.s32.totalorder %s1178_s11, %s1174_s10 }
   0xd   : > { %p203_p1 = scmp.eq.s32.totalorder %s202_s17, 0  ;;  %p216_p2 = scmp.eq.s32.totalorder %s1260_s13, 1 }
   0xe   : > { %p221_p3 = scmp.ne.s32.totalorder %s1174_s10, %s1170_s30  ;;  %p222_p4 = scmp.eq.s32.totalorder %s963_s14, 1 }
   0xf   : > { %s1275_s18 = scalar_select %p203_p1, %s1178_s11, %s205_s16  }
  0x10   : > { %p1277_p5 = por %p216_p2, %p215_p0  ;;  %p1281_p6 = por %p222_p4, %p221_p3 }
  0x11   : > { %p964_p7 = scmp.ge.s32.totalorder %s1182_s12, 1  ;;  %p255_p8 = scmp.lt.s32.totalorder %s1182_s12, 3 }
  0x12   : > { %p1004_p9 = scmp.eq.s32.totalorder %s1260_s13, 0  ;;  %s1448_s1 = sld [smem:[#allocation13_spill]] }
  0x13   : > { %p1288_p10 = pnand %p964_p7, %p255_p8  ;;  %s1184_s25 = smov [#allocation3]  }
  0x14   : > { %s268_s26 = sshll.u32 %s1184_s25, 4  ;;  %s292_s29 = sshll.u32 %s1437_s6, 4  ;;  %s269_s26 = int_to_ptr.vmem [resolvable:$true] %s268_s26  ;;  %s293_s29 = int_to_ptr.hbm [resolvable:$true] %s292_s29 }
  0x15   : > { %p993_p11 = pneg %p1288_p10  ;;  %s1185_s14 = smov 128  }
  0x16   : > { %s1186_s16 = smov 8   ;;  %s1187_s17 = smov [#allocation6]  }
  0x17   : > { %p994_p12 = pnand %p1004_p9, %p993_p11  ;;  %s294_s22 = sshll.u32 %s1187_s17, 4  ;;  %s295_s22 = int_to_ptr.vmem [resolvable:$true] %s294_s22 }
  0x18   : > { %s266_s24 = sshll.u32 %s1448_s1, 4  ;;  %320 = sbr.rel (%p1288_p10) target bundleno = 679 (0x2a7), region = 52  ;;  %s267_s24 = int_to_ptr.hbm [resolvable:$true] %s266_s24 }
  0x19   : > { %996 = dma.hbm_to_vmem [thread:$0]  (!%p994_p12), %s267_s24, 10240, %s269_s26, [#allocation4], %s1185_s14, %s1185_s14, %s1186_s16  }
  0x1a   : > { %999 = dma.hbm_to_vmem [thread:$0]  (!%p994_p12), %s293_s29, 8192, %s295_s22, [#allocation7], %s1185_s14, %s1185_s14, %s1186_s16  }
  0x1d   : > { %1157 = dma.done.wait (%p1004_p9), [#allocation4], 10240  }
  0x1e   : > { %1159 = vsyncadd (%p1004_p9), [#allocation4], 4294957056 }
  0x1f   : > { %1161 = dma.done.wait (%p1004_p9), [#allocation7], 8192  }
  0x20   : > { %1163 = vsyncadd (%p1004_p9), [#allocation7], 4294959104  ;;  %v396_v0 = vld [vmem:[#allocation3 + $0x78] sm:$0xff]  ;;  %v395_v1 = vld [vmem:[#allocation3 + $0x70] sm:$0xff]  ;;  %p366_p13 = scmp.lt.s32.totalorder %s1260_s13, 1  ;;  %v1188_v31 = vmov 0.0  }
  0x21   : > { %397 = vmatpush.msra.mxu0 %v396_v0  ;;  %v394_v2 = vld [vmem:[#allocation3 + $0x68] sm:$0xff]  ;;  %v477_v3 = vld [vmem:[#allocation3 + $0x178] sm:$0xff]  ;;  %v393_v4 = vld [vmem:[#allocation3 + $0x60] sm:$0xff]  ;;  %376 = vst [vmem:[#allocation2] sm:$0x7] %v1188_v31  ;;  %s1449_s0 = sld [smem:[#allocation12_spill]] }
  0x22   : > { %478 = vmatpush.msra.mxu2 %v477_v3  ;;  %v476_v5 = vld [vmem:[#allocation3 + $0x170] sm:$0xff]  ;;  %v516_v6 = vld [vmem:[#allocation3 + $0x1f8] sm:$0xff]  ;;  %v475_v8 = vld [vmem:[#allocation3 + $0x168] sm:$0xff]  ;;  %s1316_s21 = scalar_select %p366_p13, %s1260_s13, 1  ;;  %378 = vst [vmem:[#allocation2 + $0xb] sm:$0x7] %v1188_v31 }
  0x23   : > { %398 = vmatpush.msra.mxu0 %v395_v1  ;;  %517 = vmatpush.msra.mxu3 %v516_v6  ;;  %v438_v7 = vld [vmem:[#allocation3 + $0xf8] sm:$0xff]  ;;  %v515_v10 = vld [vmem:[#allocation3 + $0x1f0] sm:$0xff]  ;;  %v474_v12 = vld [vmem:[#allocation3 + $0x160] sm:$0xff]  ;;  %s1450_s3 = sld [smem:[#allocation15_spill]]  ;;  %vm642_vm3 = vcmask 130048  }
  0x24   : > { %v392_v9 = vld [vmem:[#allocation3 + $0x58] sm:$0xff]  ;;  %479 = vmatpush.msra.mxu2 %v476_v5  ;;  %439 = vmatpush.msra.mxu1 %v438_v7  ;;  %v437_v11 = vld [vmem:[#allocation3 + $0xf0] sm:$0xff]  ;;  %v514_v13 = vld [vmem:[#allocation3 + $0x1e8] sm:$0xff]  ;;  %s972_s23 = sshll.u32 %s1316_s21, 3  ;;  %s1451_s2 = sld [smem:[#allocation14_spill]] }
  0x25   : > { %399 = vmatpush.msra.mxu0 %v394_v2  ;;  %518 = vmatpush.msra.mxu3 %v515_v10  ;;  %v391_v14 = vld [vmem:[#allocation3 + $0x50] sm:$0xff]  ;;  %v436_v15 = vld [vmem:[#allocation3 + $0xe8] sm:$0xff]  ;;  %v513_v16 = vld [vmem:[#allocation3 + $0x1e0] sm:$0xff] }
  0x26   : > { %480 = vmatpush.msra.mxu2 %v475_v8  ;;  %440 = vmatpush.msra.mxu1 %v437_v11  ;;  %v473_v17 = vld [vmem:[#allocation3 + $0x158] sm:$0xff]  ;;  %v435_v18 = vld [vmem:[#allocation3 + $0xe0] sm:$0xff]  ;;  %v390_v19 = vld [vmem:[#allocation3 + $0x48] sm:$0xff] }
  0x27   : > { %400 = vmatpush.msra.mxu0 %v393_v4  ;;  %519 = vmatpush.msra.mxu3 %v514_v13  ;;  %v512_v20 = vld [vmem:[#allocation3 + $0x1d8] sm:$0xff]  ;;  %v472_v21 = vld [vmem:[#allocation3 + $0x150] sm:$0xff]  ;;  %v389_v23 = vld [vmem:[#allocation3 + $0x40] sm:$0xff]  ;;  %s369_s26 = scalar_lea.vmem %s1449_s0, %s972_s23  ;;  %s356_s23 = sand.u32 1, %s1174_s10  }
  0x28   : > { %481 = vmatpush.msra.mxu2 %v474_v12  ;;  %441 = vmatpush.msra.mxu1 %v436_v15  ;;  %v434_v22 = vld [vmem:[#allocation3 + $0xd8] sm:$0xff]  ;;  %v511_v24 = vld [vmem:[#allocation3 + $0x1d0] sm:$0xff]  ;;  %v471_v25 = vld [vmem:[#allocation3 + $0x148] sm:$0xff]  ;;  %s971_s24 = sshll.u32 %s356_s23, 3  ;;  %s834_s17 = scalar_lea.sflag [#allocation5], %s356_s23 }
  0x29   : > { %401 = vmatpush.msra.mxu0 %v392_v9  ;;  %520 = vmatpush.msra.mxu3 %v513_v16  ;;  %v433_v26 = vld [vmem:[#allocation3 + $0xd0] sm:$0xff]  ;;  %v388_v27 = vld [vmem:[#allocation3 + $0x38] sm:$0xff]  ;;  %v510_v28 = vld [vmem:[#allocation3 + $0x1c8] sm:$0xff]  ;;  %s358_s25 = scalar_lea.vmem [#allocation8], %s971_s24 }
  0x2a   : > { %482 = vmatpush.msra.mxu2 %v473_v17  ;;  %442 = vmatpush.msra.mxu1 %v435_v18  ;;  %v470_v29 = vld [vmem:[#allocation3 + $0x140] sm:$0xff]  ;;  %v432_v30 = vld [vmem:[#allocation3 + $0xc8] sm:$0xff]  ;;  %v387_v32 = vld [vmem:[#allocation3 + $0x30] sm:$0xff]  ;;  %s851_s14 = sshll.u32 %s358_s25, 4  ;;  %s852_s14 = int_to_ptr.vmem [resolvable:$true] %s851_s14 }
  0x2b   : > { %402 = vmatpush.msra.mxu0 %v391_v14  ;;  %521 = vmatpush.msra.mxu3 %v512_v20  ;;  %v509_v33 = vld [vmem:[#allocation3 + $0x1c0] sm:$0xff]  ;;  %v469_v34 = vld [vmem:[#allocation3 + $0x138] sm:$0xff]  ;;  %v386_v36 = vld [vmem:[#allocation3 + $0x28] sm:$0xff] }
  0x2c   : > { %483 = vmatpush.msra.mxu2 %v472_v21  ;;  %443 = vmatpush.msra.mxu1 %v434_v22  ;;  %v431_v35 = vld [vmem:[#allocation3 + $0xc0] sm:$0xff]  ;;  %v508_v37 = vld [vmem:[#allocation3 + $0x1b8] sm:$0xff]  ;;  %v468_v38 = vld [vmem:[#allocation3 + $0x130] sm:$0xff] }
  0x2d   : > { %403 = vmatpush.msra.mxu0 %v390_v19  ;;  %522 = vmatpush.msra.mxu3 %v511_v24  ;;  %v430_v39 = vld [vmem:[#allocation3 + $0xb8] sm:$0xff]  ;;  %v385_v40 = vld [vmem:[#allocation3 + $0x20] sm:$0xff]  ;;  %v507_v41 = vld [vmem:[#allocation3 + $0x1b0] sm:$0xff] }
  0x2e   : > { %484 = vmatpush.msra.mxu2 %v471_v25  ;;  %444 = vmatpush.msra.mxu1 %v433_v26  ;;  %v467_v42 = vld [vmem:[#allocation3 + $0x128] sm:$0xff]  ;;  %v429_v43 = vld [vmem:[#allocation3 + $0xb0] sm:$0xff]  ;;  %v384_v44 = vld [vmem:[#allocation3 + $0x18] sm:$0xff] }
  0x2f   : > { %404 = vmatpush.msra.mxu0 %v389_v23  ;;  %523 = vmatpush.msra.mxu3 %v510_v28  ;;  %v506_v45 = vld [vmem:[#allocation3 + $0x1a8] sm:$0xff]  ;;  %v466_v46 = vld [vmem:[#allocation3 + $0x120] sm:$0xff]  ;;  %v383_v48 = vld [vmem:[#allocation3 + $0x10] sm:$0xff] }
  0x30   : > { %485 = vmatpush.msra.mxu2 %v470_v29  ;;  %445 = vmatpush.msra.mxu1 %v432_v30  ;;  %v428_v47 = vld [vmem:[#allocation3 + $0xa8] sm:$0xff]  ;;  %v505_v49 = vld [vmem:[#allocation3 + $0x1a0] sm:$0xff]  ;;  %v1322_v50 = vld [vmem:[%s369_s26] sm:$0xff]  ;;  %s979_s26 = sshll.u32 %s1260_s13, 3  ;;  %s1132_s13 = scalar_lea.hbm %s1439_s8, 16 }
  0x31   : > { %405 = vmatpush.msra.mxu0 %v388_v27  ;;  %524 = vmatpush.msra.mxu3 %v509_v33  ;;  %v465_v51 = vld [vmem:[#allocation3 + $0x118] sm:$0xff]  ;;  %v427_v52 = vld [vmem:[#allocation3 + $0xa0] sm:$0xff]  ;;  %377 = vst [vmem:[#allocation2 + $0x3] sm:$0xff] %v1322_v50  ;;  %v382_v53 = vld [vmem:[#allocation3 + $0x8] sm:$0xff]  ;;  %s849_s29 = scalar_lea.hbm %s1439_s8, %s979_s26 }
  0x32   : > { %486 = vmatpush.msra.mxu2 %v469_v34  ;;  %446 = vmatpush.msra.mxu1 %v431_v35  ;;  %v504_v54 = vld [vmem:[#allocation3 + $0x198] sm:$0xff]  ;;  %v464_v55 = vld [vmem:[#allocation3 + $0x110] sm:$0xff]  ;;  %v381_v57 = vld [vmem:[#allocation3] sm:$0xff]  ;;  %s853_s16 = sshll.u32 %s849_s29, 4  ;;  %s854_s16 = int_to_ptr.hbm [resolvable:$true] %s853_s16 }
  0x33   : > { %406 = vmatpush.msra.mxu0 %v387_v32  ;;  %525 = vmatpush.msra.mxu3 %v508_v37  ;;  %v426_v56 = vld [vmem:[#allocation3 + $0x98] sm:$0xff]  ;;  %v503_v58 = vld [vmem:[#allocation3 + $0x190] sm:$0xff]  ;;  %v463_v60 = vld [vmem:[#allocation3 + $0x108] sm:$0xff]  ;;  %s1126_s22 = sshra.s32 %s854_s16, 4  ;;  %s1127_s22 = int_to_ptr.hbm [resolvable:$true] %s1126_s22 }
  0x34   : > { %487 = vmatpush.msra.mxu2 %v468_v38  ;;  %447 = vmatpush.msra.mxu1 %v430_v39  ;;  %v555_v59 = vld [vmem:[#allocation3 + $0x278] sm:$0xff]  ;;  %v425_v61 = vld [vmem:[#allocation3 + $0x90] sm:$0xff]  ;;  %v502_v62 = vld [vmem:[#allocation3 + $0x188] sm:$0xff]  ;;  %s1128_s0 = scalar_lea.hbm %s1127_s22, 8  ;;  %p1133_p3 = scmp.lt.s32.totalorder %s1127_s22, %s1439_s8 }
  0x35   : > { %407 = vmatpush.msra.mxu0 %v386_v36  ;;  %526 = vmatpush.msra.mxu3 %v507_v41  ;;  %v554_v63 = vld [vmem:[#allocation3 + $0x270] sm:$0xff]  ;;  %v462_v0 = vld [vmem:[#allocation3 + $0x100] sm:$0xff]  ;;  %v424_v1 = vld [vmem:[#allocation3 + $0x88] sm:$0xff]  ;;  %p1129_p0 = scmp.ne.s32.totalorder %s1127_s22, %s1128_s0  ;;  %p1134_p4 = scmp.lt.s32.totalorder %s1132_s13, %s1128_s0 }
  0x36   : > { %488 = vmatpush.msra.mxu2 %v467_v42  ;;  %448 = vmatpush.msra.mxu1 %v429_v43  ;;  %v553_v2 = vld [vmem:[#allocation3 + $0x268] sm:$0xff]  ;;  %v501_v3 = vld [vmem:[#allocation3 + $0x180] sm:$0xff]  ;;  %v551_v9 = vld [vmem:[#allocation3 + $0x258] sm:$0xff] }
  0x37   : > { %408 = vmatpush.msra.mxu0 %v385_v40  ;;  %527 = vmatpush.msra.mxu3 %v506_v45  ;;  %v552_v6 = vld [vmem:[#allocation3 + $0x260] sm:$0xff]  ;;  %v599_v10 = vld [vmem:[%s1450_s3 + $0x78] sm:$0xff]  ;;  %v550_v11 = vld [vmem:[#allocation3 + $0x250] sm:$0xff]  ;;  %p1130_p1 = pnand %p1129_p0, %p1277_p5  ;;  %p1135_p7 = por %p1134_p4, %p1133_p3 }
  0x38   : > { %489 = vmatpush.msra.mxu2 %v466_v46  ;;  %449 = vmatpush.msra.mxu1 %v428_v47  ;;  %v380_v4 = vld [vmem:[#allocation2] sm:$0xff]  ;;  %v423_v7 = vld [vmem:[#allocation3 + $0x80] sm:$0xff]  ;;  %v549_v13 = vld [vmem:[#allocation3 + $0x248] sm:$0xff] }
  0x39   : > { %409 = vmatpush.msra.mxu0 %v384_v44  ;;  %528 = vmatpush.msra.mxu3 %v505_v49  ;;  %v499_v5 = vld [vmem:[#allocation2 + $0x4] sm:$0xff]  ;;  %v598_v12 = vld [vmem:[%s1450_s3 + $0x70] sm:$0xff]  ;;  %v545_v18 = vld [vmem:[#allocation3 + $0x228] sm:$0xff]  ;;  %p1131_p2 = pneg %p1130_p1 }
  0x3a   : > { %490 = vmatpush.msra.mxu2 %v465_v51  ;;  %450 = vmatpush.msra.mxu1 %v427_v52  ;;  %v421_v8 = vld [vmem:[#allocation2 + $0x2] sm:$0xff]  ;;  %v548_v15 = vld [vmem:[#allocation3 + $0x240] sm:$0xff]  ;;  %v541_v22 = vld [vmem:[#allocation3 + $0x208] sm:$0xff] }
  0x3b   : > { %410 = vmatpush.msra.mxu0 %v383_v48  ;;  %529 = vmatpush.msra.mxu3 %v504_v54  ;;  %v597_v14 = vld [vmem:[%s1450_s3 + $0x68] sm:$0xff]  ;;  %v546_v17 = vld [vmem:[#allocation3 + $0x230] sm:$0xff]  ;;  %v544_v19 = vld [vmem:[#allocation3 + $0x220] sm:$0xff]  ;;  %p1136_p8 = pnand %p1135_p7, %p1131_p2 }
  0x3c   : > { %491 = vmatpush.msra.mxu2 %v464_v55  ;;  %451 = vmatpush.msra.mxu1 %v426_v56  ;;  %v547_v16 = vld [vmem:[#allocation3 + $0x238] sm:$0xff]  ;;  %v542_v21 = vld [vmem:[#allocation3 + $0x210] sm:$0xff]  ;;  %v540_v23 = vld [vmem:[#allocation3 + $0x200] sm:$0xff] }
  0x3d   : > { %411 = vmatpush.msra.mxu0 %v382_v53  ;;  %530 = vmatpush.msra.mxu3 %v503_v58  ;;  %v543_v20 = vld [vmem:[#allocation3 + $0x218] sm:$0xff]  ;;  %v596_v25 = vld [vmem:[%s1450_s3 + $0x60] sm:$0xff]  ;;  %v595_v26 = vld [vmem:[%s1450_s3 + $0x58] sm:$0xff] }
  0x3e   : > { %492 = vmatpush.msra.mxu2 %v463_v60  ;;  %452 = vmatpush.msra.mxu1 %v425_v61  ;;  %v538_v24 = vld [vmem:[#allocation2 + $0x6] sm:$0xff]  ;;  %v594_v27 = vld [vmem:[%s1450_s3 + $0x50] sm:$0xff]  ;;  %v591_v30 = vld [vmem:[%s1450_s3 + $0x38] sm:$0xff] }
  0x3f   : > { %412 = vmatpush.msra.mxu0 %v381_v57  ;;  %531 = vmatpush.msra.mxu3 %v502_v62  ;;  %v593_v28 = vld [vmem:[%s1450_s3 + $0x48] sm:$0xff]  ;;  %v592_v29 = vld [vmem:[%s1450_s3 + $0x40] sm:$0xff]  ;;  %v590_v31 = vld [vmem:[%s1450_s3 + $0x30] sm:$0xff] }
  0x40   : > { %493 = vmatpush.msra.mxu2 %v462_v0  ;;  %453 = vmatpush.msra.mxu1 %v424_v1  ;;  %v589_v32 = vld [vmem:[%s1450_s3 + $0x28] sm:$0xff]  ;;  %v588_v33 = vld [vmem:[%s1450_s3 + $0x20] sm:$0xff]  ;;  %v587_v34 = vld [vmem:[%s1450_s3 + $0x18] sm:$0xff] }
  0x41   : > { %556 = vmatpush.msrb.mxu0 %v555_v59  ;;  %494 = vmatmul.f32.vlgmr.msra.gmra.mxu2 %v1322_v50  ;;  %v586_v35 = vld [vmem:[%s1450_s3 + $0x10] sm:$0xff]  ;;  %v585_v36 = vld [vmem:[%s1450_s3 + $0x8] sm:$0xff]  ;;  %v1046_v37 = vld [vmem:[%s1451_s2] ss:$0 sm:$0xff] }
  0x42   : > { %532 = vmatpush.msra.mxu3 %v501_v3  ;;  %413 = vmatmul.f32.vlgmr.msra.gmra.mxu0 %v380_v4  ;;  %v584_v38 = vld [vmem:[%s1450_s3] sm:$0xff]  ;;  %v641_v57 = vld [vmem:[%s1436_s5 + $0x8] sm:$0xff]  ;;  %v767_v3 = vld [vmem:[#allocation6 + $0x168] sm:$0xff] }
  0x43   : > { %557 = vmatpush.msrb.mxu0 %v554_v63  ;;  %533 = vmatmul.f32.vlgmr.msra.gmra.mxu3 %v499_v5  ;;  %v640_v58 = vld [vmem:[%s1436_s5] sm:$0xff]  ;;  %v730_v60 = vld [vmem:[#allocation6 + $0xf8] sm:$0xff] }
  0x44   : > { %454 = vmatpush.msra.mxu1 %v423_v7  ;;  %660 = vmatpush.msrb.mxu2 %v641_v57  ;;  %v600_v59 = vld [vmem:[%s1435_s4] sm:$0x1]  ;;  %v769_v61 = vld [vmem:[#allocation6 + $0x178] sm:$0xff]  ;;  %v727_v7 = vld [vmem:[#allocation6 + $0xe0] sm:$0xff] }
  0x45   : > { %558 = vmatpush.msrb.mxu0 %v553_v2  ;;  %455 = vmatmul.f32.vlgmr.msra.gmra.mxu1 %v421_v8  ;;  %v729_v62 = vld [vmem:[#allocation6 + $0xf0] sm:$0xff]  ;;  %v728_v2 = vld [vmem:[#allocation6 + $0xe8] sm:$0xff]  ;;  %v689_v4 = vld [vmem:[#allocation6 + $0x78] sm:$0xff] }
  0x46   : > { %601 = vmatpush.msrb.mxu1 %v599_v10  ;;  %661 = vmatpush.msrb.mxu2 %v640_v58  ;;  %v768_v0 = vld [vmem:[#allocation6 + $0x170] sm:$0xff]  ;;  %v807_v5 = vld [vmem:[#allocation6 + $0x1f8] sm:$0xff]  ;;  %v766_v8 = vld [vmem:[#allocation6 + $0x160] sm:$0xff] }
  0x47   : > { %559 = vmatpush.msrb.mxu0 %v552_v6  ;;  %690 = vmatpush.msrb.mxu3 %v689_v4  ;;  %v806_v10 = vld [vmem:[#allocation6 + $0x1f0] sm:$0xff]  ;;  %v796_v4 = vld [vmem:[#allocation6 + $0x1a0] sm:$0xff] }
  0x48   : > { %602 = vmatpush.msrb.mxu1 %v598_v12  ;;  %731 = vmatpush.msra.mxu2 %v730_v60  ;;  %v726_v12 = vld [vmem:[#allocation6 + $0xd8] sm:$0xff]  ;;  %v680_v57 = vld [vmem:[#allocation6 + $0x30] sm:$0xff] }
  0x49   : > { %560 = vmatpush.msrb.mxu0 %v551_v9  ;;  %v688_v9 = vld [vmem:[#allocation6 + $0x70] sm:$0xff] }
  0x4a   : > { %603 = vmatpush.msrb.mxu1 %v597_v14  ;;  %732 = vmatpush.msra.mxu2 %v729_v62  ;;  %v805_v14 = vld [vmem:[#allocation6 + $0x1e8] sm:$0xff]  ;;  %v717_v58 = vld [vmem:[#allocation6 + $0x90] sm:$0xff] }
  0x4b   : > { %561 = vmatpush.msrb.mxu0 %v550_v11  ;;  %v687_v11 = vld [vmem:[#allocation6 + $0x68] sm:$0xff]  ;;  %691 = vmatpush.msrb.mxu3 %v688_v9  ;;  %v798_v60 = vld [vmem:[#allocation6 + $0x1b0] sm:$0xff] }
  0x4c   : > { %604 = vmatpush.msrb.mxu1 %v596_v25  ;;  %733 = vmatpush.msra.mxu2 %v728_v2  ;;  %v716_v62 = vld [vmem:[#allocation6 + $0x88] sm:$0xff]  ;;  %v715_v2 = vld [vmem:[#allocation6 + $0x80] sm:$0xff] }
  0x4d   : > { %562 = vmatpush.msrb.mxu0 %v549_v13  ;;  %v765_v13 = vld [vmem:[#allocation6 + $0x158] sm:$0xff]  ;;  %692 = vmatpush.msrb.mxu3 %v687_v11  ;;  %v675_v9 = vld [vmem:[#allocation6 + $0x8] sm:$0xff]  ;;  %v674_v11 = vld [vmem:[#allocation6] sm:$0xff] }
  0x4e   : > { %605 = vmatpush.msrb.mxu1 %v595_v26  ;;  %734 = vmatpush.msra.mxu2 %v727_v7  ;;  %v723_v26 = vld [vmem:[#allocation6 + $0xc0] sm:$0xff]  ;;  %v676_v7 = vld [vmem:[#allocation6 + $0x10] sm:$0xff] }
  0x4f   : > { %563 = vmatpush.msrb.mxu0 %v548_v15  ;;  %v686_v15 = vld [vmem:[#allocation6 + $0x60] sm:$0xff] }
  0x50   : > { %606 = vmatpush.msrb.mxu1 %v594_v27  ;;  %735 = vmatpush.msra.mxu2 %v726_v12  ;;  %v762_v27 = vld [vmem:[#allocation6 + $0x140] sm:$0xff] }
  0x51   : > { %564 = vmatpush.msrb.mxu0 %v547_v16  ;;  %v804_v16 = vld [vmem:[#allocation6 + $0x1e0] sm:$0xff]  ;;  %693 = vmatpush.msrb.mxu3 %v686_v15 }
  0x52   : > { %607 = vmatpush.msrb.mxu1 %v593_v28  ;;  %v792_v12 = vld [vmem:[#allocation6 + $0x180] sm:$0xff] }
  0x53   : > { %565 = vmatpush.msrb.mxu0 %v546_v17  ;;  %v725_v17 = vld [vmem:[#allocation6 + $0xd0] sm:$0xff] }
  0x54   : > { %608 = vmatpush.msrb.mxu1 %v592_v29  ;;  %736 = vmatpush.msra.mxu2 %v725_v17  ;;  %v683_v29 = vld [vmem:[#allocation6 + $0x48] sm:$0xff] }
  0x55   : > { %566 = vmatpush.msrb.mxu0 %v545_v18  ;;  %v764_v18 = vld [vmem:[#allocation6 + $0x150] sm:$0xff] }
  0x56   : > { %609 = vmatpush.msrb.mxu1 %v591_v30  ;;  %v801_v30 = vld [vmem:[#allocation6 + $0x1c8] sm:$0xff] }
  0x57   : > { %567 = vmatpush.msrb.mxu0 %v544_v19  ;;  %v685_v19 = vld [vmem:[#allocation6 + $0x58] sm:$0xff] }
  0x58   : > { %610 = vmatpush.msrb.mxu1 %v590_v31  ;;  %694 = vmatpush.msrb.mxu3 %v685_v19  ;;  %v722_v31 = vld [vmem:[#allocation6 + $0xb8] sm:$0xff] }
  0x59   : > { %568 = vmatpush.msrb.mxu0 %v543_v20  ;;  %v803_v20 = vld [vmem:[#allocation6 + $0x1d8] sm:$0xff] }
  0x5a   : > { %611 = vmatpush.msrb.mxu1 %v589_v32  ;;  %v761_v32 = vld [vmem:[#allocation6 + $0x138] sm:$0xff] }
  0x5b   : > { %569 = vmatpush.msrb.mxu0 %v542_v21  ;;  %v724_v21 = vld [vmem:[#allocation6 + $0xc8] sm:$0xff] }
  0x5c   : > { %612 = vmatpush.msrb.mxu1 %v588_v33  ;;  %737 = vmatpush.msra.mxu2 %v724_v21  ;;  %v682_v33 = vld [vmem:[#allocation6 + $0x40] sm:$0xff] }
  0x5d   : > { %570 = vmatpush.msrb.mxu0 %v541_v22  ;;  %v763_v22 = vld [vmem:[#allocation6 + $0x148] sm:$0xff] }
  0x5e   : > { %613 = vmatpush.msrb.mxu1 %v587_v34  ;;  %738 = vmatpush.msra.mxu2 %v723_v26  ;;  %v800_v34 = vld [vmem:[#allocation6 + $0x1c0] sm:$0xff] }
  0x5f   : > { %571 = vmatpush.msrb.mxu0 %v540_v23  ;;  %v684_v23 = vld [vmem:[#allocation6 + $0x50] sm:$0xff] }
  0x60   : > { %572 = vmatmul.f32.vlgmr.msrb.gmra.mxu0 %v538_v24  ;;  %614 = vmatpush.msrb.mxu1 %v586_v35  ;;  %v802_v24 = vld [vmem:[#allocation6 + $0x1d0] sm:$0xff] }
  0x61   : > { %770 = vmatpush.msra.mxu0 %v769_v61  ;;  %695 = vmatpush.msrb.mxu3 %v684_v23  ;;  %v721_v35 = vld [vmem:[#allocation6 + $0xb0] sm:$0xff]  ;;  %v679_v61 = vld [vmem:[#allocation6 + $0x28] sm:$0xff] }
  0x62   : > { %615 = vmatpush.msrb.mxu1 %v585_v36  ;;  %v760_v36 = vld [vmem:[#allocation6 + $0x130] sm:$0xff]  ;;  %739 = vmatpush.msra.mxu2 %v722_v31 }
  0x63   : > { %771 = vmatpush.msra.mxu0 %v768_v0  ;;  %696 = vmatpush.msrb.mxu3 %v683_v29  ;;  %v797_v0 = vld [vmem:[#allocation6 + $0x1a8] sm:$0xff] }
  0x64   : > { %616 = vmatpush.msrb.mxu1 %v584_v38  ;;  %v759_v38 = vld [vmem:[#allocation6 + $0x128] sm:$0xff]  ;;  %740 = vmatpush.msra.mxu2 %v721_v35 }
  0x65   : > { %772 = vmatpush.msra.mxu0 %v767_v3  ;;  %697 = vmatpush.msrb.mxu3 %v682_v33  ;;  %v754_v3 = vld [vmem:[#allocation6 + $0x100] sm:$0xff] }
  0x66   : > { %808 = vmatpush.msra.mxu1 %v807_v5  ;;  %v677_v5 = vld [vmem:[#allocation6 + $0x18] sm:$0xff] }
  0x67   : > { %773 = vmatpush.msra.mxu0 %v766_v8  ;;  %v794_v8 = vld [vmem:[#allocation6 + $0x190] sm:$0xff] }
  0x68   : > { %809 = vmatpush.msra.mxu1 %v806_v10  ;;  %v793_v10 = vld [vmem:[#allocation6 + $0x188] sm:$0xff] }
  0x69   : > { %774 = vmatpush.msra.mxu0 %v765_v13 }
  0x6a   : > { %810 = vmatpush.msra.mxu1 %v805_v14 }
  0x6b   : > { %775 = vmatpush.msra.mxu0 %v764_v18 }
  0x6c   : > { %811 = vmatpush.msra.mxu1 %v804_v16 }
  0x6d   : > { %776 = vmatpush.msra.mxu0 %v763_v22 }
  0x6e   : > { %812 = vmatpush.msra.mxu1 %v803_v20 }
  0x6f   : > { %777 = vmatpush.msra.mxu0 %v762_v27 }
  0x70   : > { %813 = vmatpush.msra.mxu1 %v802_v24 }
  0x71   : > { %778 = vmatpush.msra.mxu0 %v761_v32 }
  0x72   : > { %814 = vmatpush.msra.mxu1 %v801_v30 }
  0x73   : > { %779 = vmatpush.msra.mxu0 %v760_v36 }
  0x74   : > { %815 = vmatpush.msra.mxu1 %v800_v34 }
  0x75   : > { %780 = vmatpush.msra.mxu0 %v759_v38 }
  0xbf   : > { %v414_v39 = vpop.f32.mrf.mxu0 }
  0xc0   : > { %v420_v40 = vadd.f32 %v1046_v37, %v414_v39  ;;  %v720_v37 = vld [vmem:[#allocation6 + $0xa8] sm:$0xff]  ;;  %v719_v39 = vld [vmem:[#allocation6 + $0xa0] sm:$0xff] }
  0xc1   : > { %741 = vmatpush.msra.mxu2 %v720_v37 }
  0xc2   : > { %v456_v41 = vpop.f32.mrf.mxu1 }
  0xc3   : > { %v459_v42 = vadd.f32 %v456_v41, %v420_v40  ;;  %v758_v40 = vld [vmem:[#allocation6 + $0x120] sm:$0xff]  ;;  %742 = vmatpush.msra.mxu2 %v719_v39 }
  0xc4   : > { %v495_v43 = vpop.f32.mrf.mxu2  ;;  %781 = vmatpush.msra.mxu0 %v758_v40 }
  0xc5   : > { %v498_v44 = vadd.f32 %v495_v43, %v459_v42 }
  0xc6   : > { %v534_v45 = vpop.f32.mrf.mxu3 }
  0xc7   : > { %v537_v46 = vadd.f32 %v534_v45, %v498_v44 }
  0xdd   : > { %v573_v47 = vpop.f32.mrf.mxu0 }
  0xde   : > { %v576_v48 = vadd.f32 %v573_v47, %v537_v46 }
  0xe0   : > { %v1377_v49 = vmax.f32 %v576_v48, 0.0 }
  0xe2   : > { %v578_v51 = vrot.slane %v1377_v49, 4 }
  0xe4   : > { %v579_v52 = vadd.f32 %v578_v51, %v1377_v49 }
  0xe6   : > { %v580_v53 = vrot.slane %v579_v52, 2 }
  0xe8   : > { %v581_v54 = vadd.f32 %v580_v53, %v579_v52  ;;  %v681_v53 = vld [vmem:[#allocation6 + $0x38] sm:$0xff] }
  0xe9   : > { %698 = vmatpush.msrb.mxu3 %v681_v53 }
  0xea   : > { %v582_v55 = vrot.slane %v581_v54, 1 }
  0xeb   : > { %699 = vmatpush.msrb.mxu3 %v680_v57 }
  0xec   : > { %v583_v56 = vadd.f32 %v582_v55, %v581_v54  ;;  %v718_v54 = vld [vmem:[#allocation6 + $0x98] sm:$0xff] }
  0xed   : > { %v757_v55 = vld [vmem:[#allocation6 + $0x118] sm:$0xff]  ;;  %743 = vmatpush.msra.mxu2 %v718_v54  ;;  %700 = vmatpush.msrb.mxu3 %v679_v61 }
  0xee   : > { %617 = vmatmul.f32.vlgmr.msrb.gmra.mxu1 %v583_v56  ;;  %v799_v56 = vld [vmem:[#allocation6 + $0x1b8] sm:$0xff]  ;;  %782 = vmatpush.msra.mxu0 %v757_v55 }
  0xef   : > { %816 = vmatpush.msra.mxu1 %v799_v56  ;;  %744 = vmatpush.msra.mxu2 %v717_v58 }
  0xf1   : > { %817 = vmatpush.msra.mxu1 %v798_v60  ;;  %745 = vmatpush.msra.mxu2 %v716_v62 }
  0xf3   : > { %818 = vmatpush.msra.mxu1 %v797_v0  ;;  %746 = vmatpush.msra.mxu2 %v715_v2 }
  0xf5   : > { %819 = vmatpush.msra.mxu1 %v796_v4 }
 0x16b   : > { %v618_v63 = vpop.f32.mrf.mxu1 }
 0x16c   : > { %v619_v1 = vadd.f32 %v618_v63, %v600_v59  ;;  %v756_v59 = vld [vmem:[#allocation6 + $0x110] sm:$0xff]  ;;  %v755_v63 = vld [vmem:[#allocation6 + $0x108] sm:$0xff] }
 0x16d   : > { %783 = vmatpush.msra.mxu0 %v756_v59 }
 0x16e   : > { %v975_v6 = vmul.f32 -1.442695, %v619_v1  ;;  %v678_v1 = vld [vmem:[#allocation6 + $0x20] sm:$0xff] }
 0x16f   : > { %784 = vmatpush.msra.mxu0 %v755_v63  ;;  %701 = vmatpush.msrb.mxu3 %v678_v1 }
 0x170   : > { %1048 = vpow2.f32 %v975_v6  ;;  %v795_v6 = vld [vmem:[#allocation6 + $0x198] sm:$0xff] }
 0x171   : > { %785 = vmatpush.msra.mxu0 %v754_v3  ;;  %702 = vmatpush.msrb.mxu3 %v677_v5 }
 0x172   : > { %820 = vmatpush.msra.mxu1 %v795_v6 }
 0x173   : > { %703 = vmatpush.msrb.mxu3 %v676_v7 }
 0x174   : > { %821 = vmatpush.msra.mxu1 %v794_v8 }
 0x175   : > { %704 = vmatpush.msrb.mxu3 %v675_v9 }
 0x176   : > { %v1049_v25 = vpop.eup %1048  ;;  %822 = vmatpush.msra.mxu1 %v793_v10 }
 0x177   : > { %v624_v28 = vadd.f32 1.0, %v1049_v25  ;;  %705 = vmatpush.msrb.mxu3 %v674_v11 }
 0x178   : > { %823 = vmatpush.msra.mxu1 %v792_v12 }
 0x179   : > { %1050 = vrcp.f32 %v624_v28  ;;  %v636_v44 = vand.u32 2147483648, %v624_v28  ;;  %v634_v46 = vand.u32 2147483647, %v624_v28  ;;  %vm630_vm1 = vweird.f32 %v624_v28 }
 0x17b   : > { %v637_v48 = vor.u32 1.1754944e-38, %v636_v44  ;;  %vm635_vm4 = vcmp.eq.f32.partialorder %v634_v46, 8.507059e+37 }
 0x17f   : > { %v1051_v41 = vpop.eup %1050 }
 0x180   : > { %v626_v42 = vmul.f32 %v1051_v41, %v624_v28  ;;  %vm631_vm0 = vweird.f32 %v1051_v41 }
 0x181   : > { %vm632_vm2 = vmor %vm630_vm1, %vm631_vm0 }
 0x182   : > { %v627_v43 = vsub.f32 1.0, %v626_v42 }
 0x184   : > { %v628_v45 = vmul.f32 %v1051_v41, %v627_v43 }
 0x186   : > { %v629_v47 = vadd.f32 %v1051_v41, %v628_v45 }
 0x188   : > { %v633_v51 = vsel %vm632_vm2, %v1051_v41, %v629_v47 }
 0x189   : > { %v638_v52 = vsel %vm635_vm4, %v637_v48, %v633_v51 }
 0x18a   : > { %976 = vmatmul.msk.f32.vlgmr.msrb.gmra.mxu2 %vm642_vm3, %v638_v52 }
 0x20d   : > { %v663_v13 = vpop.f32.mrf.mxu2 }
 0x20e   : > { %v666_v14 = vperm.slane %v663_v13, 0 }
 0x210   : > { %v667_v15 = vmul.f32 %v666_v14, %v1377_v49 }
 0x212   : > { %v668_v16 = vadd.f32 %v667_v15, %v1322_v50 }
 0x214   : > { %670 = vst [vmem:[#allocation2 + $0x3] sm:$0xff] %v668_v16  ;;  %747 = vmatmul.f32.vlgmr.msra.gmra.mxu2 %v668_v16  ;;  %786 = vmatmul.f32.vlgmr.msra.gmra.mxu0 %v668_v16 }
 0x215   : > { %669 = vst [vmem:[%s358_s25] sm:$0xff] %v668_v16 }
 0x21b   : > { %v671_v17 = vld [vmem:[#allocation2 + $0x2] sm:$0xff] }
 0x21c   : > { %v672_v18 = vld [vmem:[#allocation2 + $0x4] sm:$0xff]  ;;  %706 = vmatmul.f32.vlgmr.msrb.gmra.mxu3 %v671_v17 }
 0x21d   : > { %824 = vmatmul.f32.vlgmr.msra.gmra.mxu1 %v672_v18 }
 0x21e   : > { %1139 = shalt.err (!%p1136_p8)
}
 0x21f   : > { %991 = dma.vmem_to_hbm [thread:$0]  (%p1277_p5), %s852_s14, 128, %s854_s16, %s834_s17   ;;  %v1047_v50 = vld [vmem:[%s1438_s7] ss:$0 sm:$0xff] }
 0x220   : > { %s982_s1 = sshll.u32 %s1316_s21, 4 }
 0x221   : > { %s374_s0 = scalar_lea.vmem %s1440_s9, %s982_s1 }
 0x291   : > { %v787_v49 = vpop.f32.mrf.mxu0 }
 0x292   : > { %v790_v19 = vadd.f32 %v1047_v50, %v787_v49 }
 0x297   : > { %v748_v25 = vpop.f32.mrf.mxu2 }
 0x29a   : > { %v825_v20 = vpop.f32.mrf.mxu1 }
 0x29b   : > { %v828_v21 = vadd.f32 %v825_v20, %v790_v19 }
 0x29d   : > { %v829_v22 = vmax.f32 %v828_v21, 0.0 }
 0x29f   : > { %977 = vst [vmem:[%s374_s0 + $0x8] sm:$0xff] %v829_v22  ;;  %v707_v23 = vpop.f32.mrf.mxu3 }
 0x2a0   : > { %v713_v24 = vadd.f32 %v1047_v50, %v707_v23 }
 0x2a2   : > { %v751_v26 = vadd.f32 %v748_v25, %v713_v24 }
 0x2a4   : > { %v752_v27 = vmax.f32 %v751_v26, 0.0 }
 0x2a6   : > { %830 = vst [vmem:[%s374_s0] sm:$0xff] %v752_v27 }
 0x2a7 PF: > { %p1008_p5 = scmp.ge.s32.totalorder %s1182_s12, 2  ;;  %s868_s3 = sand.u32 1, %s1170_s30  }
 0x2a8   : > { %s869_s19 = scalar_lea.sflag [#allocation5], %s868_s3 }
 0x2a9   : > { %p1001_p9 = pnand %p1008_p5, %p1281_p6 }
 0x2ab   : > { %p1002_p10 = pneg %p1001_p9 }
 0x2ad   : > { %1165 = dma.done.wait (%p1002_p10), %s869_s19, 128  }
 0x2ae   : > { %1167 = vsyncadd (%p1002_p10), %s869_s19, 4294967168  ;;  %p22_p11 = scmp.ge.s32.totalorder %s1264_s15, 4   ;;  %s1452_s30 = smov %s1174_s10 }
 0x2af   : > { %s1453_s10 = smov %s1178_s11  ;;  %s1454_s11 = smov %s1275_s18 }
 0x2b0   : > { %s1455_s12 = smov %s1264_s15  ;;  %24 = sbr.rel (!%p22_p11) target bundleno = 10 (0xa), region = 116 }
 0x2b5   :  { %883 = vsyncpa [#allocation4], 1 }
 0x2b6   :  { %885 = vsyncpa [#allocation4 + $0x1], 1 }
 0x2b7   :  { %886 = vsyncpa [#allocation7], 1 }
 0x2b8   :  { %887 = vsyncpa [#allocation5], 1 }
 0x2b9   :  { %889 = vsyncpa [#allocation5 + $0x1], 1 }

</bundles_post_ra>
